<compile_context>
chip_gen: v7x
topology: tpu7x:2x2x1
jax: 0.10.0
libtpu: 0.0.40
codegen_flags: <defaults>
</compile_context>

<pallas_src>
import math
import functools

import jax
import jax.numpy as jnp
from jax import lax
from jax.experimental import pallas as pl
from jax.experimental.pallas import tpu as pltpu


# --------------------------------------------------------------------------- #
# Pass 1: QKV projection (x @ W + b), computed once per token row.
# --------------------------------------------------------------------------- #
def _qkv_proj_kernel(x_ref, wq_ref, bq_ref, wk_ref, bk_ref, wv_ref, bv_ref,
                     q_ref, k_ref, v_ref, *, q_scale):
    # x_ref : (tm, D_in) bf16 row tile; w*_ref : (D_in, D_hidden) bf16;
    # b*_ref: (1, D_hidden) f32; outputs: (tm, D_hidden) bf16.
    x = x_ref[...]
    q = jnp.dot(x, wq_ref[...], preferred_element_type=jnp.float32) + bq_ref[...]
    # Fold the 1/sqrt(head_size) softmax scale into Q once, here.
    q_ref[...] = (q * q_scale).astype(q_ref.dtype)
    k = jnp.dot(x, wk_ref[...], preferred_element_type=jnp.float32) + bk_ref[...]
    k_ref[...] = k.astype(k_ref.dtype)
    v = jnp.dot(x, wv_ref[...], preferred_element_type=jnp.float32) + bv_ref[...]
    v_ref[...] = v.astype(v_ref.dtype)


# --------------------------------------------------------------------------- #
# Pass 2: flash attention with online softmax (f32 running stats in VMEM).
# --------------------------------------------------------------------------- #
def _flash_attn_kernel(q_ref, k_ref, v_ref, o_ref, m_scr, l_scr, acc_scr):
    # q_ref : (1, tq, head_size) bf16 (already scaled by 1/sqrt(head_size))
    # k_ref : (1, tk, head_size) bf16
    # v_ref : (1, tk, head_size) bf16
    # o_ref : (1, tq, head_size) lane-dense slice of the (B, S, D_hidden) output
    ki = pl.program_id(3)

    @pl.when(ki == 0)
    def _init():
        m_scr[...] = jnp.full_like(m_scr, -jnp.inf)
        l_scr[...] = jnp.zeros_like(l_scr)
        acc_scr[...] = jnp.zeros_like(acc_scr)

    q = q_ref[0]  # (tq, hd) bf16
    k = k_ref[0]  # (tk, hd) bf16
    v = v_ref[0]  # (tk, hd) bf16

    # scores = Q K^T, contraction over head_size (no explicit K transpose),
    # bf16 operands on the MXU, f32 accumulation.
    s = lax.dot_general(q, k, (((1,), (1,)), ((), ())),
                        preferred_element_type=jnp.float32)  # (tq, tk) f32

    # Online (running) softmax update, all in f32.
    m_prev = m_scr[...]
    m_new = jnp.maximum(m_prev, jnp.max(s, axis=-1, keepdims=True))
    alpha = jnp.exp(m_prev - m_new)
    p = jnp.exp(s - m_new)
    l_scr[...] = alpha * l_scr[...] + jnp.sum(p, axis=-1, keepdims=True)
    acc_scr[...] = alpha * acc_scr[...] + jnp.dot(
        p.astype(v.dtype), v, preferred_element_type=jnp.float32)
    m_scr[...] = m_new

    @pl.when(ki == pl.num_programs(3) - 1)
    def _finalize():
        inv_l = pl.reciprocal(l_scr[...], approx=False)  # exact; (tq,1) -> free
        o_ref[0] = (acc_scr[...] * inv_l).astype(o_ref.dtype)


# --------------------------------------------------------------------------- #
# Wrapper: matches SelfAttention.forward (eval mode).
# --------------------------------------------------------------------------- #
def self_attention(x, wq, bq, wk, bk, wv, bv, *, num_heads,
                   tq=256, tk=256, tm=256, mxu_dtype=jnp.bfloat16):
    """x: (B, S, D_in); w*: (D_in, D_hidden); b*: (D_hidden,).
    Returns (B, num_heads, S, head_size), matching the PyTorch module.
    Use tq=tk=128 on v5e; tq=tk=256 (default) on v6e/v7x."""
    B, S, D_in = x.shape
    D_hidden = wq.shape[1]
    assert D_hidden % num_heads == 0
    head_size = D_hidden // num_heads
    assert num_heads == 1 or head_size % 128 == 0, (
        "head_size must be a multiple of 128 for multi-head lane-dense output")

    out_dtype = x.dtype

    tq = min(tq, S)
    tk = min(tk, S)
    assert S % tq == 0 and S % tk == 0, "S must be divisible by the q/kv tiles"
    n_q, n_kv = S // tq, S // tk

    rows = B * S
    tm = min(tm, rows)
    assert rows % tm == 0, "B*S must be divisible by the projection row tile"

    # bf16 operands for the MXU; f32 accumulation inside the kernels.
    xf = x.astype(mxu_dtype).reshape(rows, D_in)
    wqc = wq.astype(mxu_dtype)
    wkc = wk.astype(mxu_dtype)
    wvc = wv.astype(mxu_dtype)
    bq2 = bq.reshape(1, D_hidden).astype(jnp.float32)
    bk2 = bk.reshape(1, D_hidden).astype(jnp.float32)
    bv2 = bv.reshape(1, D_hidden).astype(jnp.float32)

    # Actual VMEM use at these tiles is only a few MiB; 32 MiB is safe on
    # v5e/v6e (128 MiB physical) and inside v7x's 64 MiB physical VMEM.
    vmem_limit = 32 * 1024 * 1024

    # ---- Pass 1: QKV projection (each token projected exactly once) ---------
    w_spec = pl.BlockSpec((D_in, D_hidden), lambda i: (0, 0))
    b_spec = pl.BlockSpec((1, D_hidden), lambda i: (0, 0))
    row_in_spec = pl.BlockSpec((tm, D_in), lambda i: (i, 0))
    row_out_spec = pl.BlockSpec((tm, D_hidden), lambda i: (i, 0))

    q2, k2, v2 = pl.pallas_call(
        functools.partial(_qkv_proj_kernel, q_scale=1.0 / math.sqrt(head_size)),
        out_shape=tuple(jax.ShapeDtypeStruct((rows, D_hidden), mxu_dtype)
                        for _ in range(3)),
        grid_spec=pltpu.PrefetchScalarGridSpec(
            num_scalar_prefetch=0,
            grid=(rows // tm,),
            in_specs=[row_in_spec,
                      w_spec, b_spec,   # query
                      w_spec, b_spec,   # key
                      w_spec, b_spec],  # value
            out_specs=[row_out_spec, row_out_spec, row_out_spec],
        ),
        compiler_params=pltpu.CompilerParams(
            dimension_semantics=("parallel",),
            vmem_limit_bytes=vmem_limit),
    )(xf, wqc, bq2, wkc, bk2, wvc, bv2)

    q3 = q2.reshape(B, S, D_hidden)
    k3 = k2.reshape(B, S, D_hidden)
    v3 = v2.reshape(B, S, D_hidden)

    # ---- Pass 2: flash attention --------------------------------------------
    # Grid: query tiles lead (high-extent parallel axis for v7x megacore);
    # KV tiles innermost ("arbitrary") is the online-softmax reduction.
    grid = (n_q, B, num_heads, n_kv)

    q_spec = pl.BlockSpec((1, tq, head_size), lambda qi, b, h, ki: (b, qi, h))
    kv_spec = pl.BlockSpec((1, tk, head_size), lambda qi, b, h, ki: (b, ki, h))
    o_spec = pl.BlockSpec((1, tq, head_size), lambda qi, b, h, ki: (b, qi, h))

    out = pl.pallas_call(
        _flash_attn_kernel,
        out_shape=jax.ShapeDtypeStruct((B, S, D_hidden), out_dtype),
        grid_spec=pltpu.PrefetchScalarGridSpec(
            num_scalar_prefetch=0,
            grid=grid,
            in_specs=[q_spec, kv_spec, kv_spec],
            out_specs=o_spec,
            scratch_shapes=[
                pltpu.VMEM((tq, 1), jnp.float32),          # running max
                pltpu.VMEM((tq, 1), jnp.float32),          # running sum
                pltpu.VMEM((tq, head_size), jnp.float32),  # running accumulator
            ],
        ),
        compiler_params=pltpu.CompilerParams(
            dimension_semantics=("parallel", "parallel", "parallel", "arbitrary"),
            vmem_limit_bytes=vmem_limit),
    )(q3, k3, v3)

    # (B, S, D_hidden) -> (B, H, S, head_size), matching PyTorch's context_layer.
    return out.reshape(B, S, num_heads, head_size).transpose(0, 2, 1, 3)


def self_attention_ref(x, wq, bq, wk, bk, wv, bv, *, num_heads):
    """Pure-JAX f32 reference mirroring the PyTorch forward (eval mode)."""
    B, S, D_in = x.shape
    D_hidden = wq.shape[1]
    head_size = D_hidden // num_heads

    def split_heads(t):  # (B, S, D_hidden) -> (B, H, S, head_size)
        return t.reshape(B, S, num_heads, head_size).transpose(0, 2, 1, 3)

    q = split_heads(x @ wq + bq)
    k = split_heads(x @ wk + bk)
    v = split_heads(x @ wv + bv)
    scores = jnp.einsum("bhqd,bhkd->bhqk", q, k) / math.sqrt(head_size)
    probs = jax.nn.softmax(scores, axis=-1)
    return jnp.einsum("bhqk,bhkd->bhqd", probs, v)


if __name__ == "__main__":
    # Shapes consistent with the module's config (input_size = hidden_size = 512,
    # num_attention_heads = 1) but with a small batch/sequence that still
    # exercises multiple query/KV tiles at tq = tk = 256.
    B, S = 2, 512
    input_size = 512
    hidden_size = 512
    num_heads = 1

    key = jax.random.PRNGKey(0)
    kx, kq, kbq, kk, kbk, kv, kbv = jax.random.split(key, 7)

    x = jax.random.normal(kx, (B, S, input_size), dtype=jnp.float32)
    # PyTorch Linear weight is (out, in); we store the transpose (in, out) so the
    # kernel computes x @ W + b.
    scale = 1.0 / math.sqrt(input_size)
    wq = jax.random.uniform(kq, (input_size, hidden_size), jnp.float32, -scale, scale)
    wk = jax.random.uniform(kk, (input_size, hidden_size), jnp.float32, -scale, scale)
    wv = jax.random.uniform(kv, (input_size, hidden_size), jnp.float32, -scale, scale)
    bq = jax.random.uniform(kbq, (hidden_size,), jnp.float32, -scale, scale)
    bk = jax.random.uniform(kbk, (hidden_size,), jnp.float32, -scale, scale)
    bv = jax.random.uniform(kbv, (hidden_size,), jnp.float32, -scale, scale)

    out = self_attention(x, wq, bq, wk, bk, wv, bv, num_heads=num_heads,
                         tq=256, tk=256)
    out = jax.block_until_ready(out)

    ref = self_attention_ref(x, wq, bq, wk, bk, wv, bv, num_heads=num_heads)
    assert out.shape == (B, num_heads, S, hidden_size // num_heads)
    # bf16 MXU operands (f32 accumulation) -> small numeric differences vs the
    # pure-f32 reference; tolerance reflects that, not the softmax/reciprocal
    # path (which is exact f32 now).
    max_err = float(jnp.max(jnp.abs(out - ref)))
    assert jnp.allclose(out, ref, atol=2e-2, rtol=2e-2), (
        f"mismatch vs reference, max abs err = {max_err}")

    print("KERNEL_OK")
</pallas_src>

<mosaic_0001>
module attributes {stable_mosaic.version = 11 : i64} {
  func.func @_qkv_proj_kernel(%arg0: i32, %arg1: memref<256x512xbf16, #tpu.memory_space<vmem>>, %arg2: memref<512x512xbf16, #tpu.memory_space<vmem>>, %arg3: memref<1x512xf32, #tpu.memory_space<vmem>>, %arg4: memref<512x512xbf16, #tpu.memory_space<vmem>>, %arg5: memref<1x512xf32, #tpu.memory_space<vmem>>, %arg6: memref<512x512xbf16, #tpu.memory_space<vmem>>, %arg7: memref<1x512xf32, #tpu.memory_space<vmem>>, %arg8: memref<256x512xbf16, #tpu.memory_space<vmem>>, %arg9: memref<256x512xbf16, #tpu.memory_space<vmem>>, %arg10: memref<256x512xbf16, #tpu.memory_space<vmem>>) attributes {dimension_semantics = [#tpu.dimension_semantics<parallel>], iteration_bounds = array<i64: 4>, scalar_prefetch = 0 : i64, scratch_operands = 0 : i64, tpu.core_type = #tpu.core_type<tc>, window_params = [{transform_indices = @transform_0, window_bounds = array<i64: 256, 512>}, {pipeline_mode = #tpu.pipeline_mode<synchronous>, transform_indices = @transform_1, window_bounds = array<i64: 512, 512>}, {pipeline_mode = #tpu.pipeline_mode<synchronous>, transform_indices = @transform_2, window_bounds = array<i64: 1, 512>}, {pipeline_mode = #tpu.pipeline_mode<synchronous>, transform_indices = @transform_3, window_bounds = array<i64: 512, 512>}, {pipeline_mode = #tpu.pipeline_mode<synchronous>, transform_indices = @transform_4, window_bounds = array<i64: 1, 512>}, {pipeline_mode = #tpu.pipeline_mode<synchronous>, transform_indices = @transform_5, window_bounds = array<i64: 512, 512>}, {pipeline_mode = #tpu.pipeline_mode<synchronous>, transform_indices = @transform_6, window_bounds = array<i64: 1, 512>}, {transform_indices = @transform_7, window_bounds = array<i64: 256, 512>}, {transform_indices = @transform_8, window_bounds = array<i64: 256, 512>}, {transform_indices = @transform_9, window_bounds = array<i64: 256, 512>}]} {
    %c0 = arith.constant 0 : index
    %c0_0 = arith.constant 0 : index
    %0 = vector.load %arg1[%c0, %c0_0] : memref<256x512xbf16, #tpu.memory_space<vmem>>, vector<256x512xbf16>
    %c0_1 = arith.constant 0 : index
    %c0_2 = arith.constant 0 : index
    %1 = vector.load %arg2[%c0_1, %c0_2] : memref<512x512xbf16, #tpu.memory_space<vmem>>, vector<512x512xbf16>
    %cst = arith.constant dense<0.000000e+00> : vector<256x512xf32>
    %2 = tpu.matmul %0, %1, %cst {dimension_numbers = #tpu.dot_dimension_numbers<[1], [0], [0], [1], [0, 0, 1, 1], [], []>} : vector<256x512xbf16>, vector<512x512xbf16>, vector<256x512xf32> -> vector<256x512xf32>
    %c0_3 = arith.constant 0 : index
    %c0_4 = arith.constant 0 : index
    %3 = vector.load %arg3[%c0_3, %c0_4] : memref<1x512xf32, #tpu.memory_space<vmem>>, vector<1x512xf32>
    %4 = vector.broadcast %3 : vector<1x512xf32> to vector<256x512xf32>
    %5 = arith.addf %2, %4 : vector<256x512xf32>
    %cst_5 = arith.constant 0.0441941731 : f32
    %6 = vector.broadcast %cst_5 : f32 to vector<256x512xf32>
    %7 = arith.mulf %5, %6 : vector<256x512xf32>
    %8 = arith.truncf %7 : vector<256x512xf32> to vector<256x512xbf16>
    %c0_6 = arith.constant 0 : index
    %c0_7 = arith.constant 0 : index
    %9 = vector.load %arg8[%c0_6, %c0_7] : memref<256x512xbf16, #tpu.memory_space<vmem>>, vector<256x512xbf16>
    tpu.vector_store %arg8[%c0_6, %c0_7], %8 {strides = array<i32>} : memref<256x512xbf16, #tpu.memory_space<vmem>>, vector<256x512xbf16>,
    %c0_8 = arith.constant 0 : index
    %c0_9 = arith.constant 0 : index
    %10 = vector.load %arg4[%c0_8, %c0_9] : memref<512x512xbf16, #tpu.memory_space<vmem>>, vector<512x512xbf16>
    %cst_10 = arith.constant dense<0.000000e+00> : vector<256x512xf32>
    %11 = tpu.matmul %0, %10, %cst_10 {dimension_numbers = #tpu.dot_dimension_numbers<[1], [0], [0], [1], [0, 0, 1, 1], [], []>} : vector<256x512xbf16>, vector<512x512xbf16>, vector<256x512xf32> -> vector<256x512xf32>
    %c0_11 = arith.constant 0 : index
    %c0_12 = arith.constant 0 : index
    %12 = vector.load %arg5[%c0_11, %c0_12] : memref<1x512xf32, #tpu.memory_space<vmem>>, vector<1x512xf32>
    %13 = vector.broadcast %12 : vector<1x512xf32> to vector<256x512xf32>
    %14 = arith.addf %11, %13 : vector<256x512xf32>
    %15 = arith.truncf %14 : vector<256x512xf32> to vector<256x512xbf16>
    %c0_13 = arith.constant 0 : index
    %c0_14 = arith.constant 0 : index
    %16 = vector.load %arg9[%c0_13, %c0_14] : memref<256x512xbf16, #tpu.memory_space<vmem>>, vector<256x512xbf16>
    tpu.vector_store %arg9[%c0_13, %c0_14], %15 {strides = array<i32>} : memref<256x512xbf16, #tpu.memory_space<vmem>>, vector<256x512xbf16>,
    %c0_15 = arith.constant 0 : index
    %c0_16 = arith.constant 0 : index
    %17 = vector.load %arg6[%c0_15, %c0_16] : memref<512x512xbf16, #tpu.memory_space<vmem>>, vector<512x512xbf16>
    %cst_17 = arith.constant dense<0.000000e+00> : vector<256x512xf32>
    %18 = tpu.matmul %0, %17, %cst_17 {dimension_numbers = #tpu.dot_dimension_numbers<[1], [0], [0], [1], [0, 0, 1, 1], [], []>} : vector<256x512xbf16>, vector<512x512xbf16>, vector<256x512xf32> -> vector<256x512xf32>
    %c0_18 = arith.constant 0 : index
    %c0_19 = arith.constant 0 : index
    %19 = vector.load %arg7[%c0_18, %c0_19] : memref<1x512xf32, #tpu.memory_space<vmem>>, vector<1x512xf32>
    %20 = vector.broadcast %19 : vector<1x512xf32> to vector<256x512xf32>
    %21 = arith.addf %18, %20 : vector<256x512xf32>
    %22 = arith.truncf %21 : vector<256x512xf32> to vector<256x512xbf16>
    %c0_20 = arith.constant 0 : index
    %c0_21 = arith.constant 0 : index
    %23 = vector.load %arg10[%c0_20, %c0_21] : memref<256x512xbf16, #tpu.memory_space<vmem>>, vector<256x512xbf16>
    tpu.vector_store %arg10[%c0_20, %c0_21], %22 {strides = array<i32>} : memref<256x512xbf16, #tpu.memory_space<vmem>>, vector<256x512xbf16>,
    return
  }
  func.func @transform_0(%arg0: i32) -> (i32, i32) {
    %c0_i32 = arith.constant 0 : i32
    %c0_i32_0 = arith.constant 0 : i32
    return %arg0, %c0_i32 : i32, i32
  }
  func.func @transform_1(%arg0: i32) -> (i32, i32) {
    %c0_i32 = arith.constant 0 : i32
    %c0_i32_0 = arith.constant 0 : i32
    %c0_i32_1 = arith.constant 0 : i32
    return %c0_i32, %c0_i32_0 : i32, i32
  }
  func.func @transform_2(%arg0: i32) -> (i32, i32) {
    %c0_i32 = arith.constant 0 : i32
    %c0_i32_0 = arith.constant 0 : i32
    %c0_i32_1 = arith.constant 0 : i32
    return %c0_i32, %c0_i32_0 : i32, i32
  }
  func.func @transform_3(%arg0: i32) -> (i32, i32) {
    %c0_i32 = arith.constant 0 : i32
    %c0_i32_0 = arith.constant 0 : i32
    %c0_i32_1 = arith.constant 0 : i32
    return %c0_i32, %c0_i32_0 : i32, i32
  }
  func.func @transform_4(%arg0: i32) -> (i32, i32) {
    %c0_i32 = arith.constant 0 : i32
    %c0_i32_0 = arith.constant 0 : i32
    %c0_i32_1 = arith.constant 0 : i32
    return %c0_i32, %c0_i32_0 : i32, i32
  }
  func.func @transform_5(%arg0: i32) -> (i32, i32) {
    %c0_i32 = arith.constant 0 : i32
    %c0_i32_0 = arith.constant 0 : i32
    %c0_i32_1 = arith.constant 0 : i32
    return %c0_i32, %c0_i32_0 : i32, i32
  }
  func.func @transform_6(%arg0: i32) -> (i32, i32) {
    %c0_i32 = arith.constant 0 : i32
    %c0_i32_0 = arith.constant 0 : i32
    %c0_i32_1 = arith.constant 0 : i32
    return %c0_i32, %c0_i32_0 : i32, i32
  }
  func.func @transform_7(%arg0: i32) -> (i32, i32) {
    %c0_i32 = arith.constant 0 : i32
    %c0_i32_0 = arith.constant 0 : i32
    return %arg0, %c0_i32 : i32, i32
  }
  func.func @transform_8(%arg0: i32) -> (i32, i32) {
    %c0_i32 = arith.constant 0 : i32
    %c0_i32_0 = arith.constant 0 : i32
    return %arg0, %c0_i32 : i32, i32
  }
  func.func @transform_9(%arg0: i32) -> (i32, i32) {
    %c0_i32 = arith.constant 0 : i32
    %c0_i32_0 = arith.constant 0 : i32
    return %arg0, %c0_i32 : i32, i32
  }
}

</mosaic_0001>

<bundles_post_ra>
// kernel: tpu_custom_call.1
= control target key start
LH: loop header
LB: loop body
LE: loop exit
PB: predicated region body
PF: predicated region fallthrough
CT: control target
= control target key end

     0   :  { %s11216_s0 = inlined_call_operand.hbm [shape: bf16[1024,512], index: 0, kind: input, shape index: {}]   ;;  %s11217_s1 = inlined_call_operand.hbm [shape: bf16[512,512], index: 1, kind: input, shape index: {}]   ;;  %s11218_s2 = inlined_call_operand.vmem [shape: f32[1,512], index: 2, kind: input, shape index: {}]   ;;  %s11219_s3 = inlined_call_operand.hbm [shape: bf16[512,512], index: 3, kind: input, shape index: {}]   ;;  %s11220_s4 = inlined_call_operand.vmem [shape: f32[1,512], index: 4, kind: input, shape index: {}]   ;;  %s11221_s5 = inlined_call_operand.hbm [shape: bf16[512,512], index: 5, kind: input, shape index: {}]   ;;  %s11222_s6 = inlined_call_operand.vmem [shape: f32[1,512], index: 6, kind: input, shape index: {}]   ;;  %s11223_s7 = inlined_call_operand.hbm [shape: bf16[1024,512], index: 7, kind: output, shape index: {0}]   ;;  %s11224_s8 = inlined_call_operand.hbm [shape: bf16[1024,512], index: 8, kind: output, shape index: {1}]   ;;  %s11225_s9 = inlined_call_operand.hbm [shape: bf16[1024,512], index: 9, kind: output, shape index: {2}]  }
   0x1   :  { %11233 = sst [smem:[#allocation21_spill]] %s11225_s9 }
   0x2   :  { %15 = vsyncpa [#allocation3], 0 }
   0x3   :  { %17 = vsyncpa [#allocation3 + $0x1], 0 }
   0x4   :  { %18 = vsyncpa [#allocation6], 0 }
   0x5   :  { %19 = vsyncpa [#allocation9], 0 }
   0x6   :  { %20 = vsyncpa [#allocation4], 0 }
   0x7   :  { %22 = vsyncpa [#allocation4 + $0x1], 0 }
   0x8   :  { %23 = vsyncpa [#allocation12], 0 }
   0x9   :  { %25 = vsyncpa [#allocation12 + $0x1], 0  ;;  %s10024_s30 = smov 0   ;;  %s10026_s10 = smov 0  }
   0xa   :  { %s10028_s11 = smov 0   ;;  %s10030_s12 = smov 0  }
   0xb LB: > { %11234 = sst [smem:[#allocation19_spill]] %s9949_s30  ;;  %s10045_s13 = sadd.s32 4294967295, %s9961_s12   ;;  %s9961_s12 = sphi %s10030_s12, %s11259_s12   ;;  %s9957_s11 = sphi %s10028_s11, %s11258_s11   ;;  %s9953_s10 = sphi %s10026_s10, %s11257_s10   ;;  %s9949_s30 = sphi %s10024_s30, %s11256_s30  }
   0xc   : > { %s11227_s14 = sadd.s32 4294967294, %s9961_s12   ;;  %p51_p0 = scmp.ne.s32.totalorder %s9953_s10, %s9949_s30 }
   0xd   : > { %p11226_p1 = scmp.eq.s32.totalorder %s10045_s13, 0  ;;  %p207_p3 = scmp.eq.s32.totalorder %s11227_s14, 3 }
   0xe   : > { %p7183_p5 = scmp.ge.s32.totalorder %s9961_s12, 1  ;;  %p266_p7 = scmp.lt.s32.totalorder %s9961_s12, 5 }
   0xf   : > { %p10056_p4 = por %p11226_p1, %p51_p0  ;;  %p10061_p6 = por %p207_p3, %p51_p0 }
  0x10   : > { %p10066_p8 = pnand %p7183_p5, %p266_p7  ;;  %s9963_s18 = smov [#allocation5]  }
  0x11   : > { %s11235_s15 = scalar_select %p10056_p4, 1, 0 }
  0x12   : > { %s11236_s16 = scalar_select %p10061_p6, 1, 0 }
  0x13   : > { %s11238_s17 = scalar_select %p10066_p8, 1, 0 }
  0x14   : > { %11237 = sst [smem:[#allocation20_spill]] %s11236_s16  ;;  %s278_s19 = sshll.u32 %s9963_s18, 4  ;;  %s10070_s19 = int_to_ptr.vmem [resolvable:$true] %s278_s19 }
  0x15   : > { %p8842_p9 = pneg %p10066_p8  ;;  %s9964_s21 = smov [#allocation7]  }
  0x16   : > { %s294_s22 = sshll.u32 %s9964_s21, 4  ;;  %s9965_s23 = smov [#allocation8]   ;;  %s10080_s22 = int_to_ptr.vmem [resolvable:$true] %s294_s22 }
  0x17   : > { %p10076_p10 = pnand %p8842_p9, %p11226_p1  ;;  %s10082_s24 = sshll.u32 %s9965_s23, 4  ;;  %s311_s24 = int_to_ptr.vmem [resolvable:$true] %s10082_s24 }
  0x18   : > { %s9713_s27 = scalar_lea.hbm %s11217_s1, 16384 }
  0x19   : > { %p9714_p11 = scmp.ne.s32.totalorder %s11217_s1, %s9713_s27  ;;  %p10092_p12 = pneg %p10076_p10 }
  0x1a   : > { %p9720_p3 = scmp.lt.u32.totalorder %s9713_s27, %s11217_s1 }
  0x1b   : > { %p9716_p13 = pnand %p10092_p12, %p9714_p11 }
  0x1d   : > { %p9717_p0 = pneg %p9716_p13 }
  0x1f   : > { %p9722_p5 = pnand %p9720_p3, %p9717_p0 }
  0x21   : > { %9725 = shalt.err (!%p9722_p5)
}
  0x22   : > { %s9726_s25 = scalar_lea.vmem %s10070_s19, 16384  ;;  %p9734_p2 = scmp.lt.s32.totalorder %s10070_s19, %s10070_s19 }
  0x23   : > { %p9727_p7 = scmp.ne.s32.totalorder %s10070_s19, %s9726_s25  ;;  %p9735_p6 = scmp.lt.s32.totalorder %s9726_s25, %s9726_s25 }
  0x25   : > { %p9729_p9 = pnand %p9727_p7, %p10092_p12  ;;  %p9736_p11 = por %p9735_p6, %p9734_p2 }
  0x27   : > { %p9730_p1 = pneg %p9729_p9 }
  0x29   : > { %p9737_p13 = pnand %p9736_p11, %p9730_p1 }
  0x2b   : > { %9740 = shalt.err (!%p9737_p13)
}
  0x2c   : > { %s9966_s26 = smov 256   ;;  %s9967_s27 = smov 16  }
  0x2d   : > { %8845 = dma.hbm_to_vmem [thread:$0]  (!%p10076_p10), %s11217_s1, 16384, %s10070_s19, [#allocation6], %s9966_s26, %s9966_s26, %s9967_s27  }
  0x2e   : > { %s9741_s25 = scalar_lea.hbm %s11219_s3, 16384 }
  0x2f   : > { %p9742_p1 = scmp.ne.s32.totalorder %s11219_s3, %s9741_s25  ;;  %p9748_p0 = scmp.lt.u32.totalorder %s9741_s25, %s11219_s3 }
  0x31   : > { %p9744_p2 = pnand %p9742_p1, %p10092_p12 }
  0x33   : > { %p9745_p6 = pneg %p9744_p2 }
  0x35   : > { %p9750_p3 = pnand %p9748_p0, %p9745_p6 }
  0x37   : > { %9753 = shalt.err (!%p9750_p3)
}
  0x38   : > { %s9754_s19 = scalar_lea.vmem %s10080_s22, 16384  ;;  %p9762_p11 = scmp.lt.s32.totalorder %s10080_s22, %s10080_s22 }
  0x39   : > { %p9755_p5 = scmp.ne.s32.totalorder %s10080_s22, %s9754_s19  ;;  %p9763_p13 = scmp.lt.s32.totalorder %s9754_s19, %s9754_s19 }
  0x3b   : > { %p9757_p7 = pnand %p9755_p5, %p10092_p12  ;;  %p9764_p1 = por %p9763_p13, %p9762_p11 }
  0x3d   : > { %p9758_p9 = pneg %p9757_p7 }
  0x3f   : > { %p9765_p2 = pnand %p9764_p1, %p9758_p9 }
  0x41   : > { %9768 = shalt.err (!%p9765_p2)
}
  0x42   : > { %8848 = dma.hbm_to_vmem [thread:$0]  (!%p10076_p10), %s11219_s3, 16384, %s10080_s22, [#allocation6], %s9966_s26, %s9966_s26, %s9967_s27  }
  0x43   : > { %s9769_s28 = scalar_lea.hbm %s11221_s5, 16384 }
  0x44   : > { %p9770_p6 = scmp.ne.s32.totalorder %s11221_s5, %s9769_s28  ;;  %p9776_p5 = scmp.lt.u32.totalorder %s9769_s28, %s11221_s5 }
  0x46   : > { %p9772_p0 = pnand %p9770_p6, %p10092_p12 }
  0x48   : > { %p9773_p3 = pneg %p9772_p0 }
  0x4a   : > { %p9778_p7 = pnand %p9776_p5, %p9773_p3 }
  0x4c   : > { %9781 = shalt.err (!%p9778_p7)
}
  0x4d   : > { %s9782_s19 = scalar_lea.vmem %s311_s24, 16384  ;;  %p9790_p1 = scmp.lt.s32.totalorder %s311_s24, %s311_s24 }
  0x4e   : > { %p9783_p9 = scmp.ne.s32.totalorder %s311_s24, %s9782_s19  ;;  %p9791_p2 = scmp.lt.s32.totalorder %s9782_s19, %s9782_s19 }
  0x50   : > { %p9785_p11 = pnand %p9783_p9, %p10092_p12  ;;  %p9792_p4 = por %p9791_p2, %p9790_p1 }
  0x52   : > { %p9786_p13 = pneg %p9785_p11 }
  0x54   : > { %p9793_p8 = pnand %p9792_p4, %p9786_p13 }
  0x56   : > { %9796 = shalt.err (!%p9793_p8)
}
  0x57   : > { %8851 = dma.hbm_to_vmem [thread:$0]  (!%p10076_p10), %s11221_s5, 16384, %s311_s24, [#allocation9], %s9966_s26, %s9966_s26, %s9967_s27  }
  0x58   : > { %s10165_s18 = sadd.s32 1, %s9961_s12   ;;  %s38_s30 = sadd.s32 1, %s9957_s11 }
  0x59   : > { %s35_s20 = ssub.s32 %s9961_s12, %s10165_s18  ;;  %p45_p8 = scmp.ne.s32.totalorder %s9957_s11, %s9953_s10 }
  0x5a   : > { %p36_p4 = scmp.eq.s32.totalorder %s35_s20, 0  ;;  %p46_p12 = scmp.eq.s32.totalorder %s9961_s12, 0 }
  0x5b   : > { %p8869_p6 = scmp.lt.s32.totalorder %s9961_s12, 4  ;;  %p11241_p3 = scmp.eq.s32.totalorder %s10045_s13, 3 }
  0x5c   : > { %s10175_s14 = scalar_select %p36_p4, %s9957_s11, %s38_s30  }
  0x5d   : > { %p47_p0 = por %p46_p12, %p45_p8  ;;  %p10179_p5 = por %p11241_p3, %p45_p8 }
  0x5e   : > { %s327_s28 = sand.u32 1, %s9957_s11   ;;  %s7855_s29 = sshll.u32 %s9961_s12, 13 }
  0x5f   : > { %s7188_s24 = sshll.u32 %s327_s28, 9  ;;  %s10188_s25 = scalar_lea.hbm %s11216_s0, %s7855_s29 }
  0x60   : > { %s331_s19 = scalar_lea.vmem [#allocation2], %s7188_s24  ;;  %p10190_p10 = pnand %p8869_p6, %p47_p0 }
  0x61   : > { %s339_s22 = sshll.u32 %s331_s19, 4  ;;  %s10196_s20 = scalar_lea.sflag [#allocation3], %s327_s28  ;;  %s10194_s22 = int_to_ptr.vmem [resolvable:$true] %s339_s22 }
  0x62   : > { %s9797_s30 = scalar_lea.hbm %s10188_s25, 8192  ;;  %p9799_p9 = pneg %p10190_p10 }
  0x63   : > { %p9798_p7 = scmp.ne.s32.totalorder %s10188_s25, %s9797_s30  ;;  %s9802_s21 = scalar_lea.hbm %s11216_s0, 32768 }
  0x64   : > { %p9803_p1 = scmp.lt.u32.totalorder %s10188_s25, %s11216_s0  ;;  %p9804_p2 = scmp.lt.u32.totalorder %s9802_s21, %s9797_s30 }
  0x65   : > { %p9800_p11 = pnand %p9799_p9, %p9798_p7  ;;  %p9806_p8 = scmp.lt.u32.totalorder %s9797_s30, %s10188_s25 }
  0x66   : > { %p9805_p4 = por %p9804_p2, %p9803_p1 }
  0x67   : > { %p9801_p13 = pneg %p9800_p11 }
  0x68   : > { %p9807_p12 = por %p9806_p8, %p9805_p4 }
  0x6a   : > { %p9808_p6 = pnand %p9807_p12, %p9801_p13 }
  0x6c   : > { %9811 = shalt.err (!%p9808_p6)
}
  0x6d   : > { %s9812_s28 = scalar_lea.vmem %s10194_s22, 8192  ;;  %s9968_s29 = smov [#allocation2]  }
  0x6e   : > { %p9813_p0 = scmp.ne.s32.totalorder %s10194_s22, %s9812_s28  ;;  %s9817_s24 = sshll.u32 %s9968_s29, 4  ;;  %s9818_s24 = int_to_ptr.vmem [resolvable:$false] %s9817_s24 }
  0x6f   : > { %s9819_s23 = scalar_lea.vmem %s9818_s24, 16384  ;;  %p9820_p11 = scmp.lt.s32.totalorder %s10194_s22, %s9818_s24 }
  0x70   : > { %p9815_p3 = pnand %p9813_p0, %p9799_p9  ;;  %p9821_p1 = scmp.lt.s32.totalorder %s9819_s23, %s9812_s28 }
  0x72   : > { %p9816_p7 = pneg %p9815_p3  ;;  %p9822_p2 = por %p9821_p1, %p9820_p11 }
  0x74   : > { %p9823_p4 = pnand %p9822_p2, %p9816_p7 }
  0x76   : > { %9826 = shalt.err (!%p9823_p4)
}
  0x77   : > { %8855 = dma.hbm_to_vmem [thread:$0]  (!%p10190_p10), %s10188_s25, 8192, %s10194_s22, %s10196_s20, %s9966_s26, %s9966_s26, %s9967_s27  }
  0x78   : > { %p11244_p9 = scmp.ne.s32.totalorder %s11238_s17, 0 }
  0x79   : > { %s10230_s30 = sand.u32 (!%p11244_p9), 1, %s9953_s10   ;;  %p11245_p13 = scmp.ne.s32.totalorder (!%p11244_p9), %s11235_s15, 0 }
  0x7a   : > { %351 = sbr.rel (%p11244_p9) target bundleno = 1195 (0x4ab), region = 48  ;;  %s10233_s21 = sshll.u32 (!%p11244_p9), %s10230_s30, 9 }
  0x7b   : > { %s354_s9 = scalar_lea.sflag (!%p11244_p9), [#allocation3], %s10230_s30  ;;  %s10237_s19 = scalar_lea.vmem (!%p11244_p9), [#allocation2], %s10233_s21 }
  0x81   : > { %9928 = dma.done.wait (%p11245_p13), %s354_s9, 8192  }
  0x82   : > { %9930 = vsyncadd (%p11245_p13), %s354_s9, 4294959104  ;;  %p11246_p10 = scmp.eq.s32.totalorder %s10045_s13, 0 }
  0x84   : > { %9932 = dma.done.wait (%p11246_p10), [#allocation6], 32768   ;;  %p11247_p8 = pmov %p11246_p10 }
  0x86   : > { %9934 = vsyncadd (%p11247_p8), [#allocation6], 4294934528  ;;  %p11248_p12 = pmov %p11247_p8 }
  0x87   : > { %p11249_p6 = pmov %p11247_p8 }
  0x88   : > { %9936 = dma.done.wait (%p11248_p12), [#allocation9], 16384  }
  0x89   : > { %9938 = vsyncadd (%p11249_p6), [#allocation9], 4294950912  ;;  %v8913_v0 = vld [vmem:[#allocation5 + $0x4] ss:$16 sps:$4 sm:$0xff]   ;;  %v8915_v1 = vld [vmem:[#allocation5 + $0xc] ss:$16 sps:$4 sm:$0xff]  }
  0x8a   : > { %1592 = vmatprep.subr.bf16.mxu0 %v8913_v0  ;;  %v8917_v2 = vld [vmem:[#allocation5] ss:$16 sps:$4 sm:$0xff]   ;;  %v8918_v3 = vld [vmem:[#allocation5 + $0x8] ss:$16 sps:$4 sm:$0xff]   ;;  %1978 = vmatprep.subr.bf16.mxu1 %v8915_v1  ;;  %v8919_v4 = vld [vmem:[#allocation5 + $0x24] ss:$16 sps:$4 sm:$0xff]  }
  0x8b   : > { %1593 = vmatpush1.bf16.msra.mxu0 %v8917_v2  ;;  %1979 = vmatpush1.bf16.msra.mxu1 %v8918_v3  ;;  %v8921_v5 = vld [vmem:[#allocation5 + $0x2c] ss:$16 sps:$4 sm:$0xff]   ;;  %v8923_v6 = vld [vmem:[#allocation5 + $0x20] ss:$16 sps:$4 sm:$0xff]   ;;  %v8924_v7 = vld [vmem:[#allocation5 + $0x28] ss:$16 sps:$4 sm:$0xff]  }
  0x8c   : > { %1594 = vmatprep.subr.bf16.mxu0 %v8919_v4  ;;  %1980 = vmatprep.subr.bf16.mxu1 %v8921_v5  ;;  %v8925_v8 = vld [vmem:[#allocation5 + $0x44] ss:$16 sps:$4 sm:$0xff]   ;;  %v8927_v9 = vld [vmem:[#allocation5 + $0x4c] ss:$16 sps:$4 sm:$0xff]   ;;  %v8929_v10 = vld [vmem:[#allocation5 + $0x40] ss:$16 sps:$4 sm:$0xff]  }
  0x8d   : > { %v8930_v11 = vld [vmem:[#allocation5 + $0x48] ss:$16 sps:$4 sm:$0xff]   ;;  %v8931_v12 = vld [vmem:[#allocation5 + $0x64] ss:$16 sps:$4 sm:$0xff]   ;;  %v8933_v13 = vld [vmem:[#allocation5 + $0x6c] ss:$16 sps:$4 sm:$0xff]  }
  0x8e   : > { %v8935_v14 = vld [vmem:[#allocation5 + $0x60] ss:$16 sps:$4 sm:$0xff]   ;;  %v8936_v15 = vld [vmem:[#allocation5 + $0x68] ss:$16 sps:$4 sm:$0xff]   ;;  %v8937_v16 = vld [vmem:[#allocation5 + $0x84] ss:$16 sps:$4 sm:$0xff]  }
  0x8f   : > { %1595 = vmatpush1.bf16.msra.mxu0 %v8923_v6  ;;  %1981 = vmatpush1.bf16.msra.mxu1 %v8924_v7  ;;  %v8939_v17 = vld [vmem:[#allocation5 + $0x8c] ss:$16 sps:$4 sm:$0xff]   ;;  %v8941_v18 = vld [vmem:[#allocation5 + $0x80] ss:$16 sps:$4 sm:$0xff]   ;;  %v8942_v19 = vld [vmem:[#allocation5 + $0x88] ss:$16 sps:$4 sm:$0xff]  }
  0x90   : > { %1596 = vmatprep.subr.bf16.mxu0 %v8925_v8  ;;  %1982 = vmatprep.subr.bf16.mxu1 %v8927_v9  ;;  %v8943_v20 = vld [vmem:[#allocation5 + $0xa4] ss:$16 sps:$4 sm:$0xff]   ;;  %v8945_v21 = vld [vmem:[#allocation5 + $0xac] ss:$16 sps:$4 sm:$0xff]   ;;  %v8947_v22 = vld [vmem:[#allocation5 + $0xa0] ss:$16 sps:$4 sm:$0xff]  }
  0x91   : > { %v8948_v23 = vld [vmem:[#allocation5 + $0xa8] ss:$16 sps:$4 sm:$0xff]   ;;  %v8949_v24 = vld [vmem:[#allocation5 + $0xc4] ss:$16 sps:$4 sm:$0xff]   ;;  %v8951_v25 = vld [vmem:[#allocation5 + $0xcc] ss:$16 sps:$4 sm:$0xff]  }
  0x92   : > { %v8953_v26 = vld [vmem:[#allocation5 + $0xc0] ss:$16 sps:$4 sm:$0xff]   ;;  %v8954_v27 = vld [vmem:[#allocation5 + $0xc8] ss:$16 sps:$4 sm:$0xff]   ;;  %v8955_v28 = vld [vmem:[#allocation5 + $0xe4] ss:$16 sps:$4 sm:$0xff]  }
  0x93   : > { %1597 = vmatpush1.bf16.msra.mxu0 %v8929_v10  ;;  %1983 = vmatpush1.bf16.msra.mxu1 %v8930_v11  ;;  %v8957_v29 = vld [vmem:[#allocation5 + $0xec] ss:$16 sps:$4 sm:$0xff]   ;;  %v8959_v30 = vld [vmem:[#allocation5 + $0xe0] ss:$16 sps:$4 sm:$0xff]   ;;  %v8960_v31 = vld [vmem:[#allocation5 + $0xe8] ss:$16 sps:$4 sm:$0xff]  }
  0x94   : > { %1598 = vmatprep.subr.bf16.mxu0 %v8931_v12  ;;  %1984 = vmatprep.subr.bf16.mxu1 %v8933_v13  ;;  %v8961_v32 = vld [vmem:[#allocation5 + $0x104] ss:$16 sps:$4 sm:$0xff]   ;;  %v8963_v33 = vld [vmem:[#allocation5 + $0x10c] ss:$16 sps:$4 sm:$0xff]   ;;  %v8965_v34 = vld [vmem:[#allocation5 + $0x100] ss:$16 sps:$4 sm:$0xff]  }
  0x95   : > { %v8966_v35 = vld [vmem:[#allocation5 + $0x108] ss:$16 sps:$4 sm:$0xff]   ;;  %v8967_v36 = vld [vmem:[#allocation5 + $0x124] ss:$16 sps:$4 sm:$0xff]   ;;  %v8969_v37 = vld [vmem:[#allocation5 + $0x12c] ss:$16 sps:$4 sm:$0xff]  }
  0x96   : > { %v8971_v38 = vld [vmem:[#allocation5 + $0x120] ss:$16 sps:$4 sm:$0xff]   ;;  %v8972_v39 = vld [vmem:[#allocation5 + $0x128] ss:$16 sps:$4 sm:$0xff]   ;;  %v8973_v40 = vld [vmem:[#allocation5 + $0x144] ss:$16 sps:$4 sm:$0xff]  }
  0x97   : > { %1599 = vmatpush1.bf16.msra.mxu0 %v8935_v14  ;;  %1985 = vmatpush1.bf16.msra.mxu1 %v8936_v15  ;;  %v8975_v41 = vld [vmem:[#allocation5 + $0x14c] ss:$16 sps:$4 sm:$0xff]   ;;  %v8977_v42 = vld [vmem:[#allocation5 + $0x140] ss:$16 sps:$4 sm:$0xff]   ;;  %v8978_v43 = vld [vmem:[#allocation5 + $0x148] ss:$16 sps:$4 sm:$0xff]  }
  0x98   : > { %1600 = vmatprep.subr.bf16.mxu0 %v8937_v16  ;;  %1986 = vmatprep.subr.bf16.mxu1 %v8939_v17  ;;  %v8979_v44 = vld [vmem:[#allocation5 + $0x164] ss:$16 sps:$4 sm:$0xff]   ;;  %v8981_v45 = vld [vmem:[#allocation5 + $0x16c] ss:$16 sps:$4 sm:$0xff]   ;;  %v8983_v46 = vld [vmem:[#allocation5 + $0x160] ss:$16 sps:$4 sm:$0xff]  }
  0x99   : > { %v8984_v47 = vld [vmem:[#allocation5 + $0x168] ss:$16 sps:$4 sm:$0xff]   ;;  %v9009_v48 = vld [vmem:[%s10237_s19 + $0x4] ss:$16 sps:$4 sm:$0xff]   ;;  %v8987_v50 = vld [vmem:[#allocation5 + $0x18c] ss:$16 sps:$4 sm:$0xff]  }
  0x9a   : > { %v8985_v49 = vld [vmem:[#allocation5 + $0x184] ss:$16 sps:$4 sm:$0xff]   ;;  %1624 = vmatprep.mubr.bf16.mxu0 %v9009_v48  ;;  %2010 = vmatprep.mubr.bf16.mxu1 %v9009_v48  ;;  %v8989_v51 = vld [vmem:[#allocation5 + $0x180] ss:$16 sps:$4 sm:$0xff]   ;;  %v8990_v52 = vld [vmem:[#allocation5 + $0x188] ss:$16 sps:$4 sm:$0xff]  }
  0x9b   : > { %1601 = vmatpush1.bf16.msra.mxu0 %v8941_v18  ;;  %1987 = vmatpush1.bf16.msra.mxu1 %v8942_v19  ;;  %v8991_v53 = vld [vmem:[#allocation5 + $0x1a4] ss:$16 sps:$4 sm:$0xff]   ;;  %v8993_v54 = vld [vmem:[#allocation5 + $0x1ac] ss:$16 sps:$4 sm:$0xff]   ;;  %v8995_v55 = vld [vmem:[#allocation5 + $0x1a0] ss:$16 sps:$4 sm:$0xff]  }
  0x9c   : > { %1602 = vmatprep.subr.bf16.mxu0 %v8943_v20  ;;  %1988 = vmatprep.subr.bf16.mxu1 %v8945_v21  ;;  %v8996_v56 = vld [vmem:[#allocation5 + $0x1a8] ss:$16 sps:$4 sm:$0xff]   ;;  %v8997_v57 = vld [vmem:[#allocation5 + $0x1c4] ss:$16 sps:$4 sm:$0xff]   ;;  %v8999_v58 = vld [vmem:[#allocation5 + $0x1cc] ss:$16 sps:$4 sm:$0xff]  }
  0x9d   : > { %v9001_v59 = vld [vmem:[#allocation5 + $0x1c0] ss:$16 sps:$4 sm:$0xff]   ;;  %v9002_v60 = vld [vmem:[#allocation5 + $0x1c8] ss:$16 sps:$4 sm:$0xff]   ;;  %v9003_v61 = vld [vmem:[#allocation5 + $0x1e4] ss:$16 sps:$4 sm:$0xff]  }
  0x9e   : > { %v9005_v62 = vld [vmem:[#allocation5 + $0x1ec] ss:$16 sps:$4 sm:$0xff]   ;;  %v9007_v63 = vld [vmem:[#allocation5 + $0x1e0] ss:$16 sps:$4 sm:$0xff]   ;;  %v9008_v0 = vld [vmem:[#allocation5 + $0x1e8] ss:$16 sps:$4 sm:$0xff]  }
  0x9f   : > { %1603 = vmatpush1.bf16.msra.mxu0 %v8947_v22  ;;  %1989 = vmatpush1.bf16.msra.mxu1 %v8948_v23  ;;  %v9014_v1 = vld [vmem:[#allocation5 + $0x204] ss:$16 sps:$4 sm:$0xff]   ;;  %v9017_v2 = vld [vmem:[#allocation5 + $0x20c] ss:$16 sps:$4 sm:$0xff]   ;;  %v9011_v3 = vld [vmem:[%s10237_s19] ss:$16 sps:$4 sm:$0xff]  }
  0xa0   : > { %1604 = vmatprep.subr.bf16.mxu0 %v8949_v24  ;;  %1990 = vmatprep.subr.bf16.mxu1 %v8951_v25  ;;  %v9012_v4 = vld [vmem:[#allocation5 + $0x200] ss:$16 sps:$4 sm:$0xff]   ;;  %v9015_v5 = vld [vmem:[#allocation5 + $0x208] ss:$16 sps:$4 sm:$0xff]   ;;  %v9018_v6 = vld [vmem:[%s10237_s19 + $0x24] ss:$16 sps:$4 sm:$0xff]  }
  0xa1   : > { %v9023_v7 = vld [vmem:[#allocation5 + $0x224] ss:$16 sps:$4 sm:$0xff]   ;;  %v9026_v8 = vld [vmem:[#allocation5 + $0x22c] ss:$16 sps:$4 sm:$0xff]   ;;  %v9021_v9 = vld [vmem:[#allocation5 + $0x220] ss:$16 sps:$4 sm:$0xff]  }
  0xa2   : > { %v9024_v10 = vld [vmem:[#allocation5 + $0x228] ss:$16 sps:$4 sm:$0xff]   ;;  %v9032_v11 = vld [vmem:[#allocation5 + $0x244] ss:$16 sps:$4 sm:$0xff]   ;;  %v9035_v12 = vld [vmem:[#allocation5 + $0x24c] ss:$16 sps:$4 sm:$0xff]  }
  0xa3   : > { %1605 = vmatpush1.bf16.msra.mxu0 %v8953_v26  ;;  %1991 = vmatpush1.bf16.msra.mxu1 %v8954_v27  ;;  %v9020_v13 = vld [vmem:[%s10237_s19 + $0x20] ss:$16 sps:$4 sm:$0xff]   ;;  %v9027_v14 = vld [vmem:[%s10237_s19 + $0x44] ss:$16 sps:$4 sm:$0xff]   ;;  %v9033_v16 = vld [vmem:[#allocation5 + $0x248] ss:$16 sps:$4 sm:$0xff]  }
  0xa4   : > { %1606 = vmatprep.subr.bf16.mxu0 %v8955_v28  ;;  %1992 = vmatprep.subr.bf16.mxu1 %v8957_v29  ;;  %v9030_v15 = vld [vmem:[#allocation5 + $0x240] ss:$16 sps:$4 sm:$0xff]   ;;  %v9041_v17 = vld [vmem:[#allocation5 + $0x264] ss:$16 sps:$4 sm:$0xff]   ;;  %v9044_v18 = vld [vmem:[#allocation5 + $0x26c] ss:$16 sps:$4 sm:$0xff]  }
  0xa5   : > { %v9039_v19 = vld [vmem:[#allocation5 + $0x260] ss:$16 sps:$4 sm:$0xff]   ;;  %v9042_v20 = vld [vmem:[#allocation5 + $0x268] ss:$16 sps:$4 sm:$0xff]   ;;  %v9050_v21 = vld [vmem:[#allocation5 + $0x284] ss:$16 sps:$4 sm:$0xff]  }
  0xa6   : > { %v9053_v22 = vld [vmem:[#allocation5 + $0x28c] ss:$16 sps:$4 sm:$0xff]   ;;  %v9029_v23 = vld [vmem:[%s10237_s19 + $0x40] ss:$16 sps:$4 sm:$0xff]   ;;  %v9036_v24 = vld [vmem:[%s10237_s19 + $0x64] ss:$16 sps:$4 sm:$0xff]  }
  0xa7   : > { %1607 = vmatpush1.bf16.msra.mxu0 %v8959_v30  ;;  %1993 = vmatpush1.bf16.msra.mxu1 %v8960_v31  ;;  %v9048_v25 = vld [vmem:[#allocation5 + $0x280] ss:$16 sps:$4 sm:$0xff]   ;;  %v9051_v26 = vld [vmem:[#allocation5 + $0x288] ss:$16 sps:$4 sm:$0xff]   ;;  %v9059_v27 = vld [vmem:[#allocation5 + $0x2a4] ss:$16 sps:$4 sm:$0xff]  }
  0xa8   : > { %1608 = vmatprep.subr.bf16.mxu0 %v8961_v32  ;;  %1994 = vmatprep.subr.bf16.mxu1 %v8963_v33  ;;  %v9062_v28 = vld [vmem:[#allocation5 + $0x2ac] ss:$16 sps:$4 sm:$0xff]   ;;  %v9057_v29 = vld [vmem:[#allocation5 + $0x2a0] ss:$16 sps:$4 sm:$0xff]   ;;  %v9060_v30 = vld [vmem:[#allocation5 + $0x2a8] ss:$16 sps:$4 sm:$0xff]  }
  0xa9   : > { %v9068_v31 = vld [vmem:[#allocation5 + $0x2c4] ss:$16 sps:$4 sm:$0xff]   ;;  %v9071_v32 = vld [vmem:[#allocation5 + $0x2cc] ss:$16 sps:$4 sm:$0xff]   ;;  %v9038_v33 = vld [vmem:[%s10237_s19 + $0x60] ss:$16 sps:$4 sm:$0xff]  }
  0xaa   : > { %v9098_v48 = vld [vmem:[#allocation5 + $0x32c] ss:$16 sps:$4 sm:$0xff]   ;;  %s10372_s26 = scalar_lea.vmem [#allocation10], %s10233_s21  ;;  %s10645_s22 = scalar_lea.vmem [#allocation11], %s10233_s21 }
  0xab   : > { %1609 = vmatpush1.bf16.msra.mxu0 %v8965_v34  ;;  %1995 = vmatpush1.bf16.msra.mxu1 %v8966_v35  ;;  %v9045_v34 = vld [vmem:[%s10237_s19 + $0x84] ss:$16 sps:$4 sm:$0xff]   ;;  %v9066_v35 = vld [vmem:[#allocation5 + $0x2c0] ss:$16 sps:$4 sm:$0xff]   ;;  %s6965_s29 = sand.u32 1, %s10045_s13   ;;  %s10888_s24 = sshll.u32 %s10045_s13, 13 }
  0xac   : > { %1610 = vmatprep.subr.bf16.mxu0 %v8967_v36  ;;  %1996 = vmatprep.subr.bf16.mxu1 %v8969_v37  ;;  %v9069_v36 = vld [vmem:[#allocation5 + $0x2c8] ss:$16 sps:$4 sm:$0xff]   ;;  %v9077_v37 = vld [vmem:[#allocation5 + $0x2e4] ss:$16 sps:$4 sm:$0xff]   ;;  %s7002_s15 = sshll.u32 %s10645_s22, 4  ;;  %s10909_s13 = scalar_lea.sflag [#allocation12], %s6965_s29  ;;  %s10901_s15 = int_to_ptr.vmem [resolvable:$true] %s7002_s15 }
  0xad   : > { %s9827_s17 = scalar_lea.vmem %s10901_s15, 8192  ;;  %s9969_s27 = smov [#allocation11]  }
  0xae   : > { %p9828_p0 = scmp.ne.s32.totalorder %s10901_s15, %s9827_s17  ;;  %s9831_s25 = sshll.u32 %s9969_s27, 4  ;;  %s9832_s25 = int_to_ptr.vmem [resolvable:$false] %s9831_s25 }
  0xaf   : > { %1611 = vmatpush1.bf16.msra.mxu0 %v8971_v38  ;;  %1997 = vmatpush1.bf16.msra.mxu1 %v8972_v39  ;;  %v9080_v38 = vld [vmem:[#allocation5 + $0x2ec] ss:$16 sps:$4 sm:$0xff]   ;;  %v9075_v39 = vld [vmem:[#allocation5 + $0x2e0] ss:$16 sps:$4 sm:$0xff]   ;;  %p9834_p11 = scmp.lt.s32.totalorder %s10901_s15, %s9832_s25 }
  0xb0   : > { %1612 = vmatprep.subr.bf16.mxu0 %v8973_v40  ;;  %1998 = vmatprep.subr.bf16.mxu1 %v8975_v41  ;;  %v9078_v40 = vld [vmem:[#allocation5 + $0x2e8] ss:$16 sps:$4 sm:$0xff]   ;;  %v9086_v41 = vld [vmem:[#allocation5 + $0x304] ss:$16 sps:$4 sm:$0xff]   ;;  %p9829_p3 = pnand %p9828_p0, %p10179_p5 }
  0xb2   : > { %p9830_p7 = pneg %p9829_p3 }
  0xb3   : > { %1613 = vmatpush1.bf16.msra.mxu0 %v8977_v42  ;;  %1999 = vmatpush1.bf16.msra.mxu1 %v8978_v43  ;;  %v9089_v42 = vld [vmem:[#allocation5 + $0x30c] ss:$16 sps:$4 sm:$0xff]   ;;  %v9047_v43 = vld [vmem:[%s10237_s19 + $0x80] ss:$16 sps:$4 sm:$0xff]  }
  0xb4   : > { %1614 = vmatprep.subr.bf16.mxu0 %v8979_v44  ;;  %2000 = vmatprep.subr.bf16.mxu1 %v8981_v45  ;;  %v9054_v44 = vld [vmem:[%s10237_s19 + $0xa4] ss:$16 sps:$4 sm:$0xff]   ;;  %v9084_v45 = vld [vmem:[#allocation5 + $0x300] ss:$16 sps:$4 sm:$0xff]  }
  0xb7   : > { %1615 = vmatpush1.bf16.msra.mxu0 %v8983_v46  ;;  %2001 = vmatpush1.bf16.msra.mxu1 %v8984_v47  ;;  %v9087_v46 = vld [vmem:[#allocation5 + $0x308] ss:$16 sps:$4 sm:$0xff]   ;;  %v9095_v47 = vld [vmem:[#allocation5 + $0x324] ss:$16 sps:$4 sm:$0xff]  }
  0xb8   : > { %1616 = vmatprep.subr.bf16.mxu0 %v8985_v49  ;;  %2002 = vmatprep.subr.bf16.mxu1 %v8987_v50  ;;  %v9093_v49 = vld [vmem:[#allocation5 + $0x320] ss:$16 sps:$4 sm:$0xff]   ;;  %v9096_v50 = vld [vmem:[#allocation5 + $0x328] ss:$16 sps:$4 sm:$0xff]  }
  0xbb   : > { %1617 = vmatpush1.bf16.msra.mxu0 %v8989_v51  ;;  %2003 = vmatpush1.bf16.msra.mxu1 %v8990_v52  ;;  %v9104_v51 = vld [vmem:[#allocation5 + $0x344] ss:$16 sps:$4 sm:$0xff]   ;;  %v9107_v52 = vld [vmem:[#allocation5 + $0x34c] ss:$16 sps:$4 sm:$0xff]  }
  0xbc   : > { %1618 = vmatprep.subr.bf16.mxu0 %v8991_v53  ;;  %2004 = vmatprep.subr.bf16.mxu1 %v8993_v54  ;;  %v9056_v53 = vld [vmem:[%s10237_s19 + $0xa0] ss:$16 sps:$4 sm:$0xff]   ;;  %v9063_v54 = vld [vmem:[%s10237_s19 + $0xc4] ss:$16 sps:$4 sm:$0xff]  }
  0xbf   : > { %1619 = vmatpush1.bf16.msra.mxu0 %v8995_v55  ;;  %2005 = vmatpush1.bf16.msra.mxu1 %v8996_v56  ;;  %v9102_v55 = vld [vmem:[#allocation5 + $0x340] ss:$16 sps:$4 sm:$0xff]   ;;  %v9105_v56 = vld [vmem:[#allocation5 + $0x348] ss:$16 sps:$4 sm:$0xff]  }
  0xc0   : > { %1620 = vmatprep.subr.bf16.mxu0 %v8997_v57  ;;  %2006 = vmatprep.subr.bf16.mxu1 %v8999_v58  ;;  %v9113_v57 = vld [vmem:[#allocation5 + $0x364] ss:$16 sps:$4 sm:$0xff]   ;;  %v9116_v58 = vld [vmem:[#allocation5 + $0x36c] ss:$16 sps:$4 sm:$0xff]  }
  0xc3   : > { %1621 = vmatpush1.bf16.msra.mxu0 %v9001_v59  ;;  %2007 = vmatpush1.bf16.msra.mxu1 %v9002_v60  ;;  %v9111_v59 = vld [vmem:[#allocation5 + $0x360] ss:$16 sps:$4 sm:$0xff]   ;;  %v9114_v60 = vld [vmem:[#allocation5 + $0x368] ss:$16 sps:$4 sm:$0xff]  }
  0xc4   : > { %1622 = vmatprep.subr.bf16.mxu0 %v9003_v61  ;;  %2008 = vmatprep.subr.bf16.mxu1 %v9005_v62  ;;  %v9122_v61 = vld [vmem:[#allocation5 + $0x384] ss:$16 sps:$4 sm:$0xff]   ;;  %v9125_v62 = vld [vmem:[#allocation5 + $0x38c] ss:$16 sps:$4 sm:$0xff]  }
  0xc7   : > { %1623 = vmatpush1.bf16.msra.mxu0 %v9007_v63  ;;  %2009 = vmatpush1.bf16.msra.mxu1 %v9008_v0  ;;  %v9065_v63 = vld [vmem:[%s10237_s19 + $0xc0] ss:$16 sps:$4 sm:$0xff]   ;;  %v9072_v0 = vld [vmem:[%s10237_s19 + $0xe4] ss:$16 sps:$4 sm:$0xff]  }
  0xc8   : > { %1785 = vmatprep.subr.bf16.mxu0 %v9014_v1  ;;  %2171 = vmatprep.subr.bf16.mxu1 %v9017_v2  ;;  %v9120_v1 = vld [vmem:[#allocation5 + $0x380] ss:$16 sps:$4 sm:$0xff]   ;;  %v9123_v2 = vld [vmem:[#allocation5 + $0x388] ss:$16 sps:$4 sm:$0xff]  }
  0xca   : > { %1625 = vmatmul.mubr.bf16.vlgmr.msra.gmra.mrb[0].mxu0 %v9011_v3  ;;  %2011 = vmatmul.mubr.bf16.vlgmr.msra.gmra.mrb[0].mxu1 %v9011_v3  ;;  %v9131_v3 = vld [vmem:[#allocation5 + $0x3a4] ss:$16 sps:$4 sm:$0xff]  }
  0xcb   : > { %1786 = vmatpush1.bf16.msra.mxu0 %v9012_v4  ;;  %2172 = vmatpush1.bf16.msra.mxu1 %v9015_v5  ;;  %v9134_v4 = vld [vmem:[#allocation5 + $0x3ac] ss:$16 sps:$4 sm:$0xff]   ;;  %v9129_v5 = vld [vmem:[#allocation5 + $0x3a0] ss:$16 sps:$4 sm:$0xff]  }
  0xcc   : > { %1634 = vmatprep.mubr.bf16.mxu0 %v9018_v6  ;;  %2020 = vmatprep.mubr.bf16.mxu1 %v9018_v6  ;;  %v9132_v6 = vld [vmem:[#allocation5 + $0x3a8] ss:$16 sps:$4 sm:$0xff]  }
  0xcd   : > { %1787 = vmatprep.subr.bf16.mxu0 %v9023_v7  ;;  %2173 = vmatprep.subr.bf16.mxu1 %v9026_v8  ;;  %v9140_v7 = vld [vmem:[#allocation5 + $0x3c4] ss:$16 sps:$4 sm:$0xff]   ;;  %v9143_v8 = vld [vmem:[#allocation5 + $0x3cc] ss:$16 sps:$4 sm:$0xff]  }
  0xcf   : > { %1788 = vmatpush1.bf16.msra.mxu0 %v9021_v9  ;;  %2174 = vmatpush1.bf16.msra.mxu1 %v9024_v10  ;;  %v9074_v9 = vld [vmem:[%s10237_s19 + $0xe0] ss:$16 sps:$4 sm:$0xff]   ;;  %v9081_v10 = vld [vmem:[%s10237_s19 + $0x104] ss:$16 sps:$4 sm:$0xff]  }
  0xd0   : > { %1789 = vmatprep.subr.bf16.mxu0 %v9032_v11  ;;  %2175 = vmatprep.subr.bf16.mxu1 %v9035_v12  ;;  %v9138_v11 = vld [vmem:[#allocation5 + $0x3c0] ss:$16 sps:$4 sm:$0xff]   ;;  %v9141_v12 = vld [vmem:[#allocation5 + $0x3c8] ss:$16 sps:$4 sm:$0xff]  }
  0xd2   : > { %1635 = vmatmul.mubr.bf16.gmra.mrb[4].mxu0 %v9020_v13  ;;  %2021 = vmatmul.mubr.bf16.gmra.mrb[4].mxu1 %v9020_v13  ;;  %v9149_v13 = vld [vmem:[#allocation5 + $0x3e4] ss:$16 sps:$4 sm:$0xff]  }
  0xd3   : > { %1644 = vmatprep.mubr.bf16.mxu0 %v9027_v14  ;;  %2030 = vmatprep.mubr.bf16.mxu1 %v9027_v14  ;;  %v9152_v14 = vld [vmem:[#allocation5 + $0x3ec] ss:$16 sps:$4 sm:$0xff]  }
  0xd4   : > { %1790 = vmatpush1.bf16.msra.mxu0 %v9030_v15  ;;  %2176 = vmatpush1.bf16.msra.mxu1 %v9033_v16  ;;  %v9147_v15 = vld [vmem:[#allocation5 + $0x3e0] ss:$16 sps:$4 sm:$0xff]   ;;  %v9150_v16 = vld [vmem:[#allocation5 + $0x3e8] ss:$16 sps:$4 sm:$0xff]  }
  0xd5   : > { %1791 = vmatprep.subr.bf16.mxu0 %v9041_v17  ;;  %2177 = vmatprep.subr.bf16.mxu1 %v9044_v18  ;;  %v9158_v17 = vld [vmem:[#allocation7 + $0x4] ss:$16 sps:$4 sm:$0xff]   ;;  %v9161_v18 = vld [vmem:[#allocation7 + $0xc] ss:$16 sps:$4 sm:$0xff]  }
  0xd8   : > { %1792 = vmatpush1.bf16.msra.mxu0 %v9039_v19  ;;  %2178 = vmatpush1.bf16.msra.mxu1 %v9042_v20  ;;  %v9083_v19 = vld [vmem:[%s10237_s19 + $0x100] ss:$16 sps:$4 sm:$0xff]   ;;  %v9090_v20 = vld [vmem:[%s10237_s19 + $0x124] ss:$16 sps:$4 sm:$0xff]  }
  0xd9   : > { %1793 = vmatprep.subr.bf16.mxu0 %v9050_v21  ;;  %2179 = vmatprep.subr.bf16.mxu1 %v9053_v22  ;;  %v9092_v21 = vld [vmem:[%s10237_s19 + $0x120] ss:$16 sps:$4 sm:$0xff]   ;;  %v9099_v22 = vld [vmem:[%s10237_s19 + $0x144] ss:$16 sps:$4 sm:$0xff]  }
  0xda   : > { %1645 = vmatmul.mubr.bf16.gmra.mrb[8].mxu0 %v9029_v23  ;;  %2031 = vmatmul.mubr.bf16.gmra.mrb[8].mxu1 %v9029_v23  ;;  %v9101_v23 = vld [vmem:[%s10237_s19 + $0x140] ss:$16 sps:$4 sm:$0xff]  }
  0xdb   : > { %1654 = vmatprep.mubr.bf16.mxu0 %v9036_v24  ;;  %2040 = vmatprep.mubr.bf16.mxu1 %v9036_v24  ;;  %v9108_v24 = vld [vmem:[%s10237_s19 + $0x164] ss:$16 sps:$4 sm:$0xff]  }
  0xdc   : > { %1794 = vmatpush1.bf16.msra.mxu0 %v9048_v25  ;;  %2180 = vmatpush1.bf16.msra.mxu1 %v9051_v26  ;;  %v9110_v25 = vld [vmem:[%s10237_s19 + $0x160] ss:$16 sps:$4 sm:$0xff]   ;;  %v9117_v26 = vld [vmem:[%s10237_s19 + $0x184] ss:$16 sps:$4 sm:$0xff]  }
  0xdd   : > { %1795 = vmatprep.subr.bf16.mxu0 %v9059_v27  ;;  %2181 = vmatprep.subr.bf16.mxu1 %v9062_v28  ;;  %v9119_v27 = vld [vmem:[%s10237_s19 + $0x180] ss:$16 sps:$4 sm:$0xff]   ;;  %v9126_v28 = vld [vmem:[%s10237_s19 + $0x1a4] ss:$16 sps:$4 sm:$0xff]  }
  0xe0   : > { %1796 = vmatpush1.bf16.msra.mxu0 %v9057_v29  ;;  %2182 = vmatpush1.bf16.msra.mxu1 %v9060_v30  ;;  %v9128_v29 = vld [vmem:[%s10237_s19 + $0x1a0] ss:$16 sps:$4 sm:$0xff]   ;;  %v9135_v30 = vld [vmem:[%s10237_s19 + $0x1c4] ss:$16 sps:$4 sm:$0xff]  }
  0xe1   : > { %1797 = vmatprep.subr.bf16.mxu0 %v9068_v31  ;;  %2183 = vmatprep.subr.bf16.mxu1 %v9071_v32  ;;  %v9137_v31 = vld [vmem:[%s10237_s19 + $0x1c0] ss:$16 sps:$4 sm:$0xff]   ;;  %v9144_v32 = vld [vmem:[%s10237_s19 + $0x1e4] ss:$16 sps:$4 sm:$0xff]  }
  0xe2   : > { %1655 = vmatmul.mubr.bf16.gmra.mrb[12].mxu0 %v9038_v33  ;;  %2041 = vmatmul.mubr.bf16.gmra.mrb[12].mxu1 %v9038_v33  ;;  %v9146_v33 = vld [vmem:[%s10237_s19 + $0x1e0] ss:$16 sps:$4 sm:$0xff]  }
  0xe3   : > { %1664 = vmatprep.mubr.bf16.mxu0 %v9045_v34  ;;  %2050 = vmatprep.mubr.bf16.mxu1 %v9045_v34  ;;  %v9153_v34 = vld [vmem:[%s10237_s19 + $0xc] ss:$16 sps:$4 sm:$0xff]  }
  0xe4   : > { %1798 = vmatpush1.bf16.msra.mxu0 %v9066_v35  ;;  %2184 = vmatpush1.bf16.msra.mxu1 %v9069_v36  ;;  %v9155_v35 = vld [vmem:[%s10237_s19 + $0x8] ss:$16 sps:$4 sm:$0xff]   ;;  %v9156_v36 = vld [vmem:[#allocation7] ss:$16 sps:$4 sm:$0xff]  }
  0xe5   : > { %1799 = vmatprep.subr.bf16.mxu0 %v9077_v37  ;;  %2185 = vmatprep.subr.bf16.mxu1 %v9080_v38  ;;  %v9159_v37 = vld [vmem:[#allocation7 + $0x8] ss:$16 sps:$4 sm:$0xff]   ;;  %v9162_v38 = vld [vmem:[%s10237_s19 + $0x2c] ss:$16 sps:$4 sm:$0xff]  }
  0xe8   : > { %1800 = vmatpush1.bf16.msra.mxu0 %v9075_v39  ;;  %2186 = vmatpush1.bf16.msra.mxu1 %v9078_v40  ;;  %v9167_v39 = vld [vmem:[#allocation7 + $0x24] ss:$16 sps:$4 sm:$0xff]   ;;  %v9170_v40 = vld [vmem:[#allocation7 + $0x2c] ss:$16 sps:$4 sm:$0xff]  }
  0xe9   : > { %1801 = vmatprep.subr.bf16.mxu0 %v9086_v41  ;;  %2187 = vmatprep.subr.bf16.mxu1 %v9089_v42  ;;  %v9165_v41 = vld [vmem:[#allocation7 + $0x20] ss:$16 sps:$4 sm:$0xff]   ;;  %v9168_v42 = vld [vmem:[#allocation7 + $0x28] ss:$16 sps:$4 sm:$0xff]  }
  0xea   : > { %1665 = vmatmul.mubr.bf16.gmra.mrb[16].mxu0 %v9047_v43  ;;  %2051 = vmatmul.mubr.bf16.gmra.mrb[16].mxu1 %v9047_v43  ;;  %v9176_v43 = vld [vmem:[#allocation7 + $0x44] ss:$16 sps:$4 sm:$0xff]  }
  0xeb   : > { %1674 = vmatprep.mubr.bf16.mxu0 %v9054_v44  ;;  %2060 = vmatprep.mubr.bf16.mxu1 %v9054_v44  ;;  %v9179_v44 = vld [vmem:[#allocation7 + $0x4c] ss:$16 sps:$4 sm:$0xff]  }
  0xec   : > { %1802 = vmatpush1.bf16.msra.mxu0 %v9084_v45  ;;  %2188 = vmatpush1.bf16.msra.mxu1 %v9087_v46  ;;  %v9164_v45 = vld [vmem:[%s10237_s19 + $0x28] ss:$16 sps:$4 sm:$0xff]   ;;  %v9171_v46 = vld [vmem:[%s10237_s19 + $0x4c] ss:$16 sps:$4 sm:$0xff]  }
  0xed   : > { %1803 = vmatprep.subr.bf16.mxu0 %v9095_v47  ;;  %2189 = vmatprep.subr.bf16.mxu1 %v9098_v48  ;;  %v9174_v47 = vld [vmem:[#allocation7 + $0x40] ss:$16 sps:$4 sm:$0xff]   ;;  %v9177_v48 = vld [vmem:[#allocation7 + $0x48] ss:$16 sps:$4 sm:$0xff]  }
  0xf0   : > { %1804 = vmatpush1.bf16.msra.mxu0 %v9093_v49  ;;  %2190 = vmatpush1.bf16.msra.mxu1 %v9096_v50  ;;  %v9185_v49 = vld [vmem:[#allocation7 + $0x64] ss:$16 sps:$4 sm:$0xff]   ;;  %v9188_v50 = vld [vmem:[#allocation7 + $0x6c] ss:$16 sps:$4 sm:$0xff]  }
  0xf1   : > { %1805 = vmatprep.subr.bf16.mxu0 %v9104_v51  ;;  %2191 = vmatprep.subr.bf16.mxu1 %v9107_v52  ;;  %v9183_v51 = vld [vmem:[#allocation7 + $0x60] ss:$16 sps:$4 sm:$0xff]   ;;  %v9186_v52 = vld [vmem:[#allocation7 + $0x68] ss:$16 sps:$4 sm:$0xff]  }
  0xf2   : > { %1675 = vmatmul.mubr.bf16.gmra.mrb[20].mxu0 %v9056_v53  ;;  %2061 = vmatmul.mubr.bf16.gmra.mrb[20].mxu1 %v9056_v53  ;;  %v9194_v53 = vld [vmem:[#allocation7 + $0x84] ss:$16 sps:$4 sm:$0xff]  }
  0xf3   : > { %1684 = vmatprep.mubr.bf16.mxu0 %v9063_v54  ;;  %2070 = vmatprep.mubr.bf16.mxu1 %v9063_v54  ;;  %v9197_v54 = vld [vmem:[#allocation7 + $0x8c] ss:$16 sps:$4 sm:$0xff]  }
  0xf4   : > { %1806 = vmatpush1.bf16.msra.mxu0 %v9102_v55  ;;  %2192 = vmatpush1.bf16.msra.mxu1 %v9105_v56  ;;  %v9173_v55 = vld [vmem:[%s10237_s19 + $0x48] ss:$16 sps:$4 sm:$0xff]   ;;  %v9180_v56 = vld [vmem:[%s10237_s19 + $0x6c] ss:$16 sps:$4 sm:$0xff]  }
  0xf5   : > { %1807 = vmatprep.subr.bf16.mxu0 %v9113_v57  ;;  %2193 = vmatprep.subr.bf16.mxu1 %v9116_v58  ;;  %v9192_v57 = vld [vmem:[#allocation7 + $0x80] ss:$16 sps:$4 sm:$0xff]   ;;  %v9195_v58 = vld [vmem:[#allocation7 + $0x88] ss:$16 sps:$4 sm:$0xff]  }
  0xf8   : > { %1808 = vmatpush1.bf16.msra.mxu0 %v9111_v59  ;;  %2194 = vmatpush1.bf16.msra.mxu1 %v9114_v60  ;;  %v9203_v59 = vld [vmem:[#allocation7 + $0xa4] ss:$16 sps:$4 sm:$0xff]   ;;  %v9206_v60 = vld [vmem:[#allocation7 + $0xac] ss:$16 sps:$4 sm:$0xff]  }
  0xf9   : > { %1809 = vmatprep.subr.bf16.mxu0 %v9122_v61  ;;  %2195 = vmatprep.subr.bf16.mxu1 %v9125_v62  ;;  %v9201_v61 = vld [vmem:[#allocation7 + $0xa0] ss:$16 sps:$4 sm:$0xff]   ;;  %v9204_v62 = vld [vmem:[#allocation7 + $0xa8] ss:$16 sps:$4 sm:$0xff]  }
  0xfa   : > { %1685 = vmatmul.mubr.bf16.gmra.mrb[24].mxu0 %v9065_v63  ;;  %2071 = vmatmul.mubr.bf16.gmra.mrb[24].mxu1 %v9065_v63  ;;  %v9212_v63 = vld [vmem:[#allocation7 + $0xc4] ss:$16 sps:$4 sm:$0xff]  }
  0xfb   : > { %1694 = vmatprep.mubr.bf16.mxu0 %v9072_v0  ;;  %2080 = vmatprep.mubr.bf16.mxu1 %v9072_v0  ;;  %v9215_v0 = vld [vmem:[#allocation7 + $0xcc] ss:$16 sps:$4 sm:$0xff]  }
  0xfc   : > { %1810 = vmatpush1.bf16.msra.mxu0 %v9120_v1  ;;  %2196 = vmatpush1.bf16.msra.mxu1 %v9123_v2  ;;  %v9182_v1 = vld [vmem:[%s10237_s19 + $0x68] ss:$16 sps:$4 sm:$0xff]   ;;  %v9189_v2 = vld [vmem:[%s10237_s19 + $0x8c] ss:$16 sps:$4 sm:$0xff]  }
  0xfd   : > { %1811 = vmatprep.subr.bf16.mxu0 %v9131_v3  ;;  %2197 = vmatprep.subr.bf16.mxu1 %v9134_v4  ;;  %v9210_v3 = vld [vmem:[#allocation7 + $0xc0] ss:$16 sps:$4 sm:$0xff]   ;;  %v9213_v4 = vld [vmem:[#allocation7 + $0xc8] ss:$16 sps:$4 sm:$0xff]  }
 0x100   : > { %1812 = vmatpush1.bf16.msra.mxu0 %v9129_v5  ;;  %2198 = vmatpush1.bf16.msra.mxu1 %v9132_v6  ;;  %v9221_v5 = vld [vmem:[#allocation7 + $0xe4] ss:$16 sps:$4 sm:$0xff]   ;;  %v9224_v6 = vld [vmem:[#allocation7 + $0xec] ss:$16 sps:$4 sm:$0xff]  }
 0x101   : > { %1813 = vmatprep.subr.bf16.mxu0 %v9140_v7  ;;  %2199 = vmatprep.subr.bf16.mxu1 %v9143_v8  ;;  %v9219_v7 = vld [vmem:[#allocation7 + $0xe0] ss:$16 sps:$4 sm:$0xff]   ;;  %v9222_v8 = vld [vmem:[#allocation7 + $0xe8] ss:$16 sps:$4 sm:$0xff]  }
 0x102   : > { %1695 = vmatmul.mubr.bf16.gmra.mrb[28].mxu0 %v9074_v9  ;;  %2081 = vmatmul.mubr.bf16.gmra.mrb[28].mxu1 %v9074_v9  ;;  %v9230_v9 = vld [vmem:[#allocation7 + $0x104] ss:$16 sps:$4 sm:$0xff]  }
 0x103   : > { %1704 = vmatprep.mubr.bf16.mxu0 %v9081_v10  ;;  %2090 = vmatprep.mubr.bf16.mxu1 %v9081_v10  ;;  %v9233_v10 = vld [vmem:[#allocation7 + $0x10c] ss:$16 sps:$4 sm:$0xff]  }
 0x104   : > { %1814 = vmatpush1.bf16.msra.mxu0 %v9138_v11  ;;  %2200 = vmatpush1.bf16.msra.mxu1 %v9141_v12  ;;  %v9191_v11 = vld [vmem:[%s10237_s19 + $0x88] ss:$16 sps:$4 sm:$0xff]   ;;  %v9198_v12 = vld [vmem:[%s10237_s19 + $0xac] ss:$16 sps:$4 sm:$0xff]  }
 0x105   : > { %1815 = vmatprep.subr.bf16.mxu0 %v9149_v13  ;;  %2201 = vmatprep.subr.bf16.mxu1 %v9152_v14  ;;  %v9228_v13 = vld [vmem:[#allocation7 + $0x100] ss:$16 sps:$4 sm:$0xff]   ;;  %v9231_v14 = vld [vmem:[#allocation7 + $0x108] ss:$16 sps:$4 sm:$0xff]  }
 0x108   : > { %1816 = vmatpush1.bf16.msra.mxu0 %v9147_v15  ;;  %2202 = vmatpush1.bf16.msra.mxu1 %v9150_v16  ;;  %v9239_v15 = vld [vmem:[#allocation7 + $0x124] ss:$16 sps:$4 sm:$0xff]   ;;  %v9242_v16 = vld [vmem:[#allocation7 + $0x12c] ss:$16 sps:$4 sm:$0xff]  }
 0x109   : > { %3730 = vmatprep.subr.bf16.mxu0 %v9158_v17  ;;  %4116 = vmatprep.subr.bf16.mxu1 %v9161_v18  ;;  %v9237_v17 = vld [vmem:[#allocation7 + $0x120] ss:$16 sps:$4 sm:$0xff]   ;;  %v9240_v18 = vld [vmem:[#allocation7 + $0x128] ss:$16 sps:$4 sm:$0xff]  }
 0x10a   : > { %1705 = vmatmul.mubr.bf16.gmra.mrb[32].mxu0 %v9083_v19  ;;  %2091 = vmatmul.mubr.bf16.gmra.mrb[32].mxu1 %v9083_v19  ;;  %v9248_v19 = vld [vmem:[#allocation7 + $0x144] ss:$16 sps:$4 sm:$0xff]  }
 0x10b   : > { %1714 = vmatprep.mubr.bf16.mxu0 %v9090_v20  ;;  %2100 = vmatprep.mubr.bf16.mxu1 %v9090_v20  ;;  %v9251_v20 = vld [vmem:[#allocation7 + $0x14c] ss:$16 sps:$4 sm:$0xff]  }
 0x112   : > { %1715 = vmatmul.mubr.bf16.gmra.mrb[36].mxu0 %v9092_v21  ;;  %2101 = vmatmul.mubr.bf16.gmra.mrb[36].mxu1 %v9092_v21  ;;  %v9200_v21 = vld [vmem:[%s10237_s19 + $0xa8] ss:$16 sps:$4 sm:$0xff]  }
 0x113   : > { %1724 = vmatprep.mubr.bf16.mxu0 %v9099_v22  ;;  %2110 = vmatprep.mubr.bf16.mxu1 %v9099_v22  ;;  %v9207_v22 = vld [vmem:[%s10237_s19 + $0xcc] ss:$16 sps:$4 sm:$0xff]  }
 0x11a   : > { %1725 = vmatmul.mubr.bf16.gmra.mrb[40].mxu0 %v9101_v23  ;;  %2111 = vmatmul.mubr.bf16.gmra.mrb[40].mxu1 %v9101_v23  ;;  %v9246_v23 = vld [vmem:[#allocation7 + $0x140] ss:$16 sps:$4 sm:$0xff]  }
 0x11b   : > { %1734 = vmatprep.mubr.bf16.mxu0 %v9108_v24  ;;  %2120 = vmatprep.mubr.bf16.mxu1 %v9108_v24  ;;  %v9249_v24 = vld [vmem:[#allocation7 + $0x148] ss:$16 sps:$4 sm:$0xff]  }
 0x122   : > { %1735 = vmatmul.mubr.bf16.gmra.mrb[44].mxu0 %v9110_v25  ;;  %2121 = vmatmul.mubr.bf16.gmra.mrb[44].mxu1 %v9110_v25  ;;  %v9257_v25 = vld [vmem:[#allocation7 + $0x164] ss:$16 sps:$4 sm:$0xff]  }
 0x123   : > { %1744 = vmatprep.mubr.bf16.mxu0 %v9117_v26  ;;  %2130 = vmatprep.mubr.bf16.mxu1 %v9117_v26  ;;  %v9260_v26 = vld [vmem:[#allocation7 + $0x16c] ss:$16 sps:$4 sm:$0xff]  }
 0x12a   : > { %1745 = vmatmul.mubr.bf16.gmra.mrb[48].mxu0 %v9119_v27  ;;  %2131 = vmatmul.mubr.bf16.gmra.mrb[48].mxu1 %v9119_v27  ;;  %v9255_v27 = vld [vmem:[#allocation7 + $0x160] ss:$16 sps:$4 sm:$0xff]  }
 0x12b   : > { %1754 = vmatprep.mubr.bf16.mxu0 %v9126_v28  ;;  %2140 = vmatprep.mubr.bf16.mxu1 %v9126_v28  ;;  %v9258_v28 = vld [vmem:[#allocation7 + $0x168] ss:$16 sps:$4 sm:$0xff]  }
 0x132   : > { %1755 = vmatmul.mubr.bf16.gmra.mrb[52].mxu0 %v9128_v29  ;;  %2141 = vmatmul.mubr.bf16.gmra.mrb[52].mxu1 %v9128_v29  ;;  %v9266_v29 = vld [vmem:[#allocation7 + $0x184] ss:$16 sps:$4 sm:$0xff]  }
 0x133   : > { %1764 = vmatprep.mubr.bf16.mxu0 %v9135_v30  ;;  %2150 = vmatprep.mubr.bf16.mxu1 %v9135_v30  ;;  %v9269_v30 = vld [vmem:[#allocation7 + $0x18c] ss:$16 sps:$4 sm:$0xff]  }
 0x13a   : > { %1765 = vmatmul.mubr.bf16.gmra.mrb[56].mxu0 %v9137_v31  ;;  %2151 = vmatmul.mubr.bf16.gmra.mrb[56].mxu1 %v9137_v31  ;;  %v9209_v31 = vld [vmem:[%s10237_s19 + $0xc8] ss:$16 sps:$4 sm:$0xff]  }
 0x13b   : > { %1774 = vmatprep.mubr.bf16.mxu0 %v9144_v32  ;;  %2160 = vmatprep.mubr.bf16.mxu1 %v9144_v32  ;;  %v9216_v32 = vld [vmem:[%s10237_s19 + $0xec] ss:$16 sps:$4 sm:$0xff]  }
 0x142   : > { %1775 = vmatmul.mubr.bf16.gmra.mrb[60].mxu0 %v9146_v33  ;;  %2161 = vmatmul.mubr.bf16.gmra.mrb[60].mxu1 %v9146_v33  ;;  %v9264_v33 = vld [vmem:[#allocation7 + $0x180] ss:$16 sps:$4 sm:$0xff]  }
 0x143   : > { %1817 = vmatprep.mubr.bf16.mxu0 %v9153_v34  ;;  %2203 = vmatprep.mubr.bf16.mxu1 %v9153_v34  ;;  %v9267_v34 = vld [vmem:[#allocation7 + $0x188] ss:$16 sps:$4 sm:$0xff]  }
 0x14a   : > { %1818 = vmatmul.mubr.bf16.vlgmr.msra.gmra.mrb[0].mxu0 %v9155_v35  ;;  %2204 = vmatmul.mubr.bf16.vlgmr.msra.gmra.mrb[0].mxu1 %v9155_v35  ;;  %v9275_v35 = vld [vmem:[#allocation7 + $0x1a4] ss:$16 sps:$4 sm:$0xff]  }
 0x14b   : > { %3731 = vmatpush1.bf16.msra.mxu0 %v9156_v36  ;;  %4117 = vmatpush1.bf16.msra.mxu1 %v9159_v37  ;;  %v9278_v36 = vld [vmem:[#allocation7 + $0x1ac] ss:$16 sps:$4 sm:$0xff]   ;;  %v9273_v37 = vld [vmem:[#allocation7 + $0x1a0] ss:$16 sps:$4 sm:$0xff]  }
 0x14c   : > { %1827 = vmatprep.mubr.bf16.mxu0 %v9162_v38  ;;  %2213 = vmatprep.mubr.bf16.mxu1 %v9162_v38  ;;  %v9276_v38 = vld [vmem:[#allocation7 + $0x1a8] ss:$16 sps:$4 sm:$0xff]  }
 0x14d   : > { %3732 = vmatprep.subr.bf16.mxu0 %v9167_v39  ;;  %4118 = vmatprep.subr.bf16.mxu1 %v9170_v40  ;;  %v9284_v39 = vld [vmem:[#allocation7 + $0x1c4] ss:$16 sps:$4 sm:$0xff]   ;;  %v9287_v40 = vld [vmem:[#allocation7 + $0x1cc] ss:$16 sps:$4 sm:$0xff]  }
 0x14f   : > { %3733 = vmatpush1.bf16.msra.mxu0 %v9165_v41  ;;  %4119 = vmatpush1.bf16.msra.mxu1 %v9168_v42  ;;  %v9218_v41 = vld [vmem:[%s10237_s19 + $0xe8] ss:$16 sps:$4 sm:$0xff]   ;;  %v9225_v42 = vld [vmem:[%s10237_s19 + $0x10c] ss:$16 sps:$4 sm:$0xff]  }
 0x150   : > { %3734 = vmatprep.subr.bf16.mxu0 %v9176_v43  ;;  %4120 = vmatprep.subr.bf16.mxu1 %v9179_v44  ;;  %v9282_v43 = vld [vmem:[#allocation7 + $0x1c0] ss:$16 sps:$4 sm:$0xff]   ;;  %v9285_v44 = vld [vmem:[#allocation7 + $0x1c8] ss:$16 sps:$4 sm:$0xff]  }
 0x152   : > { %1828 = vmatmul.mubr.bf16.gmra.mrb[4].mxu0 %v9164_v45  ;;  %2214 = vmatmul.mubr.bf16.gmra.mrb[4].mxu1 %v9164_v45  ;;  %v9293_v45 = vld [vmem:[#allocation7 + $0x1e4] ss:$16 sps:$4 sm:$0xff]  }
 0x153   : > { %1837 = vmatprep.mubr.bf16.mxu0 %v9171_v46  ;;  %2223 = vmatprep.mubr.bf16.mxu1 %v9171_v46  ;;  %v9296_v46 = vld [vmem:[#allocation7 + $0x1ec] ss:$16 sps:$4 sm:$0xff]  }
 0x154   : > { %3735 = vmatpush1.bf16.msra.mxu0 %v9174_v47  ;;  %4121 = vmatpush1.bf16.msra.mxu1 %v9177_v48  ;;  %v9291_v47 = vld [vmem:[#allocation7 + $0x1e0] ss:$16 sps:$4 sm:$0xff]   ;;  %v9294_v48 = vld [vmem:[#allocation7 + $0x1e8] ss:$16 sps:$4 sm:$0xff]  }
 0x155   : > { %3736 = vmatprep.subr.bf16.mxu0 %v9185_v49  ;;  %4122 = vmatprep.subr.bf16.mxu1 %v9188_v50  ;;  %v9299_v49 = vld [vmem:[#allocation7 + $0x204] ss:$16 sps:$4 sm:$0xff]   ;;  %v9302_v50 = vld [vmem:[#allocation7 + $0x20c] ss:$16 sps:$4 sm:$0xff]  }
 0x158   : > { %3737 = vmatpush1.bf16.msra.mxu0 %v9183_v51  ;;  %4123 = vmatpush1.bf16.msra.mxu1 %v9186_v52  ;;  %v9227_v51 = vld [vmem:[%s10237_s19 + $0x108] ss:$16 sps:$4 sm:$0xff]   ;;  %v9234_v52 = vld [vmem:[%s10237_s19 + $0x12c] ss:$16 sps:$4 sm:$0xff]  }
 0x159   : > { %3738 = vmatprep.subr.bf16.mxu0 %v9194_v53  ;;  %4124 = vmatprep.subr.bf16.mxu1 %v9197_v54  ;;  %v9236_v53 = vld [vmem:[%s10237_s19 + $0x128] ss:$16 sps:$4 sm:$0xff]   ;;  %v9243_v54 = vld [vmem:[%s10237_s19 + $0x14c] ss:$16 sps:$4 sm:$0xff]  }
 0x15a   : > { %1838 = vmatmul.mubr.bf16.gmra.mrb[8].mxu0 %v9173_v55  ;;  %2224 = vmatmul.mubr.bf16.gmra.mrb[8].mxu1 %v9173_v55  ;;  %v9245_v55 = vld [vmem:[%s10237_s19 + $0x148] ss:$16 sps:$4 sm:$0xff]  }
 0x15b   : > { %1847 = vmatprep.mubr.bf16.mxu0 %v9180_v56  ;;  %2233 = vmatprep.mubr.bf16.mxu1 %v9180_v56  ;;  %v9252_v56 = vld [vmem:[%s10237_s19 + $0x16c] ss:$16 sps:$4 sm:$0xff]  }
 0x15c   : > { %3739 = vmatpush1.bf16.msra.mxu0 %v9192_v57  ;;  %4125 = vmatpush1.bf16.msra.mxu1 %v9195_v58  ;;  %v9254_v57 = vld [vmem:[%s10237_s19 + $0x168] ss:$16 sps:$4 sm:$0xff]   ;;  %v9261_v58 = vld [vmem:[%s10237_s19 + $0x18c] ss:$16 sps:$4 sm:$0xff]  }
 0x15d   : > { %3740 = vmatprep.subr.bf16.mxu0 %v9203_v59  ;;  %4126 = vmatprep.subr.bf16.mxu1 %v9206_v60  ;;  %v9263_v59 = vld [vmem:[%s10237_s19 + $0x188] ss:$16 sps:$4 sm:$0xff]   ;;  %v9270_v60 = vld [vmem:[%s10237_s19 + $0x1ac] ss:$16 sps:$4 sm:$0xff]  }
 0x160   : > { %3741 = vmatpush1.bf16.msra.mxu0 %v9201_v61  ;;  %4127 = vmatpush1.bf16.msra.mxu1 %v9204_v62  ;;  %v9272_v61 = vld [vmem:[%s10237_s19 + $0x1a8] ss:$16 sps:$4 sm:$0xff]   ;;  %v9279_v62 = vld [vmem:[%s10237_s19 + $0x1cc] ss:$16 sps:$4 sm:$0xff]  }
 0x161   : > { %3742 = vmatprep.subr.bf16.mxu0 %v9212_v63  ;;  %4128 = vmatprep.subr.bf16.mxu1 %v9215_v0  ;;  %v9281_v63 = vld [vmem:[%s10237_s19 + $0x1c8] ss:$16 sps:$4 sm:$0xff]   ;;  %v9288_v0 = vld [vmem:[%s10237_s19 + $0x1ec] ss:$16 sps:$4 sm:$0xff]  }
 0x162   : > { %1848 = vmatmul.mubr.bf16.gmra.mrb[12].mxu0 %v9182_v1  ;;  %2234 = vmatmul.mubr.bf16.gmra.mrb[12].mxu1 %v9182_v1  ;;  %v9290_v1 = vld [vmem:[%s10237_s19 + $0x1e8] ss:$16 sps:$4 sm:$0xff]  }
 0x163   : > { %1857 = vmatprep.mubr.bf16.mxu0 %v9189_v2  ;;  %2243 = vmatprep.mubr.bf16.mxu1 %v9189_v2  ;;  %v9585_v2 = vld [vmem:[%s10237_s19 + $0x4] ss:$16 sps:$4 sm:$0xff]  }
 0x164   : > { %3743 = vmatpush1.bf16.msra.mxu0 %v9210_v3  ;;  %4129 = vmatpush1.bf16.msra.mxu1 %v9213_v4  ;;  %v9297_v3 = vld [vmem:[#allocation7 + $0x200] ss:$16 sps:$4 sm:$0xff]   ;;  %v9300_v4 = vld [vmem:[#allocation7 + $0x208] ss:$16 sps:$4 sm:$0xff]  }
 0x165   : > { %3744 = vmatprep.subr.bf16.mxu0 %v9221_v5  ;;  %4130 = vmatprep.subr.bf16.mxu1 %v9224_v6  ;;  %v9305_v5 = vld [vmem:[#allocation7 + $0x224] ss:$16 sps:$4 sm:$0xff]   ;;  %v9308_v6 = vld [vmem:[#allocation7 + $0x22c] ss:$16 sps:$4 sm:$0xff]  }
 0x168   : > { %3745 = vmatpush1.bf16.msra.mxu0 %v9219_v7  ;;  %4131 = vmatpush1.bf16.msra.mxu1 %v9222_v8  ;;  %v9586_v7 = vld [vmem:[%s10237_s19] ss:$16 sps:$4 sm:$0xff]  }
 0x169   : > { %3746 = vmatprep.subr.bf16.mxu0 %v9230_v9  ;;  %4132 = vmatprep.subr.bf16.mxu1 %v9233_v10  ;;  %v9303_v8 = vld [vmem:[#allocation7 + $0x220] ss:$16 sps:$4 sm:$0xff]   ;;  %v9306_v9 = vld [vmem:[#allocation7 + $0x228] ss:$16 sps:$4 sm:$0xff]   ;;  %v9587_v10 = vld [vmem:[%s10237_s19 + $0x24] ss:$16 sps:$4 sm:$0xff]  }
 0x16a   : > { %1858 = vmatmul.mubr.bf16.gmra.mrb[16].mxu0 %v9191_v11  ;;  %2244 = vmatmul.mubr.bf16.gmra.mrb[16].mxu1 %v9191_v11  ;;  %v9311_v11 = vld [vmem:[#allocation7 + $0x244] ss:$16 sps:$4 sm:$0xff]  }
 0x16b   : > { %1867 = vmatprep.mubr.bf16.mxu0 %v9198_v12  ;;  %2253 = vmatprep.mubr.bf16.mxu1 %v9198_v12  ;;  %v9314_v12 = vld [vmem:[#allocation7 + $0x24c] ss:$16 sps:$4 sm:$0xff]  }
 0x16c   : > { %3747 = vmatpush1.bf16.msra.mxu0 %v9228_v13  ;;  %4133 = vmatpush1.bf16.msra.mxu1 %v9231_v14  ;;  %v9309_v13 = vld [vmem:[#allocation7 + $0x240] ss:$16 sps:$4 sm:$0xff]   ;;  %v9312_v14 = vld [vmem:[#allocation7 + $0x248] ss:$16 sps:$4 sm:$0xff]  }
 0x16d   : > { %3748 = vmatprep.subr.bf16.mxu0 %v9239_v15  ;;  %4134 = vmatprep.subr.bf16.mxu1 %v9242_v16  ;;  %v9317_v15 = vld [vmem:[#allocation7 + $0x264] ss:$16 sps:$4 sm:$0xff]   ;;  %v9320_v16 = vld [vmem:[#allocation7 + $0x26c] ss:$16 sps:$4 sm:$0xff]  }
 0x170   : > { %3749 = vmatpush1.bf16.msra.mxu0 %v9237_v17  ;;  %4135 = vmatpush1.bf16.msra.mxu1 %v9240_v18  ;;  %v9588_v17 = vld [vmem:[%s10237_s19 + $0x20] ss:$16 sps:$4 sm:$0xff]   ;;  %v9589_v18 = vld [vmem:[%s10237_s19 + $0x44] ss:$16 sps:$4 sm:$0xff]  }
 0x171   : > { %3750 = vmatprep.subr.bf16.mxu0 %v9248_v19  ;;  %4136 = vmatprep.subr.bf16.mxu1 %v9251_v20  ;;  %v9315_v19 = vld [vmem:[#allocation7 + $0x260] ss:$16 sps:$4 sm:$0xff]   ;;  %v9318_v20 = vld [vmem:[#allocation7 + $0x268] ss:$16 sps:$4 sm:$0xff]  }
 0x172   : > { %1868 = vmatmul.mubr.bf16.gmra.mrb[20].mxu0 %v9200_v21  ;;  %2254 = vmatmul.mubr.bf16.gmra.mrb[20].mxu1 %v9200_v21  ;;  %v9323_v21 = vld [vmem:[#allocation7 + $0x284] ss:$16 sps:$4 sm:$0xff]  }
 0x173   : > { %1877 = vmatprep.mubr.bf16.mxu0 %v9207_v22  ;;  %2263 = vmatprep.mubr.bf16.mxu1 %v9207_v22  ;;  %v9326_v22 = vld [vmem:[#allocation7 + $0x28c] ss:$16 sps:$4 sm:$0xff]  }
 0x174   : > { %3751 = vmatpush1.bf16.msra.mxu0 %v9246_v23  ;;  %4137 = vmatpush1.bf16.msra.mxu1 %v9249_v24  ;;  %v9321_v23 = vld [vmem:[#allocation7 + $0x280] ss:$16 sps:$4 sm:$0xff]   ;;  %v9324_v24 = vld [vmem:[#allocation7 + $0x288] ss:$16 sps:$4 sm:$0xff]  }
 0x175   : > { %3752 = vmatprep.subr.bf16.mxu0 %v9257_v25  ;;  %4138 = vmatprep.subr.bf16.mxu1 %v9260_v26  ;;  %v9329_v25 = vld [vmem:[#allocation7 + $0x2a4] ss:$16 sps:$4 sm:$0xff]   ;;  %v9332_v26 = vld [vmem:[#allocation7 + $0x2ac] ss:$16 sps:$4 sm:$0xff]  }
 0x178   : > { %3753 = vmatpush1.bf16.msra.mxu0 %v9255_v27  ;;  %4139 = vmatpush1.bf16.msra.mxu1 %v9258_v28  ;;  %v9590_v27 = vld [vmem:[%s10237_s19 + $0x40] ss:$16 sps:$4 sm:$0xff]   ;;  %v9591_v28 = vld [vmem:[%s10237_s19 + $0x64] ss:$16 sps:$4 sm:$0xff]  }
 0x179   : > { %3754 = vmatprep.subr.bf16.mxu0 %v9266_v29  ;;  %4140 = vmatprep.subr.bf16.mxu1 %v9269_v30  ;;  %v9327_v29 = vld [vmem:[#allocation7 + $0x2a0] ss:$16 sps:$4 sm:$0xff]   ;;  %v9330_v30 = vld [vmem:[#allocation7 + $0x2a8] ss:$16 sps:$4 sm:$0xff]  }
 0x17a   : > { %1878 = vmatmul.mubr.bf16.gmra.mrb[24].mxu0 %v9209_v31  ;;  %2264 = vmatmul.mubr.bf16.gmra.mrb[24].mxu1 %v9209_v31  ;;  %v9335_v31 = vld [vmem:[#allocation7 + $0x2c4] ss:$16 sps:$4 sm:$0xff]  }
 0x17b   : > { %1887 = vmatprep.mubr.bf16.mxu0 %v9216_v32  ;;  %2273 = vmatprep.mubr.bf16.mxu1 %v9216_v32  ;;  %v9338_v32 = vld [vmem:[#allocation7 + $0x2cc] ss:$16 sps:$4 sm:$0xff]  }
 0x17c   : > { %3755 = vmatpush1.bf16.msra.mxu0 %v9264_v33  ;;  %4141 = vmatpush1.bf16.msra.mxu1 %v9267_v34  ;;  %v9333_v33 = vld [vmem:[#allocation7 + $0x2c0] ss:$16 sps:$4 sm:$0xff]   ;;  %v9336_v34 = vld [vmem:[#allocation7 + $0x2c8] ss:$16 sps:$4 sm:$0xff]  }
 0x17d   : > { %3756 = vmatprep.subr.bf16.mxu0 %v9275_v35  ;;  %4142 = vmatprep.subr.bf16.mxu1 %v9278_v36  ;;  %v9341_v35 = vld [vmem:[#allocation7 + $0x2e4] ss:$16 sps:$4 sm:$0xff]   ;;  %v9344_v36 = vld [vmem:[#allocation7 + $0x2ec] ss:$16 sps:$4 sm:$0xff]  }
 0x180   : > { %3757 = vmatpush1.bf16.msra.mxu0 %v9273_v37  ;;  %4143 = vmatpush1.bf16.msra.mxu1 %v9276_v38  ;;  %v9592_v37 = vld [vmem:[%s10237_s19 + $0x60] ss:$16 sps:$4 sm:$0xff]   ;;  %v9593_v38 = vld [vmem:[%s10237_s19 + $0x84] ss:$16 sps:$4 sm:$0xff]  }
 0x181   : > { %3758 = vmatprep.subr.bf16.mxu0 %v9284_v39  ;;  %4144 = vmatprep.subr.bf16.mxu1 %v9287_v40  ;;  %v9339_v39 = vld [vmem:[#allocation7 + $0x2e0] ss:$16 sps:$4 sm:$0xff]   ;;  %v9342_v40 = vld [vmem:[#allocation7 + $0x2e8] ss:$16 sps:$4 sm:$0xff]  }
 0x182   : > { %1888 = vmatmul.mubr.bf16.gmra.mrb[28].mxu0 %v9218_v41  ;;  %2274 = vmatmul.mubr.bf16.gmra.mrb[28].mxu1 %v9218_v41  ;;  %v9347_v41 = vld [vmem:[#allocation7 + $0x304] ss:$16 sps:$4 sm:$0xff]  }
 0x183   : > { %1897 = vmatprep.mubr.bf16.mxu0 %v9225_v42  ;;  %2283 = vmatprep.mubr.bf16.mxu1 %v9225_v42  ;;  %v9350_v42 = vld [vmem:[#allocation7 + $0x30c] ss:$16 sps:$4 sm:$0xff]  }
 0x184   : > { %3759 = vmatpush1.bf16.msra.mxu0 %v9282_v43  ;;  %4145 = vmatpush1.bf16.msra.mxu1 %v9285_v44  ;;  %v9345_v43 = vld [vmem:[#allocation7 + $0x300] ss:$16 sps:$4 sm:$0xff]   ;;  %v9348_v44 = vld [vmem:[#allocation7 + $0x308] ss:$16 sps:$4 sm:$0xff]  }
 0x185   : > { %3760 = vmatprep.subr.bf16.mxu0 %v9293_v45  ;;  %4146 = vmatprep.subr.bf16.mxu1 %v9296_v46  ;;  %v9353_v45 = vld [vmem:[#allocation7 + $0x324] ss:$16 sps:$4 sm:$0xff]   ;;  %v9356_v46 = vld [vmem:[#allocation7 + $0x32c] ss:$16 sps:$4 sm:$0xff]  }
 0x188   : > { %3761 = vmatpush1.bf16.msra.mxu0 %v9291_v47  ;;  %4147 = vmatpush1.bf16.msra.mxu1 %v9294_v48  ;;  %v9594_v47 = vld [vmem:[%s10237_s19 + $0x80] ss:$16 sps:$4 sm:$0xff]   ;;  %v9595_v48 = vld [vmem:[%s10237_s19 + $0xa4] ss:$16 sps:$4 sm:$0xff]  }
 0x189   : > { %3923 = vmatprep.subr.bf16.mxu0 %v9299_v49  ;;  %4309 = vmatprep.subr.bf16.mxu1 %v9302_v50  ;;  %v9351_v49 = vld [vmem:[#allocation7 + $0x320] ss:$16 sps:$4 sm:$0xff]   ;;  %v9354_v50 = vld [vmem:[#allocation7 + $0x328] ss:$16 sps:$4 sm:$0xff]  }
 0x18a   : > { %1898 = vmatmul.mubr.bf16.gmra.mrb[32].mxu0 %v9227_v51  ;;  %2284 = vmatmul.mubr.bf16.gmra.mrb[32].mxu1 %v9227_v51  ;;  %v9359_v51 = vld [vmem:[#allocation7 + $0x344] ss:$16 sps:$4 sm:$0xff]  }
 0x18b   : > { %1907 = vmatprep.mubr.bf16.mxu0 %v9234_v52  ;;  %2293 = vmatprep.mubr.bf16.mxu1 %v9234_v52  ;;  %v9362_v52 = vld [vmem:[#allocation7 + $0x34c] ss:$16 sps:$4 sm:$0xff]  }
 0x192   : > { %1908 = vmatmul.mubr.bf16.gmra.mrb[36].mxu0 %v9236_v53  ;;  %2294 = vmatmul.mubr.bf16.gmra.mrb[36].mxu1 %v9236_v53  ;;  %v9357_v53 = vld [vmem:[#allocation7 + $0x340] ss:$16 sps:$4 sm:$0xff]  }
 0x193   : > { %1917 = vmatprep.mubr.bf16.mxu0 %v9243_v54  ;;  %2303 = vmatprep.mubr.bf16.mxu1 %v9243_v54  ;;  %v9360_v54 = vld [vmem:[#allocation7 + $0x348] ss:$16 sps:$4 sm:$0xff]  }
 0x19a   : > { %1918 = vmatmul.mubr.bf16.gmra.mrb[40].mxu0 %v9245_v55  ;;  %2304 = vmatmul.mubr.bf16.gmra.mrb[40].mxu1 %v9245_v55  ;;  %v9365_v55 = vld [vmem:[#allocation7 + $0x364] ss:$16 sps:$4 sm:$0xff]  }
 0x19b   : > { %1927 = vmatprep.mubr.bf16.mxu0 %v9252_v56  ;;  %2313 = vmatprep.mubr.bf16.mxu1 %v9252_v56  ;;  %v9368_v56 = vld [vmem:[#allocation7 + $0x36c] ss:$16 sps:$4 sm:$0xff]  }
 0x1a2   : > { %1928 = vmatmul.mubr.bf16.gmra.mrb[44].mxu0 %v9254_v57  ;;  %2314 = vmatmul.mubr.bf16.gmra.mrb[44].mxu1 %v9254_v57  ;;  %v9596_v57 = vld [vmem:[%s10237_s19 + $0xa0] ss:$16 sps:$4 sm:$0xff]  }
 0x1a3   : > { %1937 = vmatprep.mubr.bf16.mxu0 %v9261_v58  ;;  %2323 = vmatprep.mubr.bf16.mxu1 %v9261_v58  ;;  %v9597_v58 = vld [vmem:[%s10237_s19 + $0xc4] ss:$16 sps:$4 sm:$0xff]  }
 0x1aa   : > { %1938 = vmatmul.mubr.bf16.gmra.mrb[48].mxu0 %v9263_v59  ;;  %2324 = vmatmul.mubr.bf16.gmra.mrb[48].mxu1 %v9263_v59  ;;  %v9363_v59 = vld [vmem:[#allocation7 + $0x360] ss:$16 sps:$4 sm:$0xff]  }
 0x1ab   : > { %1947 = vmatprep.mubr.bf16.mxu0 %v9270_v60  ;;  %2333 = vmatprep.mubr.bf16.mxu1 %v9270_v60  ;;  %v9366_v60 = vld [vmem:[#allocation7 + $0x368] ss:$16 sps:$4 sm:$0xff]  }
 0x1b2   : > { %1948 = vmatmul.mubr.bf16.gmra.mrb[52].mxu0 %v9272_v61  ;;  %2334 = vmatmul.mubr.bf16.gmra.mrb[52].mxu1 %v9272_v61  ;;  %v9371_v61 = vld [vmem:[#allocation7 + $0x384] ss:$16 sps:$4 sm:$0xff]  }
 0x1b3   : > { %1957 = vmatprep.mubr.bf16.mxu0 %v9279_v62  ;;  %2343 = vmatprep.mubr.bf16.mxu1 %v9279_v62  ;;  %v9374_v62 = vld [vmem:[#allocation7 + $0x38c] ss:$16 sps:$4 sm:$0xff]  }
 0x1ba   : > { %1958 = vmatmul.mubr.bf16.gmra.mrb[56].mxu0 %v9281_v63  ;;  %2344 = vmatmul.mubr.bf16.gmra.mrb[56].mxu1 %v9281_v63  ;;  %v9369_v63 = vld [vmem:[#allocation7 + $0x380] ss:$16 sps:$4 sm:$0xff]  }
 0x1bb   : > { %1967 = vmatprep.mubr.bf16.mxu0 %v9288_v0  ;;  %2353 = vmatprep.mubr.bf16.mxu1 %v9288_v0  ;;  %v9372_v0 = vld [vmem:[#allocation7 + $0x388] ss:$16 sps:$4 sm:$0xff]  }
 0x1c2   : > { %1968 = vmatmul.mubr.bf16.gmra.mrb[60].mxu0 %v9290_v1  ;;  %2354 = vmatmul.mubr.bf16.gmra.mrb[60].mxu1 %v9290_v1  ;;  %v9377_v1 = vld [vmem:[#allocation7 + $0x3a4] ss:$16 sps:$4 sm:$0xff]  }
 0x1c3   : > { %3762 = vmatprep.mubr.bf16.mxu0 %v9585_v2  ;;  %4148 = vmatprep.mubr.bf16.mxu1 %v9585_v2  ;;  %v9380_v2 = vld [vmem:[#allocation7 + $0x3ac] ss:$16 sps:$4 sm:$0xff]  }
 0x1ca   : > { %3763 = vmatmul.mubr.bf16.vlgmr.msra.gmra.mrb[64].mxu0 %v9586_v7  ;;  %4149 = vmatmul.mubr.bf16.vlgmr.msra.gmra.mrb[64].mxu1 %v9586_v7  ;;  %v9383_v7 = vld [vmem:[#allocation7 + $0x3c4] ss:$16 sps:$4 sm:$0xff]  }
 0x1cb   : > { %3924 = vmatpush1.bf16.msra.mxu0 %v9297_v3  ;;  %4310 = vmatpush1.bf16.msra.mxu1 %v9300_v4  ;;  %v9598_v3 = vld [vmem:[%s10237_s19 + $0xc0] ss:$16 sps:$4 sm:$0xff]   ;;  %v9599_v4 = vld [vmem:[%s10237_s19 + $0xe4] ss:$16 sps:$4 sm:$0xff]  }
 0x1cc   : > { %3772 = vmatprep.mubr.bf16.mxu0 %v9587_v10  ;;  %4158 = vmatprep.mubr.bf16.mxu1 %v9587_v10  ;;  %v9384_v10 = vld [vmem:[#allocation7 + $0x3c8] ss:$16 sps:$4 sm:$0xff]  }
 0x1cd   : > { %3925 = vmatprep.subr.bf16.mxu0 %v9305_v5  ;;  %4311 = vmatprep.subr.bf16.mxu1 %v9308_v6  ;;  %v9375_v5 = vld [vmem:[#allocation7 + $0x3a0] ss:$16 sps:$4 sm:$0xff]   ;;  %v9378_v6 = vld [vmem:[#allocation7 + $0x3a8] ss:$16 sps:$4 sm:$0xff]  }
 0x1cf   : > { %3926 = vmatpush1.bf16.msra.mxu0 %v9303_v8  ;;  %4312 = vmatpush1.bf16.msra.mxu1 %v9306_v9  ;;  %v9386_v8 = vld [vmem:[#allocation7 + $0x3cc] ss:$16 sps:$4 sm:$0xff]   ;;  %v9381_v9 = vld [vmem:[#allocation7 + $0x3c0] ss:$16 sps:$4 sm:$0xff]  }
 0x1d0   : > { %3927 = vmatprep.subr.bf16.mxu0 %v9311_v11  ;;  %4313 = vmatprep.subr.bf16.mxu1 %v9314_v12  ;;  %v9389_v11 = vld [vmem:[#allocation7 + $0x3e4] ss:$16 sps:$4 sm:$0xff]   ;;  %v9392_v12 = vld [vmem:[#allocation7 + $0x3ec] ss:$16 sps:$4 sm:$0xff]  }
 0x1d2   : > { %3773 = vmatmul.mubr.bf16.gmra.mrb[68].mxu0 %v9588_v17  ;;  %4159 = vmatmul.mubr.bf16.gmra.mrb[68].mxu1 %v9588_v17  ;;  %v9395_v17 = vld [vmem:[#allocation8 + $0x4] ss:$16 sps:$4 sm:$0xff]  }
 0x1d3   : > { %3782 = vmatprep.mubr.bf16.mxu0 %v9589_v18  ;;  %4168 = vmatprep.mubr.bf16.mxu1 %v9589_v18  ;;  %v9398_v18 = vld [vmem:[#allocation8 + $0xc] ss:$16 sps:$4 sm:$0xff]  }
 0x1d4   : > { %3928 = vmatpush1.bf16.msra.mxu0 %v9309_v13  ;;  %4314 = vmatpush1.bf16.msra.mxu1 %v9312_v14  ;;  %v9600_v13 = vld [vmem:[%s10237_s19 + $0xe0] ss:$16 sps:$4 sm:$0xff]   ;;  %v9601_v14 = vld [vmem:[%s10237_s19 + $0x104] ss:$16 sps:$4 sm:$0xff]  }
 0x1d5   : > { %3929 = vmatprep.subr.bf16.mxu0 %v9317_v15  ;;  %4315 = vmatprep.subr.bf16.mxu1 %v9320_v16  ;;  %v9387_v15 = vld [vmem:[#allocation7 + $0x3e0] ss:$16 sps:$4 sm:$0xff]   ;;  %v9390_v16 = vld [vmem:[#allocation7 + $0x3e8] ss:$16 sps:$4 sm:$0xff]  }
 0x1d8   : > { %3930 = vmatpush1.bf16.msra.mxu0 %v9315_v19  ;;  %4316 = vmatpush1.bf16.msra.mxu1 %v9318_v20  ;;  %v9602_v19 = vld [vmem:[%s10237_s19 + $0x100] ss:$16 sps:$4 sm:$0xff]   ;;  %v9603_v20 = vld [vmem:[%s10237_s19 + $0x124] ss:$16 sps:$4 sm:$0xff]  }
 0x1d9   : > { %3931 = vmatprep.subr.bf16.mxu0 %v9323_v21  ;;  %4317 = vmatprep.subr.bf16.mxu1 %v9326_v22  ;;  %v612_v21 = vlaneseq  ;;  %v9604_v22 = vld [vmem:[%s10237_s19 + $0x120] ss:$16 sps:$4 sm:$0xff]  }
 0x1da   : > { %3783 = vmatmul.mubr.bf16.gmra.mrb[72].mxu0 %v9590_v27  ;;  %4169 = vmatmul.mubr.bf16.gmra.mrb[72].mxu1 %v9590_v27  ;;  %v610_v27 = vld [vmem:[%s11218_s2] sm:$0xf] }
 0x1db   : > { %3792 = vmatprep.mubr.bf16.mxu0 %v9591_v28  ;;  %4178 = vmatprep.mubr.bf16.mxu1 %v9591_v28 }
 0x1dc   : > { %3932 = vmatpush1.bf16.msra.mxu0 %v9321_v23  ;;  %4318 = vmatpush1.bf16.msra.mxu1 %v9324_v24  ;;  %v613_v23 = vshrl.u32 %v612_v21, 7  ;;  %v9605_v24 = vld [vmem:[%s10237_s19 + $0x144] ss:$16 sps:$4 sm:$0xff]  }
 0x1dd   : > { %3933 = vmatprep.subr.bf16.mxu0 %v9329_v25  ;;  %4319 = vmatprep.subr.bf16.mxu1 %v9332_v26 }
 0x1de   : > { %v10336_v25 = vsub.s32 0, %v613_v23  ;;  %v10338_v26 = vsub.s32 2, %v613_v23  ;;  %v10343_v28 = vsub.s32 1, %v613_v23 }
 0x1e0   : > { %3934 = vmatpush1.bf16.msra.mxu0 %v9327_v29  ;;  %4320 = vmatpush1.bf16.msra.mxu1 %v9330_v30  ;;  %v10345_v29 = vsub.s32 3, %v613_v23  ;;  %v9606_v30 = vld [vmem:[%s10237_s19 + $0x140] ss:$16 sps:$4 sm:$0xff]  }
 0x1e1   : > { %3935 = vmatprep.subr.bf16.mxu0 %v9335_v31  ;;  %4321 = vmatprep.subr.bf16.mxu1 %v9338_v32  ;;  %v10349_v31 = vrot.slane %v610_v27, %v10336_v25  ;;  %v10352_v32 = vrot.slane %v610_v27, %v10338_v26 }
 0x1e2   : > { %3793 = vmatmul.mubr.bf16.gmra.mrb[76].mxu0 %v9592_v37  ;;  %4179 = vmatmul.mubr.bf16.gmra.mrb[76].mxu1 %v9592_v37 }
 0x1e3   : > { %3802 = vmatprep.mubr.bf16.mxu0 %v9593_v38  ;;  %4188 = vmatprep.mubr.bf16.mxu1 %v9593_v38 }
 0x1e4   : > { %3936 = vmatpush1.bf16.msra.mxu0 %v9333_v33  ;;  %4322 = vmatpush1.bf16.msra.mxu1 %v9336_v34  ;;  %v10355_v33 = vrot.slane %v610_v27, %v10343_v28  ;;  %v10358_v34 = vrot.slane %v610_v27, %v10345_v29 }
 0x1e5   : > { %3937 = vmatprep.subr.bf16.mxu0 %v9341_v35  ;;  %4323 = vmatprep.subr.bf16.mxu1 %v9344_v36  ;;  %v9607_v35 = vld [vmem:[%s10237_s19 + $0x164] ss:$16 sps:$4 sm:$0xff]  }
 0x1e8   : > { %3938 = vmatpush1.bf16.msra.mxu0 %v9339_v39  ;;  %4324 = vmatpush1.bf16.msra.mxu1 %v9342_v40 }
 0x1e9   : > { %3939 = vmatprep.subr.bf16.mxu0 %v9347_v41  ;;  %4325 = vmatprep.subr.bf16.mxu1 %v9350_v42 }
 0x1ea   : > { %3803 = vmatmul.mubr.bf16.gmra.mrb[80].mxu0 %v9594_v47  ;;  %4189 = vmatmul.mubr.bf16.gmra.mrb[80].mxu1 %v9594_v47 }
 0x1eb   : > { %3812 = vmatprep.mubr.bf16.mxu0 %v9595_v48  ;;  %4198 = vmatprep.mubr.bf16.mxu1 %v9595_v48 }
 0x1ec   : > { %3940 = vmatpush1.bf16.msra.mxu0 %v9345_v43  ;;  %4326 = vmatpush1.bf16.msra.mxu1 %v9348_v44 }
 0x1ed   : > { %3941 = vmatprep.subr.bf16.mxu0 %v9353_v45  ;;  %4327 = vmatprep.subr.bf16.mxu1 %v9356_v46 }
 0x1f0   : > { %3942 = vmatpush1.bf16.msra.mxu0 %v9351_v49  ;;  %4328 = vmatpush1.bf16.msra.mxu1 %v9354_v50 }
 0x1f1   : > { %3943 = vmatprep.subr.bf16.mxu0 %v9359_v51  ;;  %4329 = vmatprep.subr.bf16.mxu1 %v9362_v52 }
 0x1f2   : > { %3813 = vmatmul.mubr.bf16.gmra.mrb[84].mxu0 %v9596_v57  ;;  %4199 = vmatmul.mubr.bf16.gmra.mrb[84].mxu1 %v9596_v57 }
 0x1f3   : > { %3822 = vmatprep.mubr.bf16.mxu0 %v9597_v58  ;;  %4208 = vmatprep.mubr.bf16.mxu1 %v9597_v58  ;;  %v9608_v58 = vld [vmem:[%s10237_s19 + $0x160] ss:$16 sps:$4 sm:$0xff]  }
 0x1f4   : > { %3944 = vmatpush1.bf16.msra.mxu0 %v9357_v53  ;;  %4330 = vmatpush1.bf16.msra.mxu1 %v9360_v54 }
 0x1f5   : > { %3945 = vmatprep.subr.bf16.mxu0 %v9365_v55  ;;  %4331 = vmatprep.subr.bf16.mxu1 %v9368_v56 }
 0x1f8   : > { %3946 = vmatpush1.bf16.msra.mxu0 %v9363_v59  ;;  %4332 = vmatpush1.bf16.msra.mxu1 %v9366_v60 }
 0x1f9   : > { %3947 = vmatprep.subr.bf16.mxu0 %v9371_v61  ;;  %4333 = vmatprep.subr.bf16.mxu1 %v9374_v62 }
 0x1fa   : > { %3823 = vmatmul.mubr.bf16.gmra.mrb[88].mxu0 %v9598_v3  ;;  %4209 = vmatmul.mubr.bf16.gmra.mrb[88].mxu1 %v9598_v3 }
 0x1fb   : > { %3832 = vmatprep.mubr.bf16.mxu0 %v9599_v4  ;;  %4218 = vmatprep.mubr.bf16.mxu1 %v9599_v4 }
 0x1fc   : > { %3948 = vmatpush1.bf16.msra.mxu0 %v9369_v63  ;;  %4334 = vmatpush1.bf16.msra.mxu1 %v9372_v0  ;;  %v9609_v63 = vld [vmem:[%s10237_s19 + $0x184] ss:$16 sps:$4 sm:$0xff]  }
 0x1fd   : > { %3949 = vmatprep.subr.bf16.mxu0 %v9377_v1  ;;  %4335 = vmatprep.subr.bf16.mxu1 %v9380_v2 }
 0x200   : > { %3950 = vmatpush1.bf16.msra.mxu0 %v9375_v5  ;;  %4336 = vmatpush1.bf16.msra.mxu1 %v9378_v6 }
 0x201   : > { %3951 = vmatprep.subr.bf16.mxu0 %v9383_v7  ;;  %4337 = vmatprep.subr.bf16.mxu1 %v9386_v8 }
 0x202   : > { %3833 = vmatmul.mubr.bf16.gmra.mrb[92].mxu0 %v9600_v13  ;;  %4219 = vmatmul.mubr.bf16.gmra.mrb[92].mxu1 %v9600_v13 }
 0x203   : > { %3842 = vmatprep.mubr.bf16.mxu0 %v9601_v14  ;;  %4228 = vmatprep.mubr.bf16.mxu1 %v9601_v14 }
 0x204   : > { %3952 = vmatpush1.bf16.msra.mxu0 %v9381_v9  ;;  %4338 = vmatpush1.bf16.msra.mxu1 %v9384_v10 }
 0x205   : > { %3953 = vmatprep.subr.bf16.mxu0 %v9389_v11  ;;  %4339 = vmatprep.subr.bf16.mxu1 %v9392_v12 }
 0x208   : > { %3954 = vmatpush1.bf16.msra.mxu0 %v9387_v15  ;;  %4340 = vmatpush1.bf16.msra.mxu1 %v9390_v16 }
 0x209   : > { %5740 = vmatprep.subr.bf16.mxu0 %v9395_v17  ;;  %6126 = vmatprep.subr.bf16.mxu1 %v9398_v18 }
 0x20a   : > { %3843 = vmatmul.mubr.bf16.gmra.mrb[96].mxu0 %v9602_v19  ;;  %4229 = vmatmul.mubr.bf16.gmra.mrb[96].mxu1 %v9602_v19 }
 0x20b   : > { %3852 = vmatprep.mubr.bf16.mxu0 %v9603_v20  ;;  %4238 = vmatprep.mubr.bf16.mxu1 %v9603_v20 }
 0x212   : > { %3853 = vmatmul.mubr.bf16.gmra.mrb[100].mxu0 %v9604_v22  ;;  %4239 = vmatmul.mubr.bf16.gmra.mrb[100].mxu1 %v9604_v22 }
 0x213   : > { %3862 = vmatprep.mubr.bf16.mxu0 %v9605_v24  ;;  %4248 = vmatprep.mubr.bf16.mxu1 %v9605_v24  ;;  %v9610_v24 = vld [vmem:[%s10237_s19 + $0x180] ss:$16 sps:$4 sm:$0xff]  }
 0x21a   : > { %3863 = vmatmul.mubr.bf16.gmra.mrb[104].mxu0 %v9606_v30  ;;  %4249 = vmatmul.mubr.bf16.gmra.mrb[104].mxu1 %v9606_v30 }
 0x21b   : > { %3872 = vmatprep.mubr.bf16.mxu0 %v9607_v35  ;;  %4258 = vmatprep.mubr.bf16.mxu1 %v9607_v35 }
 0x21d   : > { %v1819_v36 = vpop.f32.mrb[0].mxu0  ;;  %v2205_v37 = vpop.f32.mrb[0].mxu1 }
 0x21e   : > { %v8054_v38 = vadd.f32 %v1819_v36, %v10349_v31  ;;  %v8118_v39 = vadd.f32 %v2205_v37, %v10352_v32  ;;  %v1821_v40 = vpop.f32.mrb[1].mxu0  ;;  %v2207_v41 = vpop.f32.mrb[1].mxu1  ;;  %v9611_v37 = vld [vmem:[%s10237_s19 + $0x1a4] ss:$16 sps:$4 sm:$0xff]  }
 0x21f   : > { %v8055_v42 = vadd.f32 %v1821_v40, %v10355_v33  ;;  %v8119_v43 = vadd.f32 %v2207_v41, %v10358_v34  ;;  %v1823_v44 = vpop.f32.mrb[2].mxu0  ;;  %v2209_v45 = vpop.f32.mrb[2].mxu1 }
 0x220   : > { %v2364_v46 = vmul.f32 0.044194173, %v8054_v38  ;;  %v2366_v47 = vmul.f32 0.044194173, %v8118_v39  ;;  %v8056_v48 = vadd.f32 %v1823_v44, %v10349_v31  ;;  %v8120_v49 = vadd.f32 %v2209_v45, %v10352_v32  ;;  %v1825_v50 = vpop.f32.mrb[3].mxu0  ;;  %v2211_v51 = vpop.f32.mrb[3].mxu1 }
 0x221   : > { %v2365_v52 = vmul.f32 0.044194173, %v8055_v42  ;;  %v2367_v53 = vmul.f32 0.044194173, %v8119_v43  ;;  %v8057_v54 = vadd.f32 %v1825_v50, %v10355_v33  ;;  %v8121_v55 = vadd.f32 %v2211_v51, %v10358_v34 }
 0x222   : > { %v2368_v56 = vmul.f32 0.044194173, %v8056_v48  ;;  %v2370_v57 = vmul.f32 0.044194173, %v8120_v49  ;;  %3873 = vmatmul.mubr.bf16.gmra.mrb[108].mxu0 %v9608_v58  ;;  %4259 = vmatmul.mubr.bf16.gmra.mrb[108].mxu1 %v9608_v58 }
 0x223   : > { %v7856_v59 = vpack.c.bf16 %v2365_v52, %v2364_v46  ;;  %v7857_v60 = vpack.c.bf16 %v2367_v53, %v2366_v47  ;;  %v2369_v61 = vmul.f32 0.044194173, %v8057_v54  ;;  %v2371_v62 = vmul.f32 0.044194173, %v8121_v55  ;;  %3882 = vmatprep.mubr.bf16.mxu0 %v9609_v63  ;;  %4268 = vmatprep.mubr.bf16.mxu1 %v9609_v63 }
 0x225   : > { %2876 = vst [vmem:[%s10372_s26] sm:$0xff] %v7856_v59  ;;  %2877 = vst [vmem:[%s10372_s26 + $0x8] sm:$0xff] %v7857_v60  ;;  %v7858_v0 = vpack.c.bf16 %v2369_v61, %v2368_v56  ;;  %v7859_v1 = vpack.c.bf16 %v2371_v62, %v2370_v57  ;;  %v1829_v2 = vpop.f32.mrb[4].mxu0  ;;  %v2215_v3 = vpop.f32.mrb[4].mxu1  ;;  %v9612_v62 = vld [vmem:[%s10237_s19 + $0x1a0] ss:$16 sps:$4 sm:$0xff]  }
 0x226   : > { %v8058_v4 = vadd.f32 %v1829_v2, %v10349_v31  ;;  %v8122_v5 = vadd.f32 %v2215_v3, %v10352_v32  ;;  %v1831_v6 = vpop.f32.mrb[5].mxu0  ;;  %v2217_v7 = vpop.f32.mrb[5].mxu1  ;;  %v9613_v3 = vld [vmem:[%s10237_s19 + $0x1c4] ss:$16 sps:$4 sm:$0xff]  }
 0x227   : > { %2878 = vst [vmem:[%s10372_s26 + $0x10] sm:$0xff] %v7858_v0  ;;  %2879 = vst [vmem:[%s10372_s26 + $0x18] sm:$0xff] %v7859_v1  ;;  %v8059_v8 = vadd.f32 %v1831_v6, %v10355_v33  ;;  %v8123_v9 = vadd.f32 %v2217_v7, %v10358_v34  ;;  %v1833_v10 = vpop.f32.mrb[6].mxu0  ;;  %v2219_v11 = vpop.f32.mrb[6].mxu1 }
 0x228   : > { %v2372_v12 = vmul.f32 0.044194173, %v8058_v4  ;;  %v2374_v13 = vmul.f32 0.044194173, %v8122_v5  ;;  %v8060_v14 = vadd.f32 %v1833_v10, %v10349_v31  ;;  %v8124_v15 = vadd.f32 %v2219_v11, %v10352_v32  ;;  %v1835_v16 = vpop.f32.mrb[7].mxu0  ;;  %v2221_v17 = vpop.f32.mrb[7].mxu1 }
 0x229   : > { %v2373_v18 = vmul.f32 0.044194173, %v8059_v8  ;;  %v2375_v19 = vmul.f32 0.044194173, %v8123_v9  ;;  %v8061_v20 = vadd.f32 %v1835_v16, %v10355_v33  ;;  %v8125_v21 = vadd.f32 %v2221_v17, %v10358_v34 }
 0x22a   : > { %v2376_v22 = vmul.f32 0.044194173, %v8060_v14  ;;  %v2378_v23 = vmul.f32 0.044194173, %v8124_v15  ;;  %3883 = vmatmul.mubr.bf16.gmra.mrb[112].mxu0 %v9610_v24  ;;  %4269 = vmatmul.mubr.bf16.gmra.mrb[112].mxu1 %v9610_v24 }
 0x22b   : > { %v7860_v27 = vpack.c.bf16 %v2373_v18, %v2372_v12  ;;  %v7861_v30 = vpack.c.bf16 %v2375_v19, %v2374_v13  ;;  %v2377_v35 = vmul.f32 0.044194173, %v8061_v20  ;;  %v2379_v36 = vmul.f32 0.044194173, %v8125_v21  ;;  %3892 = vmatprep.mubr.bf16.mxu0 %v9611_v37  ;;  %4278 = vmatprep.mubr.bf16.mxu1 %v9611_v37 }
 0x22d   : > { %2880 = vst [vmem:[%s10372_s26 + $0x20] sm:$0xff] %v7860_v27  ;;  %2881 = vst [vmem:[%s10372_s26 + $0x28] sm:$0xff] %v7861_v30  ;;  %v7862_v38 = vpack.c.bf16 %v2377_v35, %v2376_v22  ;;  %v7863_v39 = vpack.c.bf16 %v2379_v36, %v2378_v23  ;;  %v1839_v40 = vpop.f32.mrb[8].mxu0  ;;  %v2225_v41 = vpop.f32.mrb[8].mxu1  ;;  %v9614_v36 = vld [vmem:[%s10237_s19 + $0x1c0] ss:$16 sps:$4 sm:$0xff]  }
 0x22e   : > { %v8062_v42 = vadd.f32 %v1839_v40, %v10349_v31  ;;  %v8126_v43 = vadd.f32 %v2225_v41, %v10352_v32  ;;  %v1841_v44 = vpop.f32.mrb[9].mxu0  ;;  %v2227_v45 = vpop.f32.mrb[9].mxu1  ;;  %v9615_v41 = vld [vmem:[%s10237_s19 + $0x1e4] ss:$16 sps:$4 sm:$0xff]  }
 0x22f   : > { %2882 = vst [vmem:[%s10372_s26 + $0x30] sm:$0xff] %v7862_v38  ;;  %2883 = vst [vmem:[%s10372_s26 + $0x38] sm:$0xff] %v7863_v39  ;;  %v8063_v46 = vadd.f32 %v1841_v44, %v10355_v33  ;;  %v8127_v47 = vadd.f32 %v2227_v45, %v10358_v34  ;;  %v1843_v48 = vpop.f32.mrb[10].mxu0  ;;  %v2229_v49 = vpop.f32.mrb[10].mxu1 }
 0x230   : > { %v2380_v50 = vmul.f32 0.044194173, %v8062_v42  ;;  %v2382_v51 = vmul.f32 0.044194173, %v8126_v43  ;;  %v8064_v52 = vadd.f32 %v1843_v48, %v10349_v31  ;;  %v8128_v53 = vadd.f32 %v2229_v49, %v10352_v32  ;;  %v1845_v54 = vpop.f32.mrb[11].mxu0  ;;  %v2231_v55 = vpop.f32.mrb[11].mxu1 }
 0x231   : > { %v2381_v56 = vmul.f32 0.044194173, %v8063_v46  ;;  %v2383_v57 = vmul.f32 0.044194173, %v8127_v47  ;;  %v8065_v58 = vadd.f32 %v1845_v54, %v10355_v33  ;;  %v8129_v59 = vadd.f32 %v2231_v55, %v10358_v34 }
 0x232   : > { %v2384_v60 = vmul.f32 0.044194173, %v8064_v52  ;;  %v2386_v61 = vmul.f32 0.044194173, %v8128_v53  ;;  %3893 = vmatmul.mubr.bf16.gmra.mrb[116].mxu0 %v9612_v62  ;;  %4279 = vmatmul.mubr.bf16.gmra.mrb[116].mxu1 %v9612_v62 }
 0x233   : > { %v7864_v63 = vpack.c.bf16 %v2381_v56, %v2380_v50  ;;  %v7865_v0 = vpack.c.bf16 %v2383_v57, %v2382_v51  ;;  %v2385_v1 = vmul.f32 0.044194173, %v8065_v58  ;;  %v2387_v2 = vmul.f32 0.044194173, %v8129_v59  ;;  %3902 = vmatprep.mubr.bf16.mxu0 %v9613_v3  ;;  %4288 = vmatprep.mubr.bf16.mxu1 %v9613_v3 }
 0x235   : > { %2884 = vst [vmem:[%s10372_s26 + $0x40] sm:$0xff] %v7864_v63  ;;  %2885 = vst [vmem:[%s10372_s26 + $0x48] sm:$0xff] %v7865_v0  ;;  %v7866_v4 = vpack.c.bf16 %v2385_v1, %v2384_v60  ;;  %v7867_v5 = vpack.c.bf16 %v2387_v2, %v2386_v61  ;;  %v1849_v6 = vpop.f32.mrb[12].mxu0  ;;  %v2235_v7 = vpop.f32.mrb[12].mxu1  ;;  %v9616_v2 = vld [vmem:[%s10237_s19 + $0x1e0] ss:$16 sps:$4 sm:$0xff]  }
 0x236   : > { %v8066_v8 = vadd.f32 %v1849_v6, %v10349_v31  ;;  %v8130_v9 = vadd.f32 %v2235_v7, %v10352_v32  ;;  %v1851_v10 = vpop.f32.mrb[13].mxu0  ;;  %v2237_v11 = vpop.f32.mrb[13].mxu1  ;;  %v9617_v7 = vld [vmem:[%s10237_s19 + $0xc] ss:$16 sps:$4 sm:$0xff]  }
 0x237   : > { %2886 = vst [vmem:[%s10372_s26 + $0x50] sm:$0xff] %v7866_v4  ;;  %2887 = vst [vmem:[%s10372_s26 + $0x58] sm:$0xff] %v7867_v5  ;;  %v8067_v12 = vadd.f32 %v1851_v10, %v10355_v33  ;;  %v8131_v13 = vadd.f32 %v2237_v11, %v10358_v34  ;;  %v1853_v14 = vpop.f32.mrb[14].mxu0  ;;  %v2239_v15 = vpop.f32.mrb[14].mxu1 }
 0x238   : > { %v2388_v16 = vmul.f32 0.044194173, %v8066_v8  ;;  %v2390_v17 = vmul.f32 0.044194173, %v8130_v9  ;;  %v8068_v18 = vadd.f32 %v1853_v14, %v10349_v31  ;;  %v8132_v19 = vadd.f32 %v2239_v15, %v10352_v32  ;;  %v1855_v20 = vpop.f32.mrb[15].mxu0  ;;  %v2241_v21 = vpop.f32.mrb[15].mxu1 }
 0x239   : > { %v2389_v22 = vmul.f32 0.044194173, %v8067_v12  ;;  %v2391_v23 = vmul.f32 0.044194173, %v8131_v13  ;;  %v8069_v24 = vadd.f32 %v1855_v20, %v10355_v33  ;;  %v8133_v27 = vadd.f32 %v2241_v21, %v10358_v34  ;;  %v9396_v21 = vld [vmem:[#allocation8 + $0x8] ss:$16 sps:$4 sm:$0xff]  }
 0x23a   : > { %v2392_v30 = vmul.f32 0.044194173, %v8068_v18  ;;  %v2394_v35 = vmul.f32 0.044194173, %v8132_v19  ;;  %3903 = vmatmul.mubr.bf16.gmra.mrb[120].mxu0 %v9614_v36  ;;  %4289 = vmatmul.mubr.bf16.gmra.mrb[120].mxu1 %v9614_v36 }
 0x23b   : > { %v7868_v37 = vpack.c.bf16 %v2389_v22, %v2388_v16  ;;  %v7869_v38 = vpack.c.bf16 %v2391_v23, %v2390_v17  ;;  %v2393_v39 = vmul.f32 0.044194173, %v8069_v24  ;;  %v2395_v40 = vmul.f32 0.044194173, %v8133_v27  ;;  %3912 = vmatprep.mubr.bf16.mxu0 %v9615_v41  ;;  %4298 = vmatprep.mubr.bf16.mxu1 %v9615_v41  ;;  %v9393_v16 = vld [vmem:[#allocation8] ss:$16 sps:$4 sm:$0xff]  }
 0x23c   : > { %v9401_v22 = vld [vmem:[#allocation8 + $0x24] ss:$16 sps:$4 sm:$0xff]   ;;  %v9404_v41 = vld [vmem:[#allocation8 + $0x2c] ss:$16 sps:$4 sm:$0xff]  }
 0x23d   : > { %2888 = vst [vmem:[%s10372_s26 + $0x60] sm:$0xff] %v7868_v37  ;;  %2889 = vst [vmem:[%s10372_s26 + $0x68] sm:$0xff] %v7869_v38  ;;  %v7870_v42 = vpack.c.bf16 %v2393_v39, %v2392_v30  ;;  %v7871_v43 = vpack.c.bf16 %v2395_v40, %v2394_v35  ;;  %v1859_v44 = vpop.f32.mrb[16].mxu0  ;;  %v2245_v45 = vpop.f32.mrb[16].mxu1 }
 0x23e   : > { %v8070_v46 = vadd.f32 %v1859_v44, %v10349_v31  ;;  %v8134_v47 = vadd.f32 %v2245_v45, %v10352_v32  ;;  %v1861_v48 = vpop.f32.mrb[17].mxu0  ;;  %v2247_v49 = vpop.f32.mrb[17].mxu1  ;;  %v9618_v44 = vld [vmem:[%s10237_s19 + $0x8] ss:$16 sps:$4 sm:$0xff]   ;;  %v9399_v45 = vld [vmem:[#allocation8 + $0x20] ss:$16 sps:$4 sm:$0xff]  }
 0x23f   : > { %2890 = vst [vmem:[%s10372_s26 + $0x70] sm:$0xff] %v7870_v42  ;;  %2891 = vst [vmem:[%s10372_s26 + $0x78] sm:$0xff] %v7871_v43  ;;  %v8071_v50 = vadd.f32 %v1861_v48, %v10355_v33  ;;  %v8135_v51 = vadd.f32 %v2247_v49, %v10358_v34  ;;  %v1863_v52 = vpop.f32.mrb[18].mxu0  ;;  %v2249_v53 = vpop.f32.mrb[18].mxu1 }
 0x240   : > { %v2396_v54 = vmul.f32 0.044194173, %v8070_v46  ;;  %v2398_v55 = vmul.f32 0.044194173, %v8134_v47  ;;  %v8072_v56 = vadd.f32 %v1863_v52, %v10349_v31  ;;  %v8136_v57 = vadd.f32 %v2249_v53, %v10352_v32  ;;  %v1865_v58 = vpop.f32.mrb[19].mxu0  ;;  %v2251_v59 = vpop.f32.mrb[19].mxu1 }
 0x241   : > { %v2397_v60 = vmul.f32 0.044194173, %v8071_v50  ;;  %v2399_v61 = vmul.f32 0.044194173, %v8135_v51  ;;  %v8073_v62 = vadd.f32 %v1865_v58, %v10355_v33  ;;  %v8137_v63 = vadd.f32 %v2251_v59, %v10358_v34  ;;  %v9402_v50 = vld [vmem:[#allocation8 + $0x28] ss:$16 sps:$4 sm:$0xff]  }
 0x242   : > { %v2400_v0 = vmul.f32 0.044194173, %v8072_v56  ;;  %v2402_v1 = vmul.f32 0.044194173, %v8136_v57  ;;  %3913 = vmatmul.mubr.bf16.gmra.mrb[124].mxu0 %v9616_v2  ;;  %4299 = vmatmul.mubr.bf16.gmra.mrb[124].mxu1 %v9616_v2  ;;  %v9619_v51 = vld [vmem:[%s10237_s19 + $0x2c] ss:$16 sps:$4 sm:$0xff]  }
 0x243   : > { %v7872_v3 = vpack.c.bf16 %v2397_v60, %v2396_v54  ;;  %v7873_v4 = vpack.c.bf16 %v2399_v61, %v2398_v55  ;;  %v2401_v5 = vmul.f32 0.044194173, %v8073_v62  ;;  %v2403_v6 = vmul.f32 0.044194173, %v8137_v63  ;;  %3955 = vmatprep.mubr.bf16.mxu0 %v9617_v7  ;;  %4341 = vmatprep.mubr.bf16.mxu1 %v9617_v7  ;;  %v9407_v52 = vld [vmem:[#allocation8 + $0x44] ss:$16 sps:$4 sm:$0xff]  }
 0x244   : > { %v9410_v53 = vld [vmem:[#allocation8 + $0x4c] ss:$16 sps:$4 sm:$0xff]   ;;  %v9405_v62 = vld [vmem:[#allocation8 + $0x40] ss:$16 sps:$4 sm:$0xff]  }
 0x245   : > { %2892 = vst [vmem:[%s10372_s26 + $0x80] sm:$0xff] %v7872_v3  ;;  %2893 = vst [vmem:[%s10372_s26 + $0x88] sm:$0xff] %v7873_v4  ;;  %v7874_v8 = vpack.c.bf16 %v2401_v5, %v2400_v0  ;;  %v7875_v9 = vpack.c.bf16 %v2403_v6, %v2402_v1  ;;  %v1869_v10 = vpop.f32.mrb[20].mxu0  ;;  %v2255_v11 = vpop.f32.mrb[20].mxu1  ;;  %v9408_v3 = vld [vmem:[#allocation8 + $0x48] ss:$16 sps:$4 sm:$0xff]  }
 0x246   : > { %v8074_v12 = vadd.f32 %v1869_v10, %v10349_v31  ;;  %v8138_v13 = vadd.f32 %v2255_v11, %v10352_v32  ;;  %v1871_v14 = vpop.f32.mrb[21].mxu0  ;;  %v2257_v15 = vpop.f32.mrb[21].mxu1  ;;  %v9413_v4 = vld [vmem:[#allocation8 + $0x64] ss:$16 sps:$4 sm:$0xff]  }
 0x247   : > { %2894 = vst [vmem:[%s10372_s26 + $0x90] sm:$0xff] %v7874_v8  ;;  %2895 = vst [vmem:[%s10372_s26 + $0x98] sm:$0xff] %v7875_v9  ;;  %v8075_v17 = vadd.f32 %v1871_v14, %v10355_v33  ;;  %v8139_v18 = vadd.f32 %v2257_v15, %v10358_v34  ;;  %v1873_v19 = vpop.f32.mrb[22].mxu0  ;;  %v2259_v20 = vpop.f32.mrb[22].mxu1  ;;  %v9416_v15 = vld [vmem:[#allocation8 + $0x6c] ss:$16 sps:$4 sm:$0xff]  }
 0x248   : > { %v2404_v23 = vmul.f32 0.044194173, %v8074_v12  ;;  %v2406_v24 = vmul.f32 0.044194173, %v8138_v13  ;;  %v8076_v27 = vadd.f32 %v1873_v19, %v10349_v31  ;;  %v8140_v30 = vadd.f32 %v2259_v20, %v10352_v32  ;;  %v1875_v35 = vpop.f32.mrb[23].mxu0  ;;  %v2261_v36 = vpop.f32.mrb[23].mxu1 }
 0x249   : > { %v2405_v37 = vmul.f32 0.044194173, %v8075_v17  ;;  %v2407_v38 = vmul.f32 0.044194173, %v8139_v18  ;;  %v8077_v39 = vadd.f32 %v1875_v35, %v10355_v33  ;;  %v8141_v40 = vadd.f32 %v2261_v36, %v10358_v34  ;;  %v9620_v18 = vld [vmem:[%s10237_s19 + $0x28] ss:$16 sps:$4 sm:$0xff]  }
 0x24a   : > { %v2408_v42 = vmul.f32 0.044194173, %v8076_v27  ;;  %v2410_v43 = vmul.f32 0.044194173, %v8140_v30  ;;  %3956 = vmatmul.mubr.bf16.vlgmr.msra.gmra.mrb[64].mxu0 %v9618_v44  ;;  %4342 = vmatmul.mubr.bf16.vlgmr.msra.gmra.mrb[64].mxu1 %v9618_v44  ;;  %v9414_v27 = vld [vmem:[#allocation8 + $0x68] ss:$16 sps:$4 sm:$0xff]  }
 0x24b   : > { %v7876_v46 = vpack.c.bf16 %v2405_v37, %v2404_v23  ;;  %v7877_v47 = vpack.c.bf16 %v2407_v38, %v2406_v24  ;;  %v2409_v48 = vmul.f32 0.044194173, %v8077_v39  ;;  %v2411_v49 = vmul.f32 0.044194173, %v8141_v40  ;;  %5741 = vmatpush1.bf16.msra.mxu0 %v9393_v16  ;;  %6127 = vmatpush1.bf16.msra.mxu1 %v9396_v21  ;;  %v9621_v23 = vld [vmem:[%s10237_s19 + $0x4c] ss:$16 sps:$4 sm:$0xff]  }
 0x24c   : > { %3965 = vmatprep.mubr.bf16.mxu0 %v9619_v51  ;;  %4351 = vmatprep.mubr.bf16.mxu1 %v9619_v51  ;;  %v9411_v24 = vld [vmem:[#allocation8 + $0x60] ss:$16 sps:$4 sm:$0xff]   ;;  %v9419_v38 = vld [vmem:[#allocation8 + $0x84] ss:$16 sps:$4 sm:$0xff]   ;;  %v9422_v39 = vld [vmem:[#allocation8 + $0x8c] ss:$16 sps:$4 sm:$0xff]  }
 0x24d   : > { %2896 = vst [vmem:[%s10372_s26 + $0xa0] sm:$0xff] %v7876_v46  ;;  %2897 = vst [vmem:[%s10372_s26 + $0xa8] sm:$0xff] %v7877_v47  ;;  %v7878_v54 = vpack.c.bf16 %v2409_v48, %v2408_v42  ;;  %v7879_v55 = vpack.c.bf16 %v2411_v49, %v2410_v43  ;;  %v1879_v56 = vpop.f32.mrb[24].mxu0  ;;  %v2265_v57 = vpop.f32.mrb[24].mxu1  ;;  %5742 = vmatprep.subr.bf16.mxu0 %v9401_v22  ;;  %6128 = vmatprep.subr.bf16.mxu1 %v9404_v41  ;;  %v9417_v44 = vld [vmem:[#allocation8 + $0x80] ss:$16 sps:$4 sm:$0xff]  }
 0x24e   : > { %v8078_v58 = vadd.f32 %v1879_v56, %v10349_v31  ;;  %v8142_v59 = vadd.f32 %v2265_v57, %v10352_v32  ;;  %v1881_v60 = vpop.f32.mrb[25].mxu0  ;;  %v2267_v61 = vpop.f32.mrb[25].mxu1  ;;  %v9420_v49 = vld [vmem:[#allocation8 + $0x88] ss:$16 sps:$4 sm:$0xff]  }
 0x24f   : > { %2898 = vst [vmem:[%s10372_s26 + $0xb0] sm:$0xff] %v7878_v54  ;;  %2899 = vst [vmem:[%s10372_s26 + $0xb8] sm:$0xff] %v7879_v55  ;;  %v8079_v63 = vadd.f32 %v1881_v60, %v10355_v33  ;;  %v8143_v0 = vadd.f32 %v2267_v61, %v10358_v34  ;;  %v1883_v1 = vpop.f32.mrb[26].mxu0  ;;  %v2269_v2 = vpop.f32.mrb[26].mxu1  ;;  %5743 = vmatpush1.bf16.msra.mxu0 %v9399_v45  ;;  %6129 = vmatpush1.bf16.msra.mxu1 %v9402_v50  ;;  %v9425_v50 = vld [vmem:[#allocation8 + $0xa4] ss:$16 sps:$4 sm:$0xff]  }
 0x250   : > { %v2412_v5 = vmul.f32 0.044194173, %v8078_v58  ;;  %v2414_v6 = vmul.f32 0.044194173, %v8142_v59  ;;  %v8080_v7 = vadd.f32 %v1883_v1, %v10349_v31  ;;  %v8144_v8 = vadd.f32 %v2269_v2, %v10352_v32  ;;  %v1885_v9 = vpop.f32.mrb[27].mxu0  ;;  %v2271_v10 = vpop.f32.mrb[27].mxu1  ;;  %5744 = vmatprep.subr.bf16.mxu0 %v9407_v52  ;;  %6130 = vmatprep.subr.bf16.mxu1 %v9410_v53 }
 0x251   : > { %v2413_v11 = vmul.f32 0.044194173, %v8079_v63  ;;  %v2415_v12 = vmul.f32 0.044194173, %v8143_v0  ;;  %v8081_v13 = vadd.f32 %v1885_v9, %v10355_v33  ;;  %v8145_v14 = vadd.f32 %v2271_v10, %v10358_v34  ;;  %v9428_v61 = vld [vmem:[#allocation8 + $0xac] ss:$16 sps:$4 sm:$0xff]  }
 0x252   : > { %v2416_v16 = vmul.f32 0.044194173, %v8080_v7  ;;  %v2418_v17 = vmul.f32 0.044194173, %v8144_v8  ;;  %3966 = vmatmul.mubr.bf16.gmra.mrb[68].mxu0 %v9620_v18  ;;  %4352 = vmatmul.mubr.bf16.gmra.mrb[68].mxu1 %v9620_v18  ;;  %v9622_v0 = vld [vmem:[%s10237_s19 + $0x48] ss:$16 sps:$4 sm:$0xff]  }
 0x253   : > { %v7880_v19 = vpack.c.bf16 %v2413_v11, %v2412_v5  ;;  %v7881_v20 = vpack.c.bf16 %v2415_v12, %v2414_v6  ;;  %v2417_v21 = vmul.f32 0.044194173, %v8081_v13  ;;  %v2419_v22 = vmul.f32 0.044194173, %v8145_v14  ;;  %3975 = vmatprep.mubr.bf16.mxu0 %v9621_v23  ;;  %4361 = vmatprep.mubr.bf16.mxu1 %v9621_v23  ;;  %v9623_v5 = vld [vmem:[%s10237_s19 + $0x6c] ss:$16 sps:$4 sm:$0xff]  }
 0x254   : > { %5745 = vmatpush1.bf16.msra.mxu0 %v9405_v62  ;;  %6131 = vmatpush1.bf16.msra.mxu1 %v9408_v3  ;;  %v9423_v6 = vld [vmem:[#allocation8 + $0xa0] ss:$16 sps:$4 sm:$0xff]   ;;  %v9426_v7 = vld [vmem:[#allocation8 + $0xa8] ss:$16 sps:$4 sm:$0xff]   ;;  %v9431_v12 = vld [vmem:[#allocation8 + $0xc4] ss:$16 sps:$4 sm:$0xff]  }
 0x255   : > { %2900 = vst [vmem:[%s10372_s26 + $0xc0] sm:$0xff] %v7880_v19  ;;  %2901 = vst [vmem:[%s10372_s26 + $0xc8] sm:$0xff] %v7881_v20  ;;  %v7882_v30 = vpack.c.bf16 %v2417_v21, %v2416_v16  ;;  %v7883_v35 = vpack.c.bf16 %v2419_v22, %v2418_v17  ;;  %v1889_v36 = vpop.f32.mrb[28].mxu0  ;;  %v2275_v37 = vpop.f32.mrb[28].mxu1  ;;  %5746 = vmatprep.subr.bf16.mxu0 %v9413_v4  ;;  %6132 = vmatprep.subr.bf16.mxu1 %v9416_v15  ;;  %v9434_v13 = vld [vmem:[#allocation8 + $0xcc] ss:$16 sps:$4 sm:$0xff]  }
 0x256   : > { %v8082_v40 = vadd.f32 %v1889_v36, %v10349_v31  ;;  %v8146_v41 = vadd.f32 %v2275_v37, %v10352_v32  ;;  %v1891_v42 = vpop.f32.mrb[29].mxu0  ;;  %v2277_v43 = vpop.f32.mrb[29].mxu1  ;;  %v9429_v18 = vld [vmem:[#allocation8 + $0xc0] ss:$16 sps:$4 sm:$0xff]   ;;  %v9432_v23 = vld [vmem:[#allocation8 + $0xc8] ss:$16 sps:$4 sm:$0xff]  }
 0x257   : > { %2902 = vst [vmem:[%s10372_s26 + $0xd0] sm:$0xff] %v7882_v30  ;;  %2903 = vst [vmem:[%s10372_s26 + $0xd8] sm:$0xff] %v7883_v35  ;;  %v8083_v45 = vadd.f32 %v1891_v42, %v10355_v33  ;;  %v8147_v46 = vadd.f32 %v2277_v43, %v10358_v34  ;;  %v1893_v47 = vpop.f32.mrb[30].mxu0  ;;  %v2279_v48 = vpop.f32.mrb[30].mxu1  ;;  %v9440_v43 = vld [vmem:[#allocation8 + $0xec] ss:$16 sps:$4 sm:$0xff]  }
 0x258   : > { %v2420_v51 = vmul.f32 0.044194173, %v8082_v40  ;;  %v2422_v52 = vmul.f32 0.044194173, %v8146_v41  ;;  %v8084_v53 = vadd.f32 %v1893_v47, %v10349_v31  ;;  %v8148_v54 = vadd.f32 %v2279_v48, %v10352_v32  ;;  %v1895_v55 = vpop.f32.mrb[31].mxu0  ;;  %v2281_v56 = vpop.f32.mrb[31].mxu1  ;;  %5747 = vmatpush1.bf16.msra.mxu0 %v9411_v24  ;;  %6133 = vmatpush1.bf16.msra.mxu1 %v9414_v27 }
 0x259   : > { %v2421_v57 = vmul.f32 0.044194173, %v8083_v45  ;;  %v2423_v58 = vmul.f32 0.044194173, %v8147_v46  ;;  %v8085_v59 = vadd.f32 %v1895_v55, %v10355_v33  ;;  %v8149_v60 = vadd.f32 %v2281_v56, %v10358_v34  ;;  %5748 = vmatprep.subr.bf16.mxu0 %v9419_v38  ;;  %6134 = vmatprep.subr.bf16.mxu1 %v9422_v39  ;;  %v9437_v24 = vld [vmem:[#allocation8 + $0xe4] ss:$16 sps:$4 sm:$0xff]  }
 0x25a   : > { %v2424_v62 = vmul.f32 0.044194173, %v8084_v53  ;;  %v2426_v63 = vmul.f32 0.044194173, %v8148_v54  ;;  %3976 = vmatmul.mubr.bf16.gmra.mrb[72].mxu0 %v9622_v0  ;;  %4362 = vmatmul.mubr.bf16.gmra.mrb[72].mxu1 %v9622_v0  ;;  %v9624_v46 = vld [vmem:[%s10237_s19 + $0x68] ss:$16 sps:$4 sm:$0xff]  }
 0x25b   : > { %v7884_v1 = vpack.c.bf16 %v2421_v57, %v2420_v51  ;;  %v7885_v2 = vpack.c.bf16 %v2423_v58, %v2422_v52  ;;  %v2425_v3 = vmul.f32 0.044194173, %v8085_v59  ;;  %v2427_v4 = vmul.f32 0.044194173, %v8149_v60  ;;  %3985 = vmatprep.mubr.bf16.mxu0 %v9623_v5  ;;  %4371 = vmatprep.mubr.bf16.mxu1 %v9623_v5  ;;  %v9625_v51 = vld [vmem:[%s10237_s19 + $0x8c] ss:$16 sps:$4 sm:$0xff]  }
 0x25c   : > { %5749 = vmatpush1.bf16.msra.mxu0 %v9417_v44  ;;  %6135 = vmatpush1.bf16.msra.mxu1 %v9420_v49  ;;  %v9435_v52 = vld [vmem:[#allocation8 + $0xe0] ss:$16 sps:$4 sm:$0xff]   ;;  %v9438_v53 = vld [vmem:[#allocation8 + $0xe8] ss:$16 sps:$4 sm:$0xff]   ;;  %v9443_v58 = vld [vmem:[#allocation8 + $0x104] ss:$16 sps:$4 sm:$0xff]  }
 0x25d   : > { %2904 = vst [vmem:[%s10372_s26 + $0xe0] sm:$0xff] %v7884_v1  ;;  %2905 = vst [vmem:[%s10372_s26 + $0xe8] sm:$0xff] %v7885_v2  ;;  %v7886_v8 = vpack.c.bf16 %v2425_v3, %v2424_v62  ;;  %v7887_v9 = vpack.c.bf16 %v2427_v4, %v2426_v63  ;;  %v1899_v10 = vpop.f32.mrb[32].mxu0  ;;  %v2285_v11 = vpop.f32.mrb[32].mxu1  ;;  %5750 = vmatprep.subr.bf16.mxu0 %v9425_v50  ;;  %6136 = vmatprep.subr.bf16.mxu1 %v9428_v61  ;;  %v9446_v59 = vld [vmem:[#allocation8 + $0x10c] ss:$16 sps:$4 sm:$0xff]  }
 0x25e   : > { %v8086_v14 = vadd.f32 %v1899_v10, %v10349_v31  ;;  %v8150_v15 = vadd.f32 %v2285_v11, %v10352_v32  ;;  %v1901_v16 = vpop.f32.mrb[33].mxu0  ;;  %v2287_v17 = vpop.f32.mrb[33].mxu1  ;;  %v9441_v0 = vld [vmem:[#allocation8 + $0x100] ss:$16 sps:$4 sm:$0xff]   ;;  %v9444_v5 = vld [vmem:[#allocation8 + $0x108] ss:$16 sps:$4 sm:$0xff]  }
 0x25f   : > { %2906 = vst [vmem:[%s10372_s26 + $0xf0] sm:$0xff] %v7886_v8  ;;  %2907 = vst [vmem:[%s10372_s26 + $0xf8] sm:$0xff] %v7887_v9  ;;  %v8087_v19 = vadd.f32 %v1901_v16, %v10355_v33  ;;  %v8151_v20 = vadd.f32 %v2287_v17, %v10358_v34  ;;  %v1903_v21 = vpop.f32.mrb[34].mxu0  ;;  %v2289_v22 = vpop.f32.mrb[34].mxu1  ;;  %v9452_v17 = vld [vmem:[#allocation8 + $0x12c] ss:$16 sps:$4 sm:$0xff]  }
 0x260   : > { %v2428_v27 = vmul.f32 0.044194173, %v8086_v14  ;;  %v2430_v30 = vmul.f32 0.044194173, %v8150_v15  ;;  %v8088_v35 = vadd.f32 %v1903_v21, %v10349_v31  ;;  %v8152_v36 = vadd.f32 %v2289_v22, %v10352_v32  ;;  %v1905_v37 = vpop.f32.mrb[35].mxu0  ;;  %v2291_v38 = vpop.f32.mrb[35].mxu1  ;;  %5751 = vmatpush1.bf16.msra.mxu0 %v9423_v6  ;;  %6137 = vmatpush1.bf16.msra.mxu1 %v9426_v7 }
 0x261   : > { %v2429_v39 = vmul.f32 0.044194173, %v8087_v19  ;;  %v2431_v40 = vmul.f32 0.044194173, %v8151_v20  ;;  %v8089_v41 = vadd.f32 %v1905_v37, %v10355_v33  ;;  %v8153_v42 = vadd.f32 %v2291_v38, %v10358_v34  ;;  %5752 = vmatprep.subr.bf16.mxu0 %v9431_v12  ;;  %6138 = vmatprep.subr.bf16.mxu1 %v9434_v13  ;;  %v9449_v6 = vld [vmem:[#allocation8 + $0x124] ss:$16 sps:$4 sm:$0xff]  }
 0x262   : > { %v2432_v44 = vmul.f32 0.044194173, %v8088_v35  ;;  %v2434_v45 = vmul.f32 0.044194173, %v8152_v36  ;;  %3986 = vmatmul.mubr.bf16.gmra.mrb[76].mxu0 %v9624_v46  ;;  %4372 = vmatmul.mubr.bf16.gmra.mrb[76].mxu1 %v9624_v46  ;;  %v9626_v20 = vld [vmem:[%s10237_s19 + $0x88] ss:$16 sps:$4 sm:$0xff]  }
 0x263   : > { %v7888_v47 = vpack.c.bf16 %v2429_v39, %v2428_v27  ;;  %v7889_v48 = vpack.c.bf16 %v2431_v40, %v2430_v30  ;;  %v2433_v49 = vmul.f32 0.044194173, %v8089_v41  ;;  %v2435_v50 = vmul.f32 0.044194173, %v8153_v42  ;;  %3995 = vmatprep.mubr.bf16.mxu0 %v9625_v51  ;;  %4381 = vmatprep.mubr.bf16.mxu1 %v9625_v51  ;;  %v9627_v27 = vld [vmem:[%s10237_s19 + $0xac] ss:$16 sps:$4 sm:$0xff]  }
 0x264   : > { %5753 = vmatpush1.bf16.msra.mxu0 %v9429_v18  ;;  %6139 = vmatpush1.bf16.msra.mxu1 %v9432_v23  ;;  %v9447_v30 = vld [vmem:[#allocation8 + $0x120] ss:$16 sps:$4 sm:$0xff]   ;;  %v9450_v35 = vld [vmem:[#allocation8 + $0x128] ss:$16 sps:$4 sm:$0xff]   ;;  %v9455_v40 = vld [vmem:[#allocation8 + $0x144] ss:$16 sps:$4 sm:$0xff]  }
 0x265   : > { %2908 = vst [vmem:[%s10372_s26 + $0x100] sm:$0xff] %v7888_v47  ;;  %2909 = vst [vmem:[%s10372_s26 + $0x108] sm:$0xff] %v7889_v48  ;;  %v7890_v54 = vpack.c.bf16 %v2433_v49, %v2432_v44  ;;  %v7891_v55 = vpack.c.bf16 %v2435_v50, %v2434_v45  ;;  %v1909_v56 = vpop.f32.mrb[36].mxu0  ;;  %v2295_v57 = vpop.f32.mrb[36].mxu1  ;;  %5754 = vmatprep.subr.bf16.mxu0 %v9437_v24  ;;  %6140 = vmatprep.subr.bf16.mxu1 %v9440_v43  ;;  %v9458_v41 = vld [vmem:[#allocation8 + $0x14c] ss:$16 sps:$4 sm:$0xff]  }
 0x266   : > { %v8090_v60 = vadd.f32 %v1909_v56, %v10349_v31  ;;  %v8154_v61 = vadd.f32 %v2295_v57, %v10352_v32  ;;  %v1911_v62 = vpop.f32.mrb[37].mxu0  ;;  %v2297_v63 = vpop.f32.mrb[37].mxu1  ;;  %v9453_v46 = vld [vmem:[#allocation8 + $0x140] ss:$16 sps:$4 sm:$0xff]   ;;  %v9456_v51 = vld [vmem:[#allocation8 + $0x148] ss:$16 sps:$4 sm:$0xff]  }
 0x267   : > { %2910 = vst [vmem:[%s10372_s26 + $0x110] sm:$0xff] %v7890_v54  ;;  %2911 = vst [vmem:[%s10372_s26 + $0x118] sm:$0xff] %v7891_v55  ;;  %v8091_v1 = vadd.f32 %v1911_v62, %v10355_v33  ;;  %v8155_v2 = vadd.f32 %v2297_v63, %v10358_v34  ;;  %v1913_v3 = vpop.f32.mrb[38].mxu0  ;;  %v2299_v4 = vpop.f32.mrb[38].mxu1  ;;  %v9464_v63 = vld [vmem:[#allocation8 + $0x16c] ss:$16 sps:$4 sm:$0xff]  }
 0x268   : > { %v2436_v7 = vmul.f32 0.044194173, %v8090_v60  ;;  %v2438_v8 = vmul.f32 0.044194173, %v8154_v61  ;;  %v8092_v9 = vadd.f32 %v1913_v3, %v10349_v31  ;;  %v8156_v10 = vadd.f32 %v2299_v4, %v10352_v32  ;;  %v1915_v11 = vpop.f32.mrb[39].mxu0  ;;  %v2301_v12 = vpop.f32.mrb[39].mxu1  ;;  %5755 = vmatpush1.bf16.msra.mxu0 %v9435_v52  ;;  %6141 = vmatpush1.bf16.msra.mxu1 %v9438_v53 }
 0x269   : > { %v2437_v13 = vmul.f32 0.044194173, %v8091_v1  ;;  %v2439_v14 = vmul.f32 0.044194173, %v8155_v2  ;;  %v8093_v15 = vadd.f32 %v1915_v11, %v10355_v33  ;;  %v8157_v16 = vadd.f32 %v2301_v12, %v10358_v34  ;;  %5756 = vmatprep.subr.bf16.mxu0 %v9443_v58  ;;  %6142 = vmatprep.subr.bf16.mxu1 %v9446_v59  ;;  %v9461_v52 = vld [vmem:[#allocation8 + $0x164] ss:$16 sps:$4 sm:$0xff]  }
 0x26a   : > { %v2440_v18 = vmul.f32 0.044194173, %v8092_v9  ;;  %v2442_v19 = vmul.f32 0.044194173, %v8156_v10  ;;  %3996 = vmatmul.mubr.bf16.gmra.mrb[80].mxu0 %v9626_v20  ;;  %4382 = vmatmul.mubr.bf16.gmra.mrb[80].mxu1 %v9626_v20  ;;  %v9628_v2 = vld [vmem:[%s10237_s19 + $0xa8] ss:$16 sps:$4 sm:$0xff]  }
 0x26b   : > { %v7892_v21 = vpack.c.bf16 %v2437_v13, %v2436_v7  ;;  %v7893_v22 = vpack.c.bf16 %v2439_v14, %v2438_v8  ;;  %v2441_v23 = vmul.f32 0.044194173, %v8093_v15  ;;  %v2443_v24 = vmul.f32 0.044194173, %v8157_v16  ;;  %4005 = vmatprep.mubr.bf16.mxu0 %v9627_v27  ;;  %4391 = vmatprep.mubr.bf16.mxu1 %v9627_v27  ;;  %v9629_v7 = vld [vmem:[%s10237_s19 + $0xcc] ss:$16 sps:$4 sm:$0xff]  }
 0x26c   : > { %5757 = vmatpush1.bf16.msra.mxu0 %v9441_v0  ;;  %6143 = vmatpush1.bf16.msra.mxu1 %v9444_v5  ;;  %v9459_v8 = vld [vmem:[#allocation8 + $0x160] ss:$16 sps:$4 sm:$0xff]   ;;  %v9462_v9 = vld [vmem:[#allocation8 + $0x168] ss:$16 sps:$4 sm:$0xff]   ;;  %v9467_v14 = vld [vmem:[#allocation8 + $0x184] ss:$16 sps:$4 sm:$0xff]  }
 0x26d   : > { %2912 = vst [vmem:[%s10372_s26 + $0x120] sm:$0xff] %v7892_v21  ;;  %2913 = vst [vmem:[%s10372_s26 + $0x128] sm:$0xff] %v7893_v22  ;;  %v7894_v36 = vpack.c.bf16 %v2441_v23, %v2440_v18  ;;  %v7895_v37 = vpack.c.bf16 %v2443_v24, %v2442_v19  ;;  %v1919_v38 = vpop.f32.mrb[40].mxu0  ;;  %v2305_v39 = vpop.f32.mrb[40].mxu1  ;;  %5758 = vmatprep.subr.bf16.mxu0 %v9449_v6  ;;  %6144 = vmatprep.subr.bf16.mxu1 %v9452_v17  ;;  %v9470_v15 = vld [vmem:[#allocation8 + $0x18c] ss:$16 sps:$4 sm:$0xff]  }
 0x26e   : > { %v8094_v42 = vadd.f32 %v1919_v38, %v10349_v31  ;;  %v8158_v43 = vadd.f32 %v2305_v39, %v10352_v32  ;;  %v1921_v44 = vpop.f32.mrb[41].mxu0  ;;  %v2307_v45 = vpop.f32.mrb[41].mxu1  ;;  %v9465_v20 = vld [vmem:[#allocation8 + $0x180] ss:$16 sps:$4 sm:$0xff]   ;;  %v9468_v27 = vld [vmem:[#allocation8 + $0x188] ss:$16 sps:$4 sm:$0xff]  }
 0x26f   : > { %2914 = vst [vmem:[%s10372_s26 + $0x130] sm:$0xff] %v7894_v36  ;;  %2915 = vst [vmem:[%s10372_s26 + $0x138] sm:$0xff] %v7895_v37  ;;  %v8095_v47 = vadd.f32 %v1921_v44, %v10355_v33  ;;  %v8159_v48 = vadd.f32 %v2307_v45, %v10358_v34  ;;  %v1923_v49 = vpop.f32.mrb[42].mxu0  ;;  %v2309_v50 = vpop.f32.mrb[42].mxu1  ;;  %v9476_v45 = vld [vmem:[#allocation8 + $0x1ac] ss:$16 sps:$4 sm:$0xff]  }
 0x270   : > { %v2444_v53 = vmul.f32 0.044194173, %v8094_v42  ;;  %v2446_v54 = vmul.f32 0.044194173, %v8158_v43  ;;  %v8096_v55 = vadd.f32 %v1923_v49, %v10349_v31  ;;  %v8160_v56 = vadd.f32 %v2309_v50, %v10352_v32  ;;  %v1925_v57 = vpop.f32.mrb[43].mxu0  ;;  %v2311_v58 = vpop.f32.mrb[43].mxu1  ;;  %5759 = vmatpush1.bf16.msra.mxu0 %v9447_v30  ;;  %6145 = vmatpush1.bf16.msra.mxu1 %v9450_v35 }
 0x271   : > { %v2445_v59 = vmul.f32 0.044194173, %v8095_v47  ;;  %v2447_v60 = vmul.f32 0.044194173, %v8159_v48  ;;  %v8097_v61 = vadd.f32 %v1925_v57, %v10355_v33  ;;  %v8161_v62 = vadd.f32 %v2311_v58, %v10358_v34  ;;  %5760 = vmatprep.subr.bf16.mxu0 %v9455_v40  ;;  %6146 = vmatprep.subr.bf16.mxu1 %v9458_v41  ;;  %v9473_v30 = vld [vmem:[#allocation8 + $0x1a4] ss:$16 sps:$4 sm:$0xff]  }
 0x272   : > { %v2448_v0 = vmul.f32 0.044194173, %v8096_v55  ;;  %v2450_v1 = vmul.f32 0.044194173, %v8160_v56  ;;  %4006 = vmatmul.mubr.bf16.gmra.mrb[84].mxu0 %v9628_v2  ;;  %4392 = vmatmul.mubr.bf16.gmra.mrb[84].mxu1 %v9628_v2  ;;  %v9630_v48 = vld [vmem:[%s10237_s19 + $0xc8] ss:$16 sps:$4 sm:$0xff]  }
 0x273   : > { %v7896_v3 = vpack.c.bf16 %v2445_v59, %v2444_v53  ;;  %v7897_v4 = vpack.c.bf16 %v2447_v60, %v2446_v54  ;;  %v2449_v5 = vmul.f32 0.044194173, %v8097_v61  ;;  %v2451_v6 = vmul.f32 0.044194173, %v8161_v62  ;;  %4015 = vmatprep.mubr.bf16.mxu0 %v9629_v7  ;;  %4401 = vmatprep.mubr.bf16.mxu1 %v9629_v7  ;;  %v9631_v53 = vld [vmem:[%s10237_s19 + $0xec] ss:$16 sps:$4 sm:$0xff]  }
 0x274   : > { %5761 = vmatpush1.bf16.msra.mxu0 %v9453_v46  ;;  %6147 = vmatpush1.bf16.msra.mxu1 %v9456_v51  ;;  %v9471_v54 = vld [vmem:[#allocation8 + $0x1a0] ss:$16 sps:$4 sm:$0xff]   ;;  %v9474_v55 = vld [vmem:[#allocation8 + $0x1a8] ss:$16 sps:$4 sm:$0xff]   ;;  %v9479_v60 = vld [vmem:[#allocation8 + $0x1c4] ss:$16 sps:$4 sm:$0xff]  }
 0x275   : > { %2916 = vst [vmem:[%s10372_s26 + $0x140] sm:$0xff] %v7896_v3  ;;  %2917 = vst [vmem:[%s10372_s26 + $0x148] sm:$0xff] %v7897_v4  ;;  %v7898_v10 = vpack.c.bf16 %v2449_v5, %v2448_v0  ;;  %v7899_v11 = vpack.c.bf16 %v2451_v6, %v2450_v1  ;;  %v1929_v12 = vpop.f32.mrb[44].mxu0  ;;  %v2315_v13 = vpop.f32.mrb[44].mxu1  ;;  %5762 = vmatprep.subr.bf16.mxu0 %v9461_v52  ;;  %6148 = vmatprep.subr.bf16.mxu1 %v9464_v63  ;;  %v9482_v61 = vld [vmem:[#allocation8 + $0x1cc] ss:$16 sps:$4 sm:$0xff]  }
 0x276   : > { %v8098_v16 = vadd.f32 %v1929_v12, %v10349_v31  ;;  %v8162_v17 = vadd.f32 %v2315_v13, %v10352_v32  ;;  %v1931_v18 = vpop.f32.mrb[45].mxu0  ;;  %v2317_v19 = vpop.f32.mrb[45].mxu1  ;;  %v9477_v2 = vld [vmem:[#allocation8 + $0x1c0] ss:$16 sps:$4 sm:$0xff]   ;;  %v9480_v7 = vld [vmem:[#allocation8 + $0x1c8] ss:$16 sps:$4 sm:$0xff]  }
 0x277   : > { %2918 = vst [vmem:[%s10372_s26 + $0x150] sm:$0xff] %v7898_v10  ;;  %2919 = vst [vmem:[%s10372_s26 + $0x158] sm:$0xff] %v7899_v11  ;;  %v8099_v21 = vadd.f32 %v1931_v18, %v10355_v33  ;;  %v8163_v22 = vadd.f32 %v2317_v19, %v10358_v34  ;;  %v1933_v23 = vpop.f32.mrb[46].mxu0  ;;  %v2319_v24 = vpop.f32.mrb[46].mxu1  ;;  %v9488_v19 = vld [vmem:[#allocation8 + $0x1ec] ss:$16 sps:$4 sm:$0xff]  }
 0x278   : > { %v2452_v35 = vmul.f32 0.044194173, %v8098_v16  ;;  %v2454_v36 = vmul.f32 0.044194173, %v8162_v17  ;;  %v8100_v37 = vadd.f32 %v1933_v23, %v10349_v31  ;;  %v8164_v38 = vadd.f32 %v2319_v24, %v10352_v32  ;;  %v1935_v39 = vpop.f32.mrb[47].mxu0  ;;  %v2321_v40 = vpop.f32.mrb[47].mxu1  ;;  %5763 = vmatpush1.bf16.msra.mxu0 %v9459_v8  ;;  %6149 = vmatpush1.bf16.msra.mxu1 %v9462_v9 }
 0x279   : > { %v2453_v41 = vmul.f32 0.044194173, %v8099_v21  ;;  %v2455_v42 = vmul.f32 0.044194173, %v8163_v22  ;;  %v8101_v43 = vadd.f32 %v1935_v39, %v10355_v33  ;;  %v8165_v44 = vadd.f32 %v2321_v40, %v10358_v34  ;;  %5764 = vmatprep.subr.bf16.mxu0 %v9467_v14  ;;  %6150 = vmatprep.subr.bf16.mxu1 %v9470_v15  ;;  %v9485_v8 = vld [vmem:[#allocation8 + $0x1e4] ss:$16 sps:$4 sm:$0xff]  }
 0x27a   : > { %v2456_v46 = vmul.f32 0.044194173, %v8100_v37  ;;  %v2458_v47 = vmul.f32 0.044194173, %v8164_v38  ;;  %4016 = vmatmul.mubr.bf16.gmra.mrb[88].mxu0 %v9630_v48  ;;  %4402 = vmatmul.mubr.bf16.gmra.mrb[88].mxu1 %v9630_v48  ;;  %v9632_v22 = vld [vmem:[%s10237_s19 + $0xe8] ss:$16 sps:$4 sm:$0xff]  }
 0x27b   : > { %v7900_v49 = vpack.c.bf16 %v2453_v41, %v2452_v35  ;;  %v7901_v50 = vpack.c.bf16 %v2455_v42, %v2454_v36  ;;  %v2457_v51 = vmul.f32 0.044194173, %v8101_v43  ;;  %v2459_v52 = vmul.f32 0.044194173, %v8165_v44  ;;  %4025 = vmatprep.mubr.bf16.mxu0 %v9631_v53  ;;  %4411 = vmatprep.mubr.bf16.mxu1 %v9631_v53  ;;  %v9633_v35 = vld [vmem:[%s10237_s19 + $0x10c] ss:$16 sps:$4 sm:$0xff]  }
 0x27c   : > { %5765 = vmatpush1.bf16.msra.mxu0 %v9465_v20  ;;  %6151 = vmatpush1.bf16.msra.mxu1 %v9468_v27  ;;  %v9483_v36 = vld [vmem:[#allocation8 + $0x1e0] ss:$16 sps:$4 sm:$0xff]   ;;  %v9486_v37 = vld [vmem:[#allocation8 + $0x1e8] ss:$16 sps:$4 sm:$0xff]   ;;  %v9491_v42 = vld [vmem:[#allocation8 + $0x204] ss:$16 sps:$4 sm:$0xff]  }
 0x27d   : > { %2920 = vst [vmem:[%s10372_s26 + $0x160] sm:$0xff] %v7900_v49  ;;  %2921 = vst [vmem:[%s10372_s26 + $0x168] sm:$0xff] %v7901_v50  ;;  %v7902_v56 = vpack.c.bf16 %v2457_v51, %v2456_v46  ;;  %v7903_v57 = vpack.c.bf16 %v2459_v52, %v2458_v47  ;;  %v1939_v58 = vpop.f32.mrb[48].mxu0  ;;  %v2325_v59 = vpop.f32.mrb[48].mxu1  ;;  %5766 = vmatprep.subr.bf16.mxu0 %v9473_v30  ;;  %6152 = vmatprep.subr.bf16.mxu1 %v9476_v45  ;;  %v9494_v43 = vld [vmem:[#allocation8 + $0x20c] ss:$16 sps:$4 sm:$0xff]  }
 0x27e   : > { %v8102_v62 = vadd.f32 %v1939_v58, %v10349_v31  ;;  %v8166_v63 = vadd.f32 %v2325_v59, %v10352_v32  ;;  %v1941_v0 = vpop.f32.mrb[49].mxu0  ;;  %v2327_v1 = vpop.f32.mrb[49].mxu1 }
 0x27f   : > { %2922 = vst [vmem:[%s10372_s26 + $0x170] sm:$0xff] %v7902_v56  ;;  %2923 = vst [vmem:[%s10372_s26 + $0x178] sm:$0xff] %v7903_v57  ;;  %v8103_v3 = vadd.f32 %v1941_v0, %v10355_v33  ;;  %v8167_v4 = vadd.f32 %v2327_v1, %v10358_v34  ;;  %v1943_v5 = vpop.f32.mrb[50].mxu0  ;;  %v2329_v6 = vpop.f32.mrb[50].mxu1  ;;  %v9634_v0 = vld [vmem:[%s10237_s19 + $0x108] ss:$16 sps:$4 sm:$0xff]  }
 0x280   : > { %v2460_v9 = vmul.f32 0.044194173, %v8102_v62  ;;  %v2462_v10 = vmul.f32 0.044194173, %v8166_v63  ;;  %v8104_v11 = vadd.f32 %v1943_v5, %v10349_v31  ;;  %v8168_v12 = vadd.f32 %v2329_v6, %v10352_v32  ;;  %v1945_v13 = vpop.f32.mrb[51].mxu0  ;;  %v2331_v14 = vpop.f32.mrb[51].mxu1  ;;  %5767 = vmatpush1.bf16.msra.mxu0 %v9471_v54  ;;  %6153 = vmatpush1.bf16.msra.mxu1 %v9474_v55 }
 0x281   : > { %v2461_v15 = vmul.f32 0.044194173, %v8103_v3  ;;  %v2463_v16 = vmul.f32 0.044194173, %v8167_v4  ;;  %v8105_v17 = vadd.f32 %v1945_v13, %v10355_v33  ;;  %v8169_v18 = vadd.f32 %v2331_v14, %v10358_v34  ;;  %5768 = vmatprep.subr.bf16.mxu0 %v9479_v60  ;;  %6154 = vmatprep.subr.bf16.mxu1 %v9482_v61  ;;  %v9635_v5 = vld [vmem:[%s10237_s19 + $0x12c] ss:$16 sps:$4 sm:$0xff]  }
 0x282   : > { %v2464_v20 = vmul.f32 0.044194173, %v8104_v11  ;;  %v2466_v21 = vmul.f32 0.044194173, %v8168_v12  ;;  %4026 = vmatmul.mubr.bf16.gmra.mrb[92].mxu0 %v9632_v22  ;;  %4412 = vmatmul.mubr.bf16.gmra.mrb[92].mxu1 %v9632_v22 }
 0x283   : > { %v7904_v23 = vpack.c.bf16 %v2461_v15, %v2460_v9  ;;  %v7905_v24 = vpack.c.bf16 %v2463_v16, %v2462_v10  ;;  %v2465_v27 = vmul.f32 0.044194173, %v8105_v17  ;;  %v2467_v30 = vmul.f32 0.044194173, %v8169_v18  ;;  %4035 = vmatprep.mubr.bf16.mxu0 %v9633_v35  ;;  %4421 = vmatprep.mubr.bf16.mxu1 %v9633_v35 }
 0x284   : > { %5769 = vmatpush1.bf16.msra.mxu0 %v9477_v2  ;;  %6155 = vmatpush1.bf16.msra.mxu1 %v9480_v7 }
 0x285   : > { %2924 = vst [vmem:[%s10372_s26 + $0x180] sm:$0xff] %v7904_v23  ;;  %2925 = vst [vmem:[%s10372_s26 + $0x188] sm:$0xff] %v7905_v24  ;;  %v7906_v38 = vpack.c.bf16 %v2465_v27, %v2464_v20  ;;  %v7907_v39 = vpack.c.bf16 %v2467_v30, %v2466_v21  ;;  %v1949_v40 = vpop.f32.mrb[52].mxu0  ;;  %v2335_v41 = vpop.f32.mrb[52].mxu1  ;;  %5770 = vmatprep.subr.bf16.mxu0 %v9485_v8  ;;  %6156 = vmatprep.subr.bf16.mxu1 %v9488_v19 }
 0x286   : > { %v8106_v44 = vadd.f32 %v1949_v40, %v10349_v31  ;;  %v8170_v45 = vadd.f32 %v2335_v41, %v10352_v32  ;;  %v1951_v46 = vpop.f32.mrb[53].mxu0  ;;  %v2337_v47 = vpop.f32.mrb[53].mxu1 }
 0x287   : > { %2926 = vst [vmem:[%s10372_s26 + $0x190] sm:$0xff] %v7906_v38  ;;  %2927 = vst [vmem:[%s10372_s26 + $0x198] sm:$0xff] %v7907_v39  ;;  %v8107_v48 = vadd.f32 %v1951_v46, %v10355_v33  ;;  %v8171_v49 = vadd.f32 %v2337_v47, %v10358_v34  ;;  %v1953_v50 = vpop.f32.mrb[54].mxu0  ;;  %v2339_v51 = vpop.f32.mrb[54].mxu1  ;;  %v9636_v38 = vld [vmem:[%s10237_s19 + $0x128] ss:$16 sps:$4 sm:$0xff]  }
 0x288   : > { %v2468_v52 = vmul.f32 0.044194173, %v8106_v44  ;;  %v2470_v53 = vmul.f32 0.044194173, %v8170_v45  ;;  %v8108_v54 = vadd.f32 %v1953_v50, %v10349_v31  ;;  %v8172_v55 = vadd.f32 %v2339_v51, %v10352_v32  ;;  %v1955_v56 = vpop.f32.mrb[55].mxu0  ;;  %v2341_v57 = vpop.f32.mrb[55].mxu1  ;;  %5771 = vmatpush1.bf16.msra.mxu0 %v9483_v36  ;;  %6157 = vmatpush1.bf16.msra.mxu1 %v9486_v37 }
 0x289   : > { %v2469_v58 = vmul.f32 0.044194173, %v8107_v48  ;;  %v2471_v59 = vmul.f32 0.044194173, %v8171_v49  ;;  %v8109_v60 = vadd.f32 %v1955_v56, %v10355_v33  ;;  %v8173_v61 = vadd.f32 %v2341_v57, %v10358_v34  ;;  %5933 = vmatprep.subr.bf16.mxu0 %v9491_v42  ;;  %6319 = vmatprep.subr.bf16.mxu1 %v9494_v43  ;;  %v9637_v43 = vld [vmem:[%s10237_s19 + $0x14c] ss:$16 sps:$4 sm:$0xff]  }
 0x28a   : > { %v2472_v62 = vmul.f32 0.044194173, %v8108_v54  ;;  %v2474_v63 = vmul.f32 0.044194173, %v8172_v55  ;;  %4036 = vmatmul.mubr.bf16.gmra.mrb[96].mxu0 %v9634_v0  ;;  %4422 = vmatmul.mubr.bf16.gmra.mrb[96].mxu1 %v9634_v0 }
 0x28b   : > { %v7908_v1 = vpack.c.bf16 %v2469_v58, %v2468_v52  ;;  %v7909_v2 = vpack.c.bf16 %v2471_v59, %v2470_v53  ;;  %v2473_v3 = vmul.f32 0.044194173, %v8109_v60  ;;  %v2475_v4 = vmul.f32 0.044194173, %v8173_v61  ;;  %4045 = vmatprep.mubr.bf16.mxu0 %v9635_v5  ;;  %4431 = vmatprep.mubr.bf16.mxu1 %v9635_v5 }
 0x28d   : > { %2928 = vst [vmem:[%s10372_s26 + $0x1a0] sm:$0xff] %v7908_v1  ;;  %2929 = vst [vmem:[%s10372_s26 + $0x1a8] sm:$0xff] %v7909_v2  ;;  %v7910_v6 = vpack.c.bf16 %v2473_v3, %v2472_v62  ;;  %v7911_v7 = vpack.c.bf16 %v2475_v4, %v2474_v63  ;;  %v1959_v8 = vpop.f32.mrb[56].mxu0  ;;  %v2345_v9 = vpop.f32.mrb[56].mxu1  ;;  %v9638_v4 = vld [vmem:[%s10237_s19 + $0x148] ss:$16 sps:$4 sm:$0xff]  }
 0x28e   : > { %v8110_v10 = vadd.f32 %v1959_v8, %v10349_v31  ;;  %v8174_v11 = vadd.f32 %v2345_v9, %v10352_v32  ;;  %v1961_v12 = vpop.f32.mrb[57].mxu0  ;;  %v2347_v13 = vpop.f32.mrb[57].mxu1  ;;  %v9640_v8 = vld [vmem:[%s10237_s19 + $0x168] ss:$16 sps:$4 sm:$0xff]   ;;  %v9641_v9 = vld [vmem:[%s10237_s19 + $0x18c] ss:$16 sps:$4 sm:$0xff]  }
 0x28f   : > { %2930 = vst [vmem:[%s10372_s26 + $0x1b0] sm:$0xff] %v7910_v6  ;;  %2931 = vst [vmem:[%s10372_s26 + $0x1b8] sm:$0xff] %v7911_v7  ;;  %v8111_v14 = vadd.f32 %v1961_v12, %v10355_v33  ;;  %v8175_v15 = vadd.f32 %v2347_v13, %v10358_v34  ;;  %v1963_v16 = vpop.f32.mrb[58].mxu0  ;;  %v2349_v17 = vpop.f32.mrb[58].mxu1  ;;  %v9639_v7 = vld [vmem:[%s10237_s19 + $0x16c] ss:$16 sps:$4 sm:$0xff]  }
 0x290   : > { %v2476_v18 = vmul.f32 0.044194173, %v8110_v10  ;;  %v2478_v19 = vmul.f32 0.044194173, %v8174_v11  ;;  %v8112_v20 = vadd.f32 %v1963_v16, %v10349_v31  ;;  %v8176_v21 = vadd.f32 %v2349_v17, %v10352_v32  ;;  %v1965_v22 = vpop.f32.mrb[59].mxu0  ;;  %v2351_v23 = vpop.f32.mrb[59].mxu1 }
 0x291   : > { %v2477_v24 = vmul.f32 0.044194173, %v8111_v14  ;;  %v2479_v27 = vmul.f32 0.044194173, %v8175_v15  ;;  %v8113_v30 = vadd.f32 %v1965_v22, %v10355_v33  ;;  %v8177_v35 = vadd.f32 %v2351_v23, %v10358_v34  ;;  %v9642_v10 = vld [vmem:[%s10237_s19 + $0x188] ss:$16 sps:$4 sm:$0xff]  }
 0x292   : > { %v2480_v36 = vmul.f32 0.044194173, %v8112_v20  ;;  %v2482_v37 = vmul.f32 0.044194173, %v8176_v21  ;;  %4046 = vmatmul.mubr.bf16.gmra.mrb[100].mxu0 %v9636_v38  ;;  %4432 = vmatmul.mubr.bf16.gmra.mrb[100].mxu1 %v9636_v38  ;;  %v9643_v11 = vld [vmem:[%s10237_s19 + $0x1ac] ss:$16 sps:$4 sm:$0xff]  }
 0x293   : > { %v7912_v39 = vpack.c.bf16 %v2477_v24, %v2476_v18  ;;  %v7913_v40 = vpack.c.bf16 %v2479_v27, %v2478_v19  ;;  %v2481_v41 = vmul.f32 0.044194173, %v8113_v30  ;;  %v2483_v42 = vmul.f32 0.044194173, %v8177_v35  ;;  %4055 = vmatprep.mubr.bf16.mxu0 %v9637_v43  ;;  %4441 = vmatprep.mubr.bf16.mxu1 %v9637_v43  ;;  %v9644_v12 = vld [vmem:[%s10237_s19 + $0x1a8] ss:$16 sps:$4 sm:$0xff]  }
 0x294   : > { %v9645_v13 = vld [vmem:[%s10237_s19 + $0x1cc] ss:$16 sps:$4 sm:$0xff]   ;;  %v9646_v14 = vld [vmem:[%s10237_s19 + $0x1c8] ss:$16 sps:$4 sm:$0xff]   ;;  %v9649_v17 = vld [vmem:[%s10237_s19 + $0x4] ss:$16 sps:$4 sm:$0xff]  }
 0x295   : > { %2932 = vst [vmem:[%s10372_s26 + $0x1c0] sm:$0xff] %v7912_v39  ;;  %2933 = vst [vmem:[%s10372_s26 + $0x1c8] sm:$0xff] %v7913_v40  ;;  %v7914_v44 = vpack.c.bf16 %v2481_v41, %v2480_v36  ;;  %v7915_v45 = vpack.c.bf16 %v2483_v42, %v2482_v37  ;;  %v1969_v46 = vpop.f32.mrb[60].mxu0  ;;  %v2355_v47 = vpop.f32.mrb[60].mxu1  ;;  %v9647_v15 = vld [vmem:[%s10237_s19 + $0x1ec] ss:$16 sps:$4 sm:$0xff]  }
 0x296   : > { %v8114_v48 = vadd.f32 %v1969_v46, %v10349_v31  ;;  %v8178_v49 = vadd.f32 %v2355_v47, %v10352_v32  ;;  %v1971_v50 = vpop.f32.mrb[61].mxu0  ;;  %v2357_v51 = vpop.f32.mrb[61].mxu1  ;;  %v9648_v16 = vld [vmem:[%s10237_s19 + $0x1e8] ss:$16 sps:$4 sm:$0xff]   ;;  %v9489_v18 = vld [vmem:[#allocation8 + $0x200] ss:$16 sps:$4 sm:$0xff]  }
 0x297   : > { %2934 = vst [vmem:[%s10372_s26 + $0x1d0] sm:$0xff] %v7914_v44  ;;  %2935 = vst [vmem:[%s10372_s26 + $0x1d8] sm:$0xff] %v7915_v45  ;;  %v8115_v52 = vadd.f32 %v1971_v50, %v10355_v33  ;;  %v8179_v53 = vadd.f32 %v2357_v51, %v10358_v34  ;;  %v1973_v54 = vpop.f32.mrb[62].mxu0  ;;  %v2359_v55 = vpop.f32.mrb[62].mxu1  ;;  %v9492_v19 = vld [vmem:[#allocation8 + $0x208] ss:$16 sps:$4 sm:$0xff]  }
 0x298   : > { %v2484_v56 = vmul.f32 0.044194173, %v8114_v48  ;;  %v2486_v57 = vmul.f32 0.044194173, %v8178_v49  ;;  %v8116_v58 = vadd.f32 %v1973_v54, %v10349_v31  ;;  %v8180_v59 = vadd.f32 %v2359_v55, %v10352_v32  ;;  %v1975_v60 = vpop.f32.mrb[63].mxu0  ;;  %v2361_v61 = vpop.f32.mrb[63].mxu1 }
 0x299   : > { %v2485_v62 = vmul.f32 0.044194173, %v8115_v52  ;;  %v2487_v63 = vmul.f32 0.044194173, %v8179_v53  ;;  %v8117_v0 = vadd.f32 %v1975_v60, %v10355_v33  ;;  %v8181_v1 = vadd.f32 %v2361_v61, %v10358_v34  ;;  %v9497_v20 = vld [vmem:[#allocation8 + $0x224] ss:$16 sps:$4 sm:$0xff]  }
 0x29a   : > { %v2488_v2 = vmul.f32 0.044194173, %v8116_v58  ;;  %v2490_v3 = vmul.f32 0.044194173, %v8180_v59  ;;  %4056 = vmatmul.mubr.bf16.gmra.mrb[104].mxu0 %v9638_v4  ;;  %4442 = vmatmul.mubr.bf16.gmra.mrb[104].mxu1 %v9638_v4  ;;  %v9500_v21 = vld [vmem:[#allocation8 + $0x22c] ss:$16 sps:$4 sm:$0xff]  }
 0x29b   : > { %v7916_v31 = vpack.c.bf16 %v2485_v62, %v2484_v56  ;;  %v7917_v32 = vpack.c.bf16 %v2487_v63, %v2486_v57  ;;  %v2489_v5 = vmul.f32 0.044194173, %v8117_v0  ;;  %v2491_v6 = vmul.f32 0.044194173, %v8181_v1  ;;  %4065 = vmatprep.mubr.bf16.mxu0 %v9639_v7  ;;  %4451 = vmatprep.mubr.bf16.mxu1 %v9639_v7  ;;  %v9650_v22 = vld [vmem:[%s10237_s19] ss:$16 sps:$4 sm:$0xff]  }
 0x29c   : > { %v9495_v23 = vld [vmem:[#allocation8 + $0x220] ss:$16 sps:$4 sm:$0xff]   ;;  %v9498_v24 = vld [vmem:[#allocation8 + $0x228] ss:$16 sps:$4 sm:$0xff]   ;;  %v9651_v27 = vld [vmem:[%s10237_s19 + $0x24] ss:$16 sps:$4 sm:$0xff]  }
 0x29d   : > { %2936 = vst [vmem:[%s10372_s26 + $0x1e0] sm:$0xff] %v7916_v31  ;;  %2937 = vst [vmem:[%s10372_s26 + $0x1e8] sm:$0xff] %v7917_v32  ;;  %v7918_v33 = vpack.c.bf16 %v2489_v5, %v2488_v2  ;;  %v7919_v34 = vpack.c.bf16 %v2491_v6, %v2490_v3  ;;  %v9503_v30 = vld [vmem:[#allocation8 + $0x244] ss:$16 sps:$4 sm:$0xff]   ;;  %v9506_v35 = vld [vmem:[#allocation8 + $0x24c] ss:$16 sps:$4 sm:$0xff]  }
 0x29e   : > { %v9501_v36 = vld [vmem:[#allocation8 + $0x240] ss:$16 sps:$4 sm:$0xff]   ;;  %v9504_v37 = vld [vmem:[#allocation8 + $0x248] ss:$16 sps:$4 sm:$0xff]   ;;  %v9509_v38 = vld [vmem:[#allocation8 + $0x264] ss:$16 sps:$4 sm:$0xff]  }
 0x29f   : > { %2938 = vst [vmem:[%s10372_s26 + $0x1f0] sm:$0xff] %v7918_v33  ;;  %2939 = vst [vmem:[%s10372_s26 + $0x1f8] sm:$0xff] %v7919_v34  ;;  %v9512_v39 = vld [vmem:[#allocation8 + $0x26c] ss:$16 sps:$4 sm:$0xff]   ;;  %v9652_v40 = vld [vmem:[%s10237_s19 + $0x20] ss:$16 sps:$4 sm:$0xff]  }
 0x2a0   : > { %v9653_v41 = vld [vmem:[%s10237_s19 + $0x44] ss:$16 sps:$4 sm:$0xff]   ;;  %v9507_v42 = vld [vmem:[#allocation8 + $0x260] ss:$16 sps:$4 sm:$0xff]   ;;  %v9510_v43 = vld [vmem:[#allocation8 + $0x268] ss:$16 sps:$4 sm:$0xff]  }
 0x2a1   : > { %v9515_v44 = vld [vmem:[#allocation8 + $0x284] ss:$16 sps:$4 sm:$0xff]   ;;  %v9518_v45 = vld [vmem:[#allocation8 + $0x28c] ss:$16 sps:$4 sm:$0xff]   ;;  %v9513_v46 = vld [vmem:[#allocation8 + $0x280] ss:$16 sps:$4 sm:$0xff]  }
 0x2a2   : > { %4066 = vmatmul.mubr.bf16.gmra.mrb[108].mxu0 %v9640_v8  ;;  %4452 = vmatmul.mubr.bf16.gmra.mrb[108].mxu1 %v9640_v8  ;;  %v9516_v47 = vld [vmem:[#allocation8 + $0x288] ss:$16 sps:$4 sm:$0xff]   ;;  %v9521_v48 = vld [vmem:[#allocation8 + $0x2a4] ss:$16 sps:$4 sm:$0xff]   ;;  %v9524_v49 = vld [vmem:[#allocation8 + $0x2ac] ss:$16 sps:$4 sm:$0xff]  }
 0x2a3   : > { %4075 = vmatprep.mubr.bf16.mxu0 %v9641_v9  ;;  %4461 = vmatprep.mubr.bf16.mxu1 %v9641_v9  ;;  %v9654_v50 = vld [vmem:[%s10237_s19 + $0x40] ss:$16 sps:$4 sm:$0xff]   ;;  %v9655_v51 = vld [vmem:[%s10237_s19 + $0x64] ss:$16 sps:$4 sm:$0xff]   ;;  %v9522_v53 = vld [vmem:[#allocation8 + $0x2a8] ss:$16 sps:$4 sm:$0xff]  }
 0x2a4   : > { %v9519_v52 = vld [vmem:[#allocation8 + $0x2a0] ss:$16 sps:$4 sm:$0xff]   ;;  %v9527_v54 = vld [vmem:[#allocation8 + $0x2c4] ss:$16 sps:$4 sm:$0xff]   ;;  %v9530_v55 = vld [vmem:[#allocation8 + $0x2cc] ss:$16 sps:$4 sm:$0xff]  }
 0x2a5   : > { %v9525_v56 = vld [vmem:[#allocation8 + $0x2c0] ss:$16 sps:$4 sm:$0xff]   ;;  %v9528_v57 = vld [vmem:[#allocation8 + $0x2c8] ss:$16 sps:$4 sm:$0xff]   ;;  %v9533_v58 = vld [vmem:[#allocation8 + $0x2e4] ss:$16 sps:$4 sm:$0xff]  }
 0x2a6   : > { %v9536_v59 = vld [vmem:[#allocation8 + $0x2ec] ss:$16 sps:$4 sm:$0xff]   ;;  %v9656_v60 = vld [vmem:[%s10237_s19 + $0x60] ss:$16 sps:$4 sm:$0xff]   ;;  %v9657_v61 = vld [vmem:[%s10237_s19 + $0x84] ss:$16 sps:$4 sm:$0xff]  }
 0x2a7   : > { %v9531_v62 = vld [vmem:[#allocation8 + $0x2e0] ss:$16 sps:$4 sm:$0xff]   ;;  %v9534_v63 = vld [vmem:[#allocation8 + $0x2e8] ss:$16 sps:$4 sm:$0xff]   ;;  %v9539_v0 = vld [vmem:[#allocation8 + $0x304] ss:$16 sps:$4 sm:$0xff]  }
 0x2a8   : > { %v9542_v1 = vld [vmem:[#allocation8 + $0x30c] ss:$16 sps:$4 sm:$0xff]   ;;  %v9537_v2 = vld [vmem:[#allocation8 + $0x300] ss:$16 sps:$4 sm:$0xff]   ;;  %v9540_v3 = vld [vmem:[#allocation8 + $0x308] ss:$16 sps:$4 sm:$0xff]  }
 0x2a9   : > { %v9545_v4 = vld [vmem:[#allocation8 + $0x324] ss:$16 sps:$4 sm:$0xff]   ;;  %v9548_v31 = vld [vmem:[#allocation8 + $0x32c] ss:$16 sps:$4 sm:$0xff]   ;;  %v9658_v32 = vld [vmem:[%s10237_s19 + $0x80] ss:$16 sps:$4 sm:$0xff]  }
 0x2aa   : > { %4076 = vmatmul.mubr.bf16.gmra.mrb[112].mxu0 %v9642_v10  ;;  %4462 = vmatmul.mubr.bf16.gmra.mrb[112].mxu1 %v9642_v10  ;;  %v9659_v5 = vld [vmem:[%s10237_s19 + $0xa4] ss:$16 sps:$4 sm:$0xff]   ;;  %v9543_v6 = vld [vmem:[#allocation8 + $0x320] ss:$16 sps:$4 sm:$0xff]   ;;  %v9546_v7 = vld [vmem:[#allocation8 + $0x328] ss:$16 sps:$4 sm:$0xff]  }
 0x2ab   : > { %4085 = vmatprep.mubr.bf16.mxu0 %v9643_v11  ;;  %4471 = vmatprep.mubr.bf16.mxu1 %v9643_v11  ;;  %v9551_v33 = vld [vmem:[#allocation8 + $0x344] ss:$16 sps:$4 sm:$0xff]   ;;  %v9554_v34 = vld [vmem:[#allocation8 + $0x34c] ss:$16 sps:$4 sm:$0xff]   ;;  %v9549_v8 = vld [vmem:[#allocation8 + $0x340] ss:$16 sps:$4 sm:$0xff]  }
 0x2ac   : > { %v9552_v9 = vld [vmem:[#allocation8 + $0x348] ss:$16 sps:$4 sm:$0xff]   ;;  %v9557_v10 = vld [vmem:[#allocation8 + $0x364] ss:$16 sps:$4 sm:$0xff]   ;;  %v9560_v11 = vld [vmem:[#allocation8 + $0x36c] ss:$16 sps:$4 sm:$0xff]  }
 0x2b2   : > { %4086 = vmatmul.mubr.bf16.gmra.mrb[116].mxu0 %v9644_v12  ;;  %4472 = vmatmul.mubr.bf16.gmra.mrb[116].mxu1 %v9644_v12  ;;  %v9660_v12 = vld [vmem:[%s10237_s19 + $0xa0] ss:$16 sps:$4 sm:$0xff]  }
 0x2b3   : > { %4095 = vmatprep.mubr.bf16.mxu0 %v9645_v13  ;;  %4481 = vmatprep.mubr.bf16.mxu1 %v9645_v13  ;;  %v9661_v13 = vld [vmem:[%s10237_s19 + $0xc4] ss:$16 sps:$4 sm:$0xff]  }
 0x2ba   : > { %4096 = vmatmul.mubr.bf16.gmra.mrb[120].mxu0 %v9646_v14  ;;  %4482 = vmatmul.mubr.bf16.gmra.mrb[120].mxu1 %v9646_v14  ;;  %v9555_v14 = vld [vmem:[#allocation8 + $0x360] ss:$16 sps:$4 sm:$0xff]  }
 0x2bb   : > { %4105 = vmatprep.mubr.bf16.mxu0 %v9647_v15  ;;  %4491 = vmatprep.mubr.bf16.mxu1 %v9647_v15  ;;  %v9558_v15 = vld [vmem:[#allocation8 + $0x368] ss:$16 sps:$4 sm:$0xff]  }
 0x2c2   : > { %4106 = vmatmul.mubr.bf16.gmra.mrb[124].mxu0 %v9648_v16  ;;  %4492 = vmatmul.mubr.bf16.gmra.mrb[124].mxu1 %v9648_v16  ;;  %v9563_v16 = vld [vmem:[#allocation8 + $0x384] ss:$16 sps:$4 sm:$0xff]  }
 0x2c3   : > { %5772 = vmatprep.mubr.bf16.mxu0 %v9649_v17  ;;  %6158 = vmatprep.mubr.bf16.mxu1 %v9649_v17  ;;  %v9566_v17 = vld [vmem:[#allocation8 + $0x38c] ss:$16 sps:$4 sm:$0xff]  }
 0x2ca   : > { %5773 = vmatmul.mubr.bf16.vlgmr.msra.gmra.mrb[128].mxu0 %v9650_v22  ;;  %6159 = vmatmul.mubr.bf16.vlgmr.msra.gmra.mrb[128].mxu1 %v9650_v22  ;;  %v9662_v22 = vld [vmem:[%s10237_s19 + $0xc0] ss:$16 sps:$4 sm:$0xff]  }
 0x2cb   : > { %5934 = vmatpush1.bf16.msra.mxu0 %v9489_v18  ;;  %6320 = vmatpush1.bf16.msra.mxu1 %v9492_v19  ;;  %v9561_v18 = vld [vmem:[#allocation8 + $0x380] ss:$16 sps:$4 sm:$0xff]   ;;  %v9564_v19 = vld [vmem:[#allocation8 + $0x388] ss:$16 sps:$4 sm:$0xff]  }
 0x2cc   : > { %5782 = vmatprep.mubr.bf16.mxu0 %v9651_v27  ;;  %6168 = vmatprep.mubr.bf16.mxu1 %v9651_v27  ;;  %v9570_v27 = vld [vmem:[#allocation8 + $0x3a8] ss:$16 sps:$4 sm:$0xff]  }
 0x2cd   : > { %5935 = vmatprep.subr.bf16.mxu0 %v9497_v20  ;;  %6321 = vmatprep.subr.bf16.mxu1 %v9500_v21  ;;  %v9569_v20 = vld [vmem:[#allocation8 + $0x3a4] ss:$16 sps:$4 sm:$0xff]   ;;  %v9572_v21 = vld [vmem:[#allocation8 + $0x3ac] ss:$16 sps:$4 sm:$0xff]  }
 0x2cf   : > { %5936 = vmatpush1.bf16.msra.mxu0 %v9495_v23  ;;  %6322 = vmatpush1.bf16.msra.mxu1 %v9498_v24  ;;  %v9663_v23 = vld [vmem:[%s10237_s19 + $0xe4] ss:$16 sps:$4 sm:$0xff]   ;;  %v9567_v24 = vld [vmem:[#allocation8 + $0x3a0] ss:$16 sps:$4 sm:$0xff]  }
 0x2d0   : > { %5937 = vmatprep.subr.bf16.mxu0 %v9503_v30  ;;  %6323 = vmatprep.subr.bf16.mxu1 %v9506_v35  ;;  %v9575_v30 = vld [vmem:[#allocation8 + $0x3c4] ss:$16 sps:$4 sm:$0xff]   ;;  %v9578_v35 = vld [vmem:[#allocation8 + $0x3cc] ss:$16 sps:$4 sm:$0xff]  }
 0x2d2   : > { %5783 = vmatmul.mubr.bf16.gmra.mrb[132].mxu0 %v9652_v40  ;;  %6169 = vmatmul.mubr.bf16.gmra.mrb[132].mxu1 %v9652_v40  ;;  %v9664_v40 = vld [vmem:[%s10237_s19 + $0xe0] ss:$16 sps:$4 sm:$0xff]  }
 0x2d3   : > { %5792 = vmatprep.mubr.bf16.mxu0 %v9653_v41  ;;  %6178 = vmatprep.mubr.bf16.mxu1 %v9653_v41  ;;  %v9665_v41 = vld [vmem:[%s10237_s19 + $0x104] ss:$16 sps:$4 sm:$0xff]  }
 0x2d4   : > { %5938 = vmatpush1.bf16.msra.mxu0 %v9501_v36  ;;  %6324 = vmatpush1.bf16.msra.mxu1 %v9504_v37  ;;  %v9573_v36 = vld [vmem:[#allocation8 + $0x3c0] ss:$16 sps:$4 sm:$0xff]   ;;  %v9576_v37 = vld [vmem:[#allocation8 + $0x3c8] ss:$16 sps:$4 sm:$0xff]  }
 0x2d5   : > { %5939 = vmatprep.subr.bf16.mxu0 %v9509_v38  ;;  %6325 = vmatprep.subr.bf16.mxu1 %v9512_v39  ;;  %v9581_v38 = vld [vmem:[#allocation8 + $0x3e4] ss:$16 sps:$4 sm:$0xff]   ;;  %v9584_v39 = vld [vmem:[#allocation8 + $0x3ec] ss:$16 sps:$4 sm:$0xff]  }
 0x2d8   : > { %5940 = vmatpush1.bf16.msra.mxu0 %v9507_v42  ;;  %6326 = vmatpush1.bf16.msra.mxu1 %v9510_v43  ;;  %v9579_v42 = vld [vmem:[#allocation8 + $0x3e0] ss:$16 sps:$4 sm:$0xff]   ;;  %v9582_v43 = vld [vmem:[#allocation8 + $0x3e8] ss:$16 sps:$4 sm:$0xff]  }
 0x2d9   : > { %5941 = vmatprep.subr.bf16.mxu0 %v9515_v44  ;;  %6327 = vmatprep.subr.bf16.mxu1 %v9518_v45  ;;  %v9666_v44 = vld [vmem:[%s10237_s19 + $0x100] ss:$16 sps:$4 sm:$0xff]   ;;  %v9667_v45 = vld [vmem:[%s10237_s19 + $0x124] ss:$16 sps:$4 sm:$0xff]  }
 0x2da   : > { %5793 = vmatmul.mubr.bf16.gmra.mrb[136].mxu0 %v9654_v50  ;;  %6179 = vmatmul.mubr.bf16.gmra.mrb[136].mxu1 %v9654_v50 }
 0x2db   : > { %5802 = vmatprep.mubr.bf16.mxu0 %v9655_v51  ;;  %6188 = vmatprep.mubr.bf16.mxu1 %v9655_v51 }
 0x2dc   : > { %5942 = vmatpush1.bf16.msra.mxu0 %v9513_v46  ;;  %6328 = vmatpush1.bf16.msra.mxu1 %v9516_v47  ;;  %v9668_v46 = vld [vmem:[%s10237_s19 + $0x120] ss:$16 sps:$4 sm:$0xff]   ;;  %v9669_v47 = vld [vmem:[%s10237_s19 + $0x144] ss:$16 sps:$4 sm:$0xff]  }
 0x2dd   : > { %5943 = vmatprep.subr.bf16.mxu0 %v9521_v48  ;;  %6329 = vmatprep.subr.bf16.mxu1 %v9524_v49  ;;  %v3068_v48 = vld [vmem:[%s11220_s4] sm:$0xf] }
 0x2de   : > { %v9670_v49 = vld [vmem:[%s10237_s19 + $0x140] ss:$16 sps:$4 sm:$0xff]   ;;  %v10623_v50 = vrot.slane %v3068_v48, %v10336_v25  ;;  %v10626_v51 = vrot.slane %v3068_v48, %v10338_v26 }
 0x2e0   : > { %5944 = vmatpush1.bf16.msra.mxu0 %v9519_v52  ;;  %6330 = vmatpush1.bf16.msra.mxu1 %v9522_v53  ;;  %v10629_v52 = vrot.slane %v3068_v48, %v10343_v28  ;;  %v10632_v53 = vrot.slane %v3068_v48, %v10345_v29 }
 0x2e1   : > { %5945 = vmatprep.subr.bf16.mxu0 %v9527_v54  ;;  %6331 = vmatprep.subr.bf16.mxu1 %v9530_v55  ;;  %v9671_v54 = vld [vmem:[%s10237_s19 + $0x164] ss:$16 sps:$4 sm:$0xff]  }
 0x2e2   : > { %5803 = vmatmul.mubr.bf16.gmra.mrb[140].mxu0 %v9656_v60  ;;  %6189 = vmatmul.mubr.bf16.gmra.mrb[140].mxu1 %v9656_v60 }
 0x2e3   : > { %5812 = vmatprep.mubr.bf16.mxu0 %v9657_v61  ;;  %6198 = vmatprep.mubr.bf16.mxu1 %v9657_v61 }
 0x2e4   : > { %5946 = vmatpush1.bf16.msra.mxu0 %v9525_v56  ;;  %6332 = vmatpush1.bf16.msra.mxu1 %v9528_v57 }
 0x2e5   : > { %5947 = vmatprep.subr.bf16.mxu0 %v9533_v58  ;;  %6333 = vmatprep.subr.bf16.mxu1 %v9536_v59 }
 0x2e8   : > { %5948 = vmatpush1.bf16.msra.mxu0 %v9531_v62  ;;  %6334 = vmatpush1.bf16.msra.mxu1 %v9534_v63 }
 0x2e9   : > { %5949 = vmatprep.subr.bf16.mxu0 %v9539_v0  ;;  %6335 = vmatprep.subr.bf16.mxu1 %v9542_v1 }
 0x2ea   : > { %5813 = vmatmul.mubr.bf16.gmra.mrb[144].mxu0 %v9658_v32  ;;  %6199 = vmatmul.mubr.bf16.gmra.mrb[144].mxu1 %v9658_v32 }
 0x2eb   : > { %5822 = vmatprep.mubr.bf16.mxu0 %v9659_v5  ;;  %6208 = vmatprep.mubr.bf16.mxu1 %v9659_v5 }
 0x2ec   : > { %5950 = vmatpush1.bf16.msra.mxu0 %v9537_v2  ;;  %6336 = vmatpush1.bf16.msra.mxu1 %v9540_v3 }
 0x2ed   : > { %5951 = vmatprep.subr.bf16.mxu0 %v9545_v4  ;;  %6337 = vmatprep.subr.bf16.mxu1 %v9548_v31 }
 0x2f0   : > { %5952 = vmatpush1.bf16.msra.mxu0 %v9543_v6  ;;  %6338 = vmatpush1.bf16.msra.mxu1 %v9546_v7  ;;  %v9672_v7 = vld [vmem:[%s10237_s19 + $0x160] ss:$16 sps:$4 sm:$0xff]  }
 0x2f1   : > { %5953 = vmatprep.subr.bf16.mxu0 %v9551_v33  ;;  %6339 = vmatprep.subr.bf16.mxu1 %v9554_v34 }
 0x2f2   : > { %5823 = vmatmul.mubr.bf16.gmra.mrb[148].mxu0 %v9660_v12  ;;  %6209 = vmatmul.mubr.bf16.gmra.mrb[148].mxu1 %v9660_v12 }
 0x2f3   : > { %5832 = vmatprep.mubr.bf16.mxu0 %v9661_v13  ;;  %6218 = vmatprep.mubr.bf16.mxu1 %v9661_v13 }
 0x2f4   : > { %5954 = vmatpush1.bf16.msra.mxu0 %v9549_v8  ;;  %6340 = vmatpush1.bf16.msra.mxu1 %v9552_v9  ;;  %v9673_v8 = vld [vmem:[%s10237_s19 + $0x184] ss:$16 sps:$4 sm:$0xff]  }
 0x2f5   : > { %5955 = vmatprep.subr.bf16.mxu0 %v9557_v10  ;;  %6341 = vmatprep.subr.bf16.mxu1 %v9560_v11 }
 0x2f8   : > { %5956 = vmatpush1.bf16.msra.mxu0 %v9555_v14  ;;  %6342 = vmatpush1.bf16.msra.mxu1 %v9558_v15 }
 0x2f9   : > { %5957 = vmatprep.subr.bf16.mxu0 %v9563_v16  ;;  %6343 = vmatprep.subr.bf16.mxu1 %v9566_v17 }
 0x2fa   : > { %5833 = vmatmul.mubr.bf16.gmra.mrb[152].mxu0 %v9662_v22  ;;  %6219 = vmatmul.mubr.bf16.gmra.mrb[152].mxu1 %v9662_v22 }
 0x2fb   : > { %5842 = vmatprep.mubr.bf16.mxu0 %v9663_v23  ;;  %6228 = vmatprep.mubr.bf16.mxu1 %v9663_v23 }
 0x2fc   : > { %5958 = vmatpush1.bf16.msra.mxu0 %v9561_v18  ;;  %6344 = vmatpush1.bf16.msra.mxu1 %v9564_v19 }
 0x2fd   : > { %5959 = vmatprep.subr.bf16.mxu0 %v9569_v20  ;;  %6345 = vmatprep.subr.bf16.mxu1 %v9572_v21 }
 0x300   : > { %5960 = vmatpush1.bf16.msra.mxu0 %v9567_v24  ;;  %6346 = vmatpush1.bf16.msra.mxu1 %v9570_v27 }
 0x301   : > { %5961 = vmatprep.subr.bf16.mxu0 %v9575_v30  ;;  %6347 = vmatprep.subr.bf16.mxu1 %v9578_v35  ;;  %v9674_v35 = vld [vmem:[%s10237_s19 + $0x180] ss:$16 sps:$4 sm:$0xff]  }
 0x302   : > { %5843 = vmatmul.mubr.bf16.gmra.mrb[156].mxu0 %v9664_v40  ;;  %6229 = vmatmul.mubr.bf16.gmra.mrb[156].mxu1 %v9664_v40 }
 0x303   : > { %5852 = vmatprep.mubr.bf16.mxu0 %v9665_v41  ;;  %6238 = vmatprep.mubr.bf16.mxu1 %v9665_v41 }
 0x304   : > { %5962 = vmatpush1.bf16.msra.mxu0 %v9573_v36  ;;  %6348 = vmatpush1.bf16.msra.mxu1 %v9576_v37 }
 0x305   : > { %5963 = vmatprep.subr.bf16.mxu0 %v9581_v38  ;;  %6349 = vmatprep.subr.bf16.mxu1 %v9584_v39  ;;  %v9675_v38 = vld [vmem:[%s10237_s19 + $0x1a4] ss:$16 sps:$4 sm:$0xff]  }
 0x308   : > { %5964 = vmatpush1.bf16.msra.mxu0 %v9579_v42  ;;  %6350 = vmatpush1.bf16.msra.mxu1 %v9582_v43 }
 0x30a   : > { %5853 = vmatmul.mubr.bf16.gmra.mrb[160].mxu0 %v9666_v44  ;;  %6239 = vmatmul.mubr.bf16.gmra.mrb[160].mxu1 %v9666_v44 }
 0x30b   : > { %5862 = vmatprep.mubr.bf16.mxu0 %v9667_v45  ;;  %6248 = vmatprep.mubr.bf16.mxu1 %v9667_v45 }
 0x312   : > { %5863 = vmatmul.mubr.bf16.gmra.mrb[164].mxu0 %v9668_v46  ;;  %6249 = vmatmul.mubr.bf16.gmra.mrb[164].mxu1 %v9668_v46 }
 0x313   : > { %5872 = vmatprep.mubr.bf16.mxu0 %v9669_v47  ;;  %6258 = vmatprep.mubr.bf16.mxu1 %v9669_v47 }
 0x31a   : > { %5873 = vmatmul.mubr.bf16.gmra.mrb[168].mxu0 %v9670_v49  ;;  %6259 = vmatmul.mubr.bf16.gmra.mrb[168].mxu1 %v9670_v49 }
 0x31b   : > { %5882 = vmatprep.mubr.bf16.mxu0 %v9671_v54  ;;  %6268 = vmatprep.mubr.bf16.mxu1 %v9671_v54 }
 0x31d   : > { %v3957_v55 = vpop.f32.mrb[64].mxu0  ;;  %v4343_v56 = vpop.f32.mrb[64].mxu1 }
 0x31e   : > { %v8182_v57 = vadd.f32 %v3957_v55, %v10623_v50  ;;  %v8246_v58 = vadd.f32 %v4343_v56, %v10626_v51  ;;  %v3959_v59 = vpop.f32.mrb[65].mxu0  ;;  %v4345_v60 = vpop.f32.mrb[65].mxu1 }
 0x31f   : > { %v8183_v61 = vadd.f32 %v3959_v59, %v10629_v52  ;;  %v8247_v62 = vadd.f32 %v4345_v60, %v10632_v53  ;;  %v3961_v63 = vpop.f32.mrb[66].mxu0  ;;  %v4347_v0 = vpop.f32.mrb[66].mxu1 }
 0x320   : > { %v8184_v1 = vadd.f32 %v3961_v63, %v10623_v50  ;;  %v8248_v2 = vadd.f32 %v4347_v0, %v10626_v51  ;;  %v3963_v3 = vpop.f32.mrb[67].mxu0  ;;  %v4349_v4 = vpop.f32.mrb[67].mxu1  ;;  %v9677_v0 = vld [vmem:[%s10237_s19 + $0x1c4] ss:$16 sps:$4 sm:$0xff]  }
 0x321   : > { %v7920_v31 = vpack.c.bf16 %v8183_v61, %v8182_v57  ;;  %v7921_v32 = vpack.c.bf16 %v8247_v62, %v8246_v58  ;;  %v8185_v5 = vadd.f32 %v3963_v3, %v10629_v52  ;;  %v8249_v6 = vadd.f32 %v4349_v4, %v10632_v53  ;;  %v9676_v61 = vld [vmem:[%s10237_s19 + $0x1a0] ss:$16 sps:$4 sm:$0xff]  }
 0x322   : > { %5883 = vmatmul.mubr.bf16.gmra.mrb[172].mxu0 %v9672_v7  ;;  %6269 = vmatmul.mubr.bf16.gmra.mrb[172].mxu1 %v9672_v7 }
 0x323   : > { %4886 = vst [vmem:[%s10645_s22] sm:$0xff] %v7920_v31  ;;  %4887 = vst [vmem:[%s10645_s22 + $0x8] sm:$0xff] %v7921_v32  ;;  %v7922_v33 = vpack.c.bf16 %v8185_v5, %v8184_v1  ;;  %v7923_v34 = vpack.c.bf16 %v8249_v6, %v8248_v2  ;;  %5892 = vmatprep.mubr.bf16.mxu0 %v9673_v8  ;;  %6278 = vmatprep.mubr.bf16.mxu1 %v9673_v8 }
 0x325   : > { %4888 = vst [vmem:[%s10645_s22 + $0x10] sm:$0xff] %v7922_v33  ;;  %4889 = vst [vmem:[%s10645_s22 + $0x18] sm:$0xff] %v7923_v34  ;;  %v3967_v9 = vpop.f32.mrb[68].mxu0  ;;  %v4353_v10 = vpop.f32.mrb[68].mxu1 }
 0x326   : > { %v8186_v11 = vadd.f32 %v3967_v9, %v10623_v50  ;;  %v8250_v12 = vadd.f32 %v4353_v10, %v10626_v51  ;;  %v3969_v13 = vpop.f32.mrb[69].mxu0  ;;  %v4355_v14 = vpop.f32.mrb[69].mxu1 }
 0x327   : > { %v8187_v15 = vadd.f32 %v3969_v13, %v10629_v52  ;;  %v8251_v16 = vadd.f32 %v4355_v14, %v10632_v53  ;;  %v3971_v17 = vpop.f32.mrb[70].mxu0  ;;  %v4357_v18 = vpop.f32.mrb[70].mxu1 }
 0x328   : > { %v8188_v19 = vadd.f32 %v3971_v17, %v10623_v50  ;;  %v8252_v20 = vadd.f32 %v4357_v18, %v10626_v51  ;;  %v3973_v21 = vpop.f32.mrb[71].mxu0  ;;  %v4359_v22 = vpop.f32.mrb[71].mxu1  ;;  %v9679_v18 = vld [vmem:[%s10237_s19 + $0x1e4] ss:$16 sps:$4 sm:$0xff]  }
 0x329   : > { %v7924_v23 = vpack.c.bf16 %v8187_v15, %v8186_v11  ;;  %v7925_v24 = vpack.c.bf16 %v8251_v16, %v8250_v12  ;;  %v8189_v27 = vadd.f32 %v3973_v21, %v10629_v52  ;;  %v8253_v30 = vadd.f32 %v4359_v22, %v10632_v53  ;;  %v9678_v15 = vld [vmem:[%s10237_s19 + $0x1c0] ss:$16 sps:$4 sm:$0xff]  }
 0x32a   : > { %5893 = vmatmul.mubr.bf16.gmra.mrb[176].mxu0 %v9674_v35  ;;  %6279 = vmatmul.mubr.bf16.gmra.mrb[176].mxu1 %v9674_v35 }
 0x32b   : > { %4890 = vst [vmem:[%s10645_s22 + $0x20] sm:$0xff] %v7924_v23  ;;  %4891 = vst [vmem:[%s10645_s22 + $0x28] sm:$0xff] %v7925_v24  ;;  %v7926_v36 = vpack.c.bf16 %v8189_v27, %v8188_v19  ;;  %v7927_v37 = vpack.c.bf16 %v8253_v30, %v8252_v20  ;;  %5902 = vmatprep.mubr.bf16.mxu0 %v9675_v38  ;;  %6288 = vmatprep.mubr.bf16.mxu1 %v9675_v38 }
 0x32d   : > { %4892 = vst [vmem:[%s10645_s22 + $0x30] sm:$0xff] %v7926_v36  ;;  %4893 = vst [vmem:[%s10645_s22 + $0x38] sm:$0xff] %v7927_v37  ;;  %v3977_v39 = vpop.f32.mrb[72].mxu0  ;;  %v4363_v40 = vpop.f32.mrb[72].mxu1 }
 0x32e   : > { %v8190_v41 = vadd.f32 %v3977_v39, %v10623_v50  ;;  %v8254_v42 = vadd.f32 %v4363_v40, %v10626_v51  ;;  %v3979_v43 = vpop.f32.mrb[73].mxu0  ;;  %v4365_v44 = vpop.f32.mrb[73].mxu1 }
 0x32f   : > { %v8191_v45 = vadd.f32 %v3979_v43, %v10629_v52  ;;  %v8255_v46 = vadd.f32 %v4365_v44, %v10632_v53  ;;  %v3981_v47 = vpop.f32.mrb[74].mxu0  ;;  %v4367_v48 = vpop.f32.mrb[74].mxu1 }
 0x330   : > { %v8192_v49 = vadd.f32 %v3981_v47, %v10623_v50  ;;  %v8256_v54 = vadd.f32 %v4367_v48, %v10626_v51  ;;  %v3983_v55 = vpop.f32.mrb[75].mxu0  ;;  %v4369_v56 = vpop.f32.mrb[75].mxu1  ;;  %v9681_v48 = vld [vmem:[%s10237_s19 + $0xc] ss:$16 sps:$4 sm:$0xff]  }
 0x331   : > { %v7928_v57 = vpack.c.bf16 %v8191_v45, %v8190_v41  ;;  %v7929_v58 = vpack.c.bf16 %v8255_v46, %v8254_v42  ;;  %v8193_v59 = vadd.f32 %v3983_v55, %v10629_v52  ;;  %v8257_v60 = vadd.f32 %v4369_v56, %v10632_v53  ;;  %v9680_v45 = vld [vmem:[%s10237_s19 + $0x1e0] ss:$16 sps:$4 sm:$0xff]  }
 0x332   : > { %5903 = vmatmul.mubr.bf16.gmra.mrb[180].mxu0 %v9676_v61  ;;  %6289 = vmatmul.mubr.bf16.gmra.mrb[180].mxu1 %v9676_v61 }
 0x333   : > { %4894 = vst [vmem:[%s10645_s22 + $0x40] sm:$0xff] %v7928_v57  ;;  %4895 = vst [vmem:[%s10645_s22 + $0x48] sm:$0xff] %v7929_v58  ;;  %v7930_v62 = vpack.c.bf16 %v8193_v59, %v8192_v49  ;;  %v7931_v63 = vpack.c.bf16 %v8257_v60, %v8256_v54  ;;  %5912 = vmatprep.mubr.bf16.mxu0 %v9677_v0  ;;  %6298 = vmatprep.mubr.bf16.mxu1 %v9677_v0 }
 0x335   : > { %4896 = vst [vmem:[%s10645_s22 + $0x50] sm:$0xff] %v7930_v62  ;;  %4897 = vst [vmem:[%s10645_s22 + $0x58] sm:$0xff] %v7931_v63  ;;  %v3987_v1 = vpop.f32.mrb[76].mxu0  ;;  %v4373_v2 = vpop.f32.mrb[76].mxu1 }
 0x336   : > { %v8194_v3 = vadd.f32 %v3987_v1, %v10623_v50  ;;  %v8258_v4 = vadd.f32 %v4373_v2, %v10626_v51  ;;  %v3989_v31 = vpop.f32.mrb[77].mxu0  ;;  %v4375_v32 = vpop.f32.mrb[77].mxu1 }
 0x337   : > { %v8195_v5 = vadd.f32 %v3989_v31, %v10629_v52  ;;  %v8259_v6 = vadd.f32 %v4375_v32, %v10632_v53  ;;  %v3991_v7 = vpop.f32.mrb[78].mxu0  ;;  %v4377_v33 = vpop.f32.mrb[78].mxu1 }
 0x338   : > { %v8196_v34 = vadd.f32 %v3991_v7, %v10623_v50  ;;  %v8260_v8 = vadd.f32 %v4377_v33, %v10626_v51  ;;  %v3993_v9 = vpop.f32.mrb[79].mxu0  ;;  %v4379_v10 = vpop.f32.mrb[79].mxu1  ;;  %v9683_v33 = vld [vmem:[%s10237_s19 + $0x2c] ss:$16 sps:$4 sm:$0xff]  }
 0x339   : > { %v7932_v11 = vpack.c.bf16 %v8195_v5, %v8194_v3  ;;  %v7933_v12 = vpack.c.bf16 %v8259_v6, %v8258_v4  ;;  %v8197_v13 = vadd.f32 %v3993_v9, %v10629_v52  ;;  %v8261_v14 = vadd.f32 %v4379_v10, %v10632_v53  ;;  %v9682_v5 = vld [vmem:[%s10237_s19 + $0x8] ss:$16 sps:$4 sm:$0xff]  }
 0x33a   : > { %5913 = vmatmul.mubr.bf16.gmra.mrb[184].mxu0 %v9678_v15  ;;  %6299 = vmatmul.mubr.bf16.gmra.mrb[184].mxu1 %v9678_v15 }
 0x33b   : > { %4898 = vst [vmem:[%s10645_s22 + $0x60] sm:$0xff] %v7932_v11  ;;  %4899 = vst [vmem:[%s10645_s22 + $0x68] sm:$0xff] %v7933_v12  ;;  %v7934_v16 = vpack.c.bf16 %v8197_v13, %v8196_v34  ;;  %v7935_v17 = vpack.c.bf16 %v8261_v14, %v8260_v8  ;;  %5922 = vmatprep.mubr.bf16.mxu0 %v9679_v18  ;;  %6308 = vmatprep.mubr.bf16.mxu1 %v9679_v18 }
 0x33d   : > { %4900 = vst [vmem:[%s10645_s22 + $0x70] sm:$0xff] %v7934_v16  ;;  %4901 = vst [vmem:[%s10645_s22 + $0x78] sm:$0xff] %v7935_v17  ;;  %v3997_v19 = vpop.f32.mrb[80].mxu0  ;;  %v4383_v20 = vpop.f32.mrb[80].mxu1 }
 0x33e   : > { %v8198_v21 = vadd.f32 %v3997_v19, %v10623_v50  ;;  %v8262_v22 = vadd.f32 %v4383_v20, %v10626_v51  ;;  %v3999_v23 = vpop.f32.mrb[81].mxu0  ;;  %v4385_v24 = vpop.f32.mrb[81].mxu1 }
 0x33f   : > { %v8199_v27 = vadd.f32 %v3999_v23, %v10629_v52  ;;  %v8263_v30 = vadd.f32 %v4385_v24, %v10632_v53  ;;  %v4001_v35 = vpop.f32.mrb[82].mxu0  ;;  %v4387_v36 = vpop.f32.mrb[82].mxu1 }
 0x340   : > { %v8200_v37 = vadd.f32 %v4001_v35, %v10623_v50  ;;  %v8264_v38 = vadd.f32 %v4387_v36, %v10626_v51  ;;  %v4003_v39 = vpop.f32.mrb[83].mxu0  ;;  %v4389_v40 = vpop.f32.mrb[83].mxu1  ;;  %v9685_v36 = vld [vmem:[%s10237_s19 + $0x4c] ss:$16 sps:$4 sm:$0xff]  }
 0x341   : > { %v7936_v41 = vpack.c.bf16 %v8199_v27, %v8198_v21  ;;  %v7937_v42 = vpack.c.bf16 %v8263_v30, %v8262_v22  ;;  %v8201_v43 = vadd.f32 %v4003_v39, %v10629_v52  ;;  %v8265_v44 = vadd.f32 %v4389_v40, %v10632_v53  ;;  %v9684_v27 = vld [vmem:[%s10237_s19 + $0x28] ss:$16 sps:$4 sm:$0xff]  }
 0x342   : > { %5923 = vmatmul.mubr.bf16.gmra.mrb[188].mxu0 %v9680_v45  ;;  %6309 = vmatmul.mubr.bf16.gmra.mrb[188].mxu1 %v9680_v45 }
 0x343   : > { %4902 = vst [vmem:[%s10645_s22 + $0x80] sm:$0xff] %v7936_v41  ;;  %4903 = vst [vmem:[%s10645_s22 + $0x88] sm:$0xff] %v7937_v42  ;;  %v7938_v46 = vpack.c.bf16 %v8201_v43, %v8200_v37  ;;  %v7939_v47 = vpack.c.bf16 %v8265_v44, %v8264_v38  ;;  %5965 = vmatprep.mubr.bf16.mxu0 %v9681_v48  ;;  %6351 = vmatprep.mubr.bf16.mxu1 %v9681_v48 }
 0x345   : > { %4904 = vst [vmem:[%s10645_s22 + $0x90] sm:$0xff] %v7938_v46  ;;  %4905 = vst [vmem:[%s10645_s22 + $0x98] sm:$0xff] %v7939_v47  ;;  %v4007_v49 = vpop.f32.mrb[84].mxu0  ;;  %v4393_v54 = vpop.f32.mrb[84].mxu1 }
 0x346   : > { %v8202_v55 = vadd.f32 %v4007_v49, %v10623_v50  ;;  %v8266_v56 = vadd.f32 %v4393_v54, %v10626_v51  ;;  %v4009_v57 = vpop.f32.mrb[85].mxu0  ;;  %v4395_v58 = vpop.f32.mrb[85].mxu1 }
 0x347   : > { %v8203_v59 = vadd.f32 %v4009_v57, %v10629_v52  ;;  %v8267_v60 = vadd.f32 %v4395_v58, %v10632_v53  ;;  %v4011_v61 = vpop.f32.mrb[86].mxu0  ;;  %v4397_v62 = vpop.f32.mrb[86].mxu1 }
 0x348   : > { %v8204_v63 = vadd.f32 %v4011_v61, %v10623_v50  ;;  %v8268_v0 = vadd.f32 %v4397_v62, %v10626_v51  ;;  %v4013_v1 = vpop.f32.mrb[87].mxu0  ;;  %v4399_v2 = vpop.f32.mrb[87].mxu1  ;;  %v9687_v62 = vld [vmem:[%s10237_s19 + $0x6c] ss:$16 sps:$4 sm:$0xff]  }
 0x349   : > { %v7940_v3 = vpack.c.bf16 %v8203_v59, %v8202_v55  ;;  %v7941_v4 = vpack.c.bf16 %v8267_v60, %v8266_v56  ;;  %v8205_v31 = vadd.f32 %v4013_v1, %v10629_v52  ;;  %v8269_v32 = vadd.f32 %v4399_v2, %v10632_v53  ;;  %v9686_v59 = vld [vmem:[%s10237_s19 + $0x48] ss:$16 sps:$4 sm:$0xff]  }
 0x34a   : > { %5966 = vmatmul.mubr.bf16.vlgmr.msra.gmra.mrb[128].mxu0 %v9682_v5  ;;  %6352 = vmatmul.mubr.bf16.vlgmr.msra.gmra.mrb[128].mxu1 %v9682_v5 }
 0x34b   : > { %4906 = vst [vmem:[%s10645_s22 + $0xa0] sm:$0xff] %v7940_v3  ;;  %4907 = vst [vmem:[%s10645_s22 + $0xa8] sm:$0xff] %v7941_v4  ;;  %v7942_v6 = vpack.c.bf16 %v8205_v31, %v8204_v63  ;;  %v7943_v7 = vpack.c.bf16 %v8269_v32, %v8268_v0  ;;  %5975 = vmatprep.mubr.bf16.mxu0 %v9683_v33  ;;  %6361 = vmatprep.mubr.bf16.mxu1 %v9683_v33 }
 0x34d   : > { %4908 = vst [vmem:[%s10645_s22 + $0xb0] sm:$0xff] %v7942_v6  ;;  %4909 = vst [vmem:[%s10645_s22 + $0xb8] sm:$0xff] %v7943_v7  ;;  %v4017_v34 = vpop.f32.mrb[88].mxu0  ;;  %v4403_v8 = vpop.f32.mrb[88].mxu1 }
 0x34e   : > { %v8206_v9 = vadd.f32 %v4017_v34, %v10623_v50  ;;  %v8270_v10 = vadd.f32 %v4403_v8, %v10626_v51  ;;  %v4019_v11 = vpop.f32.mrb[89].mxu0  ;;  %v4405_v12 = vpop.f32.mrb[89].mxu1 }
 0x34f   : > { %v8207_v13 = vadd.f32 %v4019_v11, %v10629_v52  ;;  %v8271_v14 = vadd.f32 %v4405_v12, %v10632_v53  ;;  %v4021_v15 = vpop.f32.mrb[90].mxu0  ;;  %v4407_v16 = vpop.f32.mrb[90].mxu1 }
 0x350   : > { %v8208_v17 = vadd.f32 %v4021_v15, %v10623_v50  ;;  %v8272_v18 = vadd.f32 %v4407_v16, %v10626_v51  ;;  %v4023_v19 = vpop.f32.mrb[91].mxu0  ;;  %v4409_v20 = vpop.f32.mrb[91].mxu1  ;;  %v9689_v16 = vld [vmem:[%s10237_s19 + $0x8c] ss:$16 sps:$4 sm:$0xff]  }
 0x351   : > { %v7944_v21 = vpack.c.bf16 %v8207_v13, %v8206_v9  ;;  %v7945_v22 = vpack.c.bf16 %v8271_v14, %v8270_v10  ;;  %v8209_v23 = vadd.f32 %v4023_v19, %v10629_v52  ;;  %v8273_v24 = vadd.f32 %v4409_v20, %v10632_v53  ;;  %v9688_v13 = vld [vmem:[%s10237_s19 + $0x68] ss:$16 sps:$4 sm:$0xff]  }
 0x352   : > { %5976 = vmatmul.mubr.bf16.gmra.mrb[132].mxu0 %v9684_v27  ;;  %6362 = vmatmul.mubr.bf16.gmra.mrb[132].mxu1 %v9684_v27 }
 0x353   : > { %4910 = vst [vmem:[%s10645_s22 + $0xc0] sm:$0xff] %v7944_v21  ;;  %4911 = vst [vmem:[%s10645_s22 + $0xc8] sm:$0xff] %v7945_v22  ;;  %v7946_v30 = vpack.c.bf16 %v8209_v23, %v8208_v17  ;;  %v7947_v35 = vpack.c.bf16 %v8273_v24, %v8272_v18  ;;  %5985 = vmatprep.mubr.bf16.mxu0 %v9685_v36  ;;  %6371 = vmatprep.mubr.bf16.mxu1 %v9685_v36 }
 0x355   : > { %4912 = vst [vmem:[%s10645_s22 + $0xd0] sm:$0xff] %v7946_v30  ;;  %4913 = vst [vmem:[%s10645_s22 + $0xd8] sm:$0xff] %v7947_v35  ;;  %v4027_v37 = vpop.f32.mrb[92].mxu0  ;;  %v4413_v38 = vpop.f32.mrb[92].mxu1 }
 0x356   : > { %v8210_v39 = vadd.f32 %v4027_v37, %v10623_v50  ;;  %v8274_v40 = vadd.f32 %v4413_v38, %v10626_v51  ;;  %v4029_v41 = vpop.f32.mrb[93].mxu0  ;;  %v4415_v42 = vpop.f32.mrb[93].mxu1 }
 0x357   : > { %v8211_v43 = vadd.f32 %v4029_v41, %v10629_v52  ;;  %v8275_v44 = vadd.f32 %v4415_v42, %v10632_v53  ;;  %v4031_v45 = vpop.f32.mrb[94].mxu0  ;;  %v4417_v46 = vpop.f32.mrb[94].mxu1 }
 0x358   : > { %v8212_v47 = vadd.f32 %v4031_v45, %v10623_v50  ;;  %v8276_v48 = vadd.f32 %v4417_v46, %v10626_v51  ;;  %v4033_v49 = vpop.f32.mrb[95].mxu0  ;;  %v4419_v54 = vpop.f32.mrb[95].mxu1  ;;  %v9691_v46 = vld [vmem:[%s10237_s19 + $0xac] ss:$16 sps:$4 sm:$0xff]  }
 0x359   : > { %v7948_v55 = vpack.c.bf16 %v8211_v43, %v8210_v39  ;;  %v7949_v56 = vpack.c.bf16 %v8275_v44, %v8274_v40  ;;  %v8213_v57 = vadd.f32 %v4033_v49, %v10629_v52  ;;  %v8277_v58 = vadd.f32 %v4419_v54, %v10632_v53  ;;  %v9690_v43 = vld [vmem:[%s10237_s19 + $0x88] ss:$16 sps:$4 sm:$0xff]  }
 0x35a   : > { %5986 = vmatmul.mubr.bf16.gmra.mrb[136].mxu0 %v9686_v59  ;;  %6372 = vmatmul.mubr.bf16.gmra.mrb[136].mxu1 %v9686_v59 }
 0x35b   : > { %4914 = vst [vmem:[%s10645_s22 + $0xe0] sm:$0xff] %v7948_v55  ;;  %4915 = vst [vmem:[%s10645_s22 + $0xe8] sm:$0xff] %v7949_v56  ;;  %v7950_v60 = vpack.c.bf16 %v8213_v57, %v8212_v47  ;;  %v7951_v61 = vpack.c.bf16 %v8277_v58, %v8276_v48  ;;  %5995 = vmatprep.mubr.bf16.mxu0 %v9687_v62  ;;  %6381 = vmatprep.mubr.bf16.mxu1 %v9687_v62 }
 0x35d   : > { %4916 = vst [vmem:[%s10645_s22 + $0xf0] sm:$0xff] %v7950_v60  ;;  %4917 = vst [vmem:[%s10645_s22 + $0xf8] sm:$0xff] %v7951_v61  ;;  %v4037_v63 = vpop.f32.mrb[96].mxu0  ;;  %v4423_v0 = vpop.f32.mrb[96].mxu1 }
 0x35e   : > { %v8214_v1 = vadd.f32 %v4037_v63, %v10623_v50  ;;  %v8278_v2 = vadd.f32 %v4423_v0, %v10626_v51  ;;  %v4039_v3 = vpop.f32.mrb[97].mxu0  ;;  %v4425_v4 = vpop.f32.mrb[97].mxu1 }
 0x35f   : > { %v8215_v31 = vadd.f32 %v4039_v3, %v10629_v52  ;;  %v8279_v32 = vadd.f32 %v4425_v4, %v10632_v53  ;;  %v4041_v5 = vpop.f32.mrb[98].mxu0  ;;  %v4427_v6 = vpop.f32.mrb[98].mxu1 }
 0x360   : > { %v8216_v7 = vadd.f32 %v4041_v5, %v10623_v50  ;;  %v8280_v33 = vadd.f32 %v4427_v6, %v10626_v51  ;;  %v4043_v34 = vpop.f32.mrb[99].mxu0  ;;  %v4429_v8 = vpop.f32.mrb[99].mxu1  ;;  %v9693_v6 = vld [vmem:[%s10237_s19 + $0xcc] ss:$16 sps:$4 sm:$0xff]  }
 0x361   : > { %v7952_v9 = vpack.c.bf16 %v8215_v31, %v8214_v1  ;;  %v7953_v10 = vpack.c.bf16 %v8279_v32, %v8278_v2  ;;  %v8217_v11 = vadd.f32 %v4043_v34, %v10629_v52  ;;  %v8281_v12 = vadd.f32 %v4429_v8, %v10632_v53  ;;  %v9692_v31 = vld [vmem:[%s10237_s19 + $0xa8] ss:$16 sps:$4 sm:$0xff]  }
 0x362   : > { %5996 = vmatmul.mubr.bf16.gmra.mrb[140].mxu0 %v9688_v13  ;;  %6382 = vmatmul.mubr.bf16.gmra.mrb[140].mxu1 %v9688_v13 }
 0x363   : > { %4918 = vst [vmem:[%s10645_s22 + $0x100] sm:$0xff] %v7952_v9  ;;  %4919 = vst [vmem:[%s10645_s22 + $0x108] sm:$0xff] %v7953_v10  ;;  %v7954_v14 = vpack.c.bf16 %v8217_v11, %v8216_v7  ;;  %v7955_v15 = vpack.c.bf16 %v8281_v12, %v8280_v33  ;;  %6005 = vmatprep.mubr.bf16.mxu0 %v9689_v16  ;;  %6391 = vmatprep.mubr.bf16.mxu1 %v9689_v16 }
 0x365   : > { %4920 = vst [vmem:[%s10645_s22 + $0x110] sm:$0xff] %v7954_v14  ;;  %4921 = vst [vmem:[%s10645_s22 + $0x118] sm:$0xff] %v7955_v15  ;;  %v4047_v17 = vpop.f32.mrb[100].mxu0  ;;  %v4433_v18 = vpop.f32.mrb[100].mxu1 }
 0x366   : > { %v8218_v19 = vadd.f32 %v4047_v17, %v10623_v50  ;;  %v8282_v20 = vadd.f32 %v4433_v18, %v10626_v51  ;;  %v4049_v21 = vpop.f32.mrb[101].mxu0  ;;  %v4435_v22 = vpop.f32.mrb[101].mxu1 }
 0x367   : > { %v8219_v23 = vadd.f32 %v4049_v21, %v10629_v52  ;;  %v8283_v24 = vadd.f32 %v4435_v22, %v10632_v53  ;;  %v4051_v27 = vpop.f32.mrb[102].mxu0  ;;  %v4437_v30 = vpop.f32.mrb[102].mxu1 }
 0x368   : > { %v8220_v35 = vadd.f32 %v4051_v27, %v10623_v50  ;;  %v8284_v36 = vadd.f32 %v4437_v30, %v10626_v51  ;;  %v4053_v37 = vpop.f32.mrb[103].mxu0  ;;  %v4439_v38 = vpop.f32.mrb[103].mxu1  ;;  %v9695_v30 = vld [vmem:[%s10237_s19 + $0xec] ss:$16 sps:$4 sm:$0xff]  }
 0x369   : > { %v7956_v39 = vpack.c.bf16 %v8219_v23, %v8218_v19  ;;  %v7957_v40 = vpack.c.bf16 %v8283_v24, %v8282_v20  ;;  %v8221_v41 = vadd.f32 %v4053_v37, %v10629_v52  ;;  %v8285_v42 = vadd.f32 %v4439_v38, %v10632_v53  ;;  %v9694_v23 = vld [vmem:[%s10237_s19 + $0xc8] ss:$16 sps:$4 sm:$0xff]  }
 0x36a   : > { %6006 = vmatmul.mubr.bf16.gmra.mrb[144].mxu0 %v9690_v43  ;;  %6392 = vmatmul.mubr.bf16.gmra.mrb[144].mxu1 %v9690_v43 }
 0x36b   : > { %4922 = vst [vmem:[%s10645_s22 + $0x120] sm:$0xff] %v7956_v39  ;;  %4923 = vst [vmem:[%s10645_s22 + $0x128] sm:$0xff] %v7957_v40  ;;  %v7958_v44 = vpack.c.bf16 %v8221_v41, %v8220_v35  ;;  %v7959_v45 = vpack.c.bf16 %v8285_v42, %v8284_v36  ;;  %6015 = vmatprep.mubr.bf16.mxu0 %v9691_v46  ;;  %6401 = vmatprep.mubr.bf16.mxu1 %v9691_v46 }
 0x36d   : > { %4924 = vst [vmem:[%s10645_s22 + $0x130] sm:$0xff] %v7958_v44  ;;  %4925 = vst [vmem:[%s10645_s22 + $0x138] sm:$0xff] %v7959_v45  ;;  %v4057_v47 = vpop.f32.mrb[104].mxu0  ;;  %v4443_v48 = vpop.f32.mrb[104].mxu1 }
 0x36e   : > { %v8222_v49 = vadd.f32 %v4057_v47, %v10623_v50  ;;  %v8286_v54 = vadd.f32 %v4443_v48, %v10626_v51  ;;  %v4059_v55 = vpop.f32.mrb[105].mxu0  ;;  %v4445_v56 = vpop.f32.mrb[105].mxu1 }
 0x36f   : > { %v8223_v57 = vadd.f32 %v4059_v55, %v10629_v52  ;;  %v8287_v58 = vadd.f32 %v4445_v56, %v10632_v53  ;;  %v4061_v59 = vpop.f32.mrb[106].mxu0  ;;  %v4447_v60 = vpop.f32.mrb[106].mxu1 }
 0x370   : > { %v8224_v61 = vadd.f32 %v4061_v59, %v10623_v50  ;;  %v8288_v62 = vadd.f32 %v4447_v60, %v10626_v51  ;;  %v4063_v63 = vpop.f32.mrb[107].mxu0  ;;  %v4449_v0 = vpop.f32.mrb[107].mxu1  ;;  %v9697_v60 = vld [vmem:[%s10237_s19 + $0x10c] ss:$16 sps:$4 sm:$0xff]  }
 0x371   : > { %v7960_v1 = vpack.c.bf16 %v8223_v57, %v8222_v49  ;;  %v7961_v2 = vpack.c.bf16 %v8287_v58, %v8286_v54  ;;  %v8225_v3 = vadd.f32 %v4063_v63, %v10629_v52  ;;  %v8289_v4 = vadd.f32 %v4449_v0, %v10632_v53  ;;  %v9696_v57 = vld [vmem:[%s10237_s19 + $0xe8] ss:$16 sps:$4 sm:$0xff]  }
 0x372   : > { %6016 = vmatmul.mubr.bf16.gmra.mrb[148].mxu0 %v9692_v31  ;;  %6402 = vmatmul.mubr.bf16.gmra.mrb[148].mxu1 %v9692_v31 }
 0x373   : > { %4926 = vst [vmem:[%s10645_s22 + $0x140] sm:$0xff] %v7960_v1  ;;  %4927 = vst [vmem:[%s10645_s22 + $0x148] sm:$0xff] %v7961_v2  ;;  %v7962_v32 = vpack.c.bf16 %v8225_v3, %v8224_v61  ;;  %v7963_v5 = vpack.c.bf16 %v8289_v4, %v8288_v62  ;;  %6025 = vmatprep.mubr.bf16.mxu0 %v9693_v6  ;;  %6411 = vmatprep.mubr.bf16.mxu1 %v9693_v6 }
 0x375   : > { %4928 = vst [vmem:[%s10645_s22 + $0x150] sm:$0xff] %v7962_v32  ;;  %4929 = vst [vmem:[%s10645_s22 + $0x158] sm:$0xff] %v7963_v5  ;;  %v4067_v7 = vpop.f32.mrb[108].mxu0  ;;  %v4453_v33 = vpop.f32.mrb[108].mxu1 }
 0x376   : > { %v8226_v34 = vadd.f32 %v4067_v7, %v10623_v50  ;;  %v8290_v8 = vadd.f32 %v4453_v33, %v10626_v51  ;;  %v4069_v9 = vpop.f32.mrb[109].mxu0  ;;  %v4455_v10 = vpop.f32.mrb[109].mxu1 }
 0x377   : > { %v8227_v11 = vadd.f32 %v4069_v9, %v10629_v52  ;;  %v8291_v12 = vadd.f32 %v4455_v10, %v10632_v53  ;;  %v4071_v13 = vpop.f32.mrb[110].mxu0  ;;  %v4457_v14 = vpop.f32.mrb[110].mxu1 }
 0x378   : > { %v8228_v15 = vadd.f32 %v4071_v13, %v10623_v50  ;;  %v8292_v16 = vadd.f32 %v4457_v14, %v10626_v51  ;;  %v4073_v17 = vpop.f32.mrb[111].mxu0  ;;  %v4459_v18 = vpop.f32.mrb[111].mxu1  ;;  %v9699_v14 = vld [vmem:[%s10237_s19 + $0x12c] ss:$16 sps:$4 sm:$0xff]  }
 0x379   : > { %v7964_v19 = vpack.c.bf16 %v8227_v11, %v8226_v34  ;;  %v7965_v20 = vpack.c.bf16 %v8291_v12, %v8290_v8  ;;  %v8229_v21 = vadd.f32 %v4073_v17, %v10629_v52  ;;  %v8293_v22 = vadd.f32 %v4459_v18, %v10632_v53  ;;  %v9698_v11 = vld [vmem:[%s10237_s19 + $0x108] ss:$16 sps:$4 sm:$0xff]  }
 0x37a   : > { %6026 = vmatmul.mubr.bf16.gmra.mrb[152].mxu0 %v9694_v23  ;;  %6412 = vmatmul.mubr.bf16.gmra.mrb[152].mxu1 %v9694_v23 }
 0x37b   : > { %4930 = vst [vmem:[%s10645_s22 + $0x160] sm:$0xff] %v7964_v19  ;;  %4931 = vst [vmem:[%s10645_s22 + $0x168] sm:$0xff] %v7965_v20  ;;  %v7966_v24 = vpack.c.bf16 %v8229_v21, %v8228_v15  ;;  %v7967_v27 = vpack.c.bf16 %v8293_v22, %v8292_v16  ;;  %6035 = vmatprep.mubr.bf16.mxu0 %v9695_v30  ;;  %6421 = vmatprep.mubr.bf16.mxu1 %v9695_v30 }
 0x37d   : > { %4932 = vst [vmem:[%s10645_s22 + $0x170] sm:$0xff] %v7966_v24  ;;  %4933 = vst [vmem:[%s10645_s22 + $0x178] sm:$0xff] %v7967_v27  ;;  %v4077_v35 = vpop.f32.mrb[112].mxu0  ;;  %v4463_v36 = vpop.f32.mrb[112].mxu1 }
 0x37e   : > { %v8230_v37 = vadd.f32 %v4077_v35, %v10623_v50  ;;  %v8294_v38 = vadd.f32 %v4463_v36, %v10626_v51  ;;  %v4079_v39 = vpop.f32.mrb[113].mxu0  ;;  %v4465_v40 = vpop.f32.mrb[113].mxu1 }
 0x37f   : > { %v8231_v41 = vadd.f32 %v4079_v39, %v10629_v52  ;;  %v8295_v42 = vadd.f32 %v4465_v40, %v10632_v53  ;;  %v4081_v43 = vpop.f32.mrb[114].mxu0  ;;  %v4467_v44 = vpop.f32.mrb[114].mxu1 }
 0x380   : > { %v8232_v45 = vadd.f32 %v4081_v43, %v10623_v50  ;;  %v8296_v46 = vadd.f32 %v4467_v44, %v10626_v51  ;;  %v4083_v47 = vpop.f32.mrb[115].mxu0  ;;  %v4469_v48 = vpop.f32.mrb[115].mxu1  ;;  %v9701_v44 = vld [vmem:[%s10237_s19 + $0x14c] ss:$16 sps:$4 sm:$0xff]  }
 0x381   : > { %v7968_v49 = vpack.c.bf16 %v8231_v41, %v8230_v37  ;;  %v7969_v54 = vpack.c.bf16 %v8295_v42, %v8294_v38  ;;  %v8233_v55 = vadd.f32 %v4083_v47, %v10629_v52  ;;  %v8297_v56 = vadd.f32 %v4469_v48, %v10632_v53  ;;  %v9700_v41 = vld [vmem:[%s10237_s19 + $0x128] ss:$16 sps:$4 sm:$0xff]  }
 0x382   : > { %6036 = vmatmul.mubr.bf16.gmra.mrb[156].mxu0 %v9696_v57  ;;  %6422 = vmatmul.mubr.bf16.gmra.mrb[156].mxu1 %v9696_v57 }
 0x383   : > { %4934 = vst [vmem:[%s10645_s22 + $0x180] sm:$0xff] %v7968_v49  ;;  %4935 = vst [vmem:[%s10645_s22 + $0x188] sm:$0xff] %v7969_v54  ;;  %v7970_v58 = vpack.c.bf16 %v8233_v55, %v8232_v45  ;;  %v7971_v59 = vpack.c.bf16 %v8297_v56, %v8296_v46  ;;  %6045 = vmatprep.mubr.bf16.mxu0 %v9697_v60  ;;  %6431 = vmatprep.mubr.bf16.mxu1 %v9697_v60 }
 0x385   : > { %4936 = vst [vmem:[%s10645_s22 + $0x190] sm:$0xff] %v7970_v58  ;;  %4937 = vst [vmem:[%s10645_s22 + $0x198] sm:$0xff] %v7971_v59  ;;  %v4087_v61 = vpop.f32.mrb[116].mxu0  ;;  %v4473_v62 = vpop.f32.mrb[116].mxu1 }
 0x386   : > { %v8234_v63 = vadd.f32 %v4087_v61, %v10623_v50  ;;  %v8298_v0 = vadd.f32 %v4473_v62, %v10626_v51  ;;  %v4089_v1 = vpop.f32.mrb[117].mxu0  ;;  %v4475_v2 = vpop.f32.mrb[117].mxu1 }
 0x387   : > { %v8235_v3 = vadd.f32 %v4089_v1, %v10629_v52  ;;  %v8299_v4 = vadd.f32 %v4475_v2, %v10632_v53  ;;  %v4091_v31 = vpop.f32.mrb[118].mxu0  ;;  %v4477_v32 = vpop.f32.mrb[118].mxu1 }
 0x388   : > { %v8236_v5 = vadd.f32 %v4091_v31, %v10623_v50  ;;  %v8300_v6 = vadd.f32 %v4477_v32, %v10626_v51  ;;  %v4093_v7 = vpop.f32.mrb[119].mxu0  ;;  %v4479_v33 = vpop.f32.mrb[119].mxu1  ;;  %v9706_v31 = vld [vmem:[%s10237_s19 + $0x188] ss:$16 sps:$4 sm:$0xff]   ;;  %v9707_v32 = vld [vmem:[%s10237_s19 + $0x1ac] ss:$16 sps:$4 sm:$0xff]  }
 0x389   : > { %v7972_v34 = vpack.c.bf16 %v8235_v3, %v8234_v63  ;;  %v7973_v8 = vpack.c.bf16 %v8299_v4, %v8298_v0  ;;  %v8237_v9 = vadd.f32 %v4093_v7, %v10629_v52  ;;  %v8301_v10 = vadd.f32 %v4479_v33, %v10632_v53  ;;  %v9702_v3 = vld [vmem:[%s10237_s19 + $0x148] ss:$16 sps:$4 sm:$0xff]   ;;  %v9703_v4 = vld [vmem:[%s10237_s19 + $0x16c] ss:$16 sps:$4 sm:$0xff]  }
 0x38a   : > { %6046 = vmatmul.mubr.bf16.gmra.mrb[160].mxu0 %v9698_v11  ;;  %6432 = vmatmul.mubr.bf16.gmra.mrb[160].mxu1 %v9698_v11  ;;  %v9710_v7 = vld [vmem:[%s10237_s19 + $0x1c8] ss:$16 sps:$4 sm:$0xff]   ;;  %v9711_v33 = vld [vmem:[%s10237_s19 + $0x1ec] ss:$16 sps:$4 sm:$0xff]  }
 0x38b   : > { %4938 = vst [vmem:[%s10645_s22 + $0x1a0] sm:$0xff] %v7972_v34  ;;  %4939 = vst [vmem:[%s10645_s22 + $0x1a8] sm:$0xff] %v7973_v8  ;;  %v7974_v12 = vpack.c.bf16 %v8237_v9, %v8236_v5  ;;  %v7975_v13 = vpack.c.bf16 %v8301_v10, %v8300_v6  ;;  %6055 = vmatprep.mubr.bf16.mxu0 %v9699_v14  ;;  %6441 = vmatprep.mubr.bf16.mxu1 %v9699_v14  ;;  %v9708_v5 = vld [vmem:[%s10237_s19 + $0x1a8] ss:$16 sps:$4 sm:$0xff]   ;;  %v9709_v6 = vld [vmem:[%s10237_s19 + $0x1cc] ss:$16 sps:$4 sm:$0xff]  }
 0x38c   : > { %v9712_v34 = vld [vmem:[%s10237_s19 + $0x1e8] ss:$16 sps:$4 sm:$0xff]   ;;  %v5078_v8 = vld [vmem:[%s11222_s6] sm:$0xf] }
 0x38d   : > { %4940 = vst [vmem:[%s10645_s22 + $0x1b0] sm:$0xff] %v7974_v12  ;;  %4941 = vst [vmem:[%s10645_s22 + $0x1b8] sm:$0xff] %v7975_v13  ;;  %v4097_v15 = vpop.f32.mrb[120].mxu0  ;;  %v4483_v16 = vpop.f32.mrb[120].mxu1  ;;  %v10875_v9 = vrot.slane %v5078_v8, %v10336_v25  ;;  %v10878_v10 = vrot.slane %v5078_v8, %v10338_v26  ;;  %v10881_v11 = vrot.slane %v5078_v8, %v10343_v28 }
 0x38e   : > { %v8238_v17 = vadd.f32 %v4097_v15, %v10623_v50  ;;  %v8302_v18 = vadd.f32 %v4483_v16, %v10626_v51  ;;  %v4099_v19 = vpop.f32.mrb[121].mxu0  ;;  %v4485_v20 = vpop.f32.mrb[121].mxu1  ;;  %v10884_v12 = vrot.slane %v5078_v8, %v10345_v29 }
 0x38f   : > { %v8239_v21 = vadd.f32 %v4099_v19, %v10629_v52  ;;  %v8303_v22 = vadd.f32 %v4485_v20, %v10632_v53  ;;  %v4101_v23 = vpop.f32.mrb[122].mxu0  ;;  %v4487_v24 = vpop.f32.mrb[122].mxu1 }
 0x390   : > { %v8240_v27 = vadd.f32 %v4101_v23, %v10623_v50  ;;  %v8304_v30 = vadd.f32 %v4487_v24, %v10626_v51  ;;  %v4103_v35 = vpop.f32.mrb[123].mxu0  ;;  %v4489_v36 = vpop.f32.mrb[123].mxu1 }
 0x391   : > { %v7976_v37 = vpack.c.bf16 %v8239_v21, %v8238_v17  ;;  %v7977_v38 = vpack.c.bf16 %v8303_v22, %v8302_v18  ;;  %v8241_v39 = vadd.f32 %v4103_v35, %v10629_v52  ;;  %v8305_v40 = vadd.f32 %v4489_v36, %v10632_v53 }
 0x392   : > { %6056 = vmatmul.mubr.bf16.gmra.mrb[164].mxu0 %v9700_v41  ;;  %6442 = vmatmul.mubr.bf16.gmra.mrb[164].mxu1 %v9700_v41 }
 0x393   : > { %4942 = vst [vmem:[%s10645_s22 + $0x1c0] sm:$0xff] %v7976_v37  ;;  %4943 = vst [vmem:[%s10645_s22 + $0x1c8] sm:$0xff] %v7977_v38  ;;  %v7978_v42 = vpack.c.bf16 %v8241_v39, %v8240_v27  ;;  %v7979_v43 = vpack.c.bf16 %v8305_v40, %v8304_v30  ;;  %6065 = vmatprep.mubr.bf16.mxu0 %v9701_v44  ;;  %6451 = vmatprep.mubr.bf16.mxu1 %v9701_v44 }
 0x395   : > { %4944 = vst [vmem:[%s10645_s22 + $0x1d0] sm:$0xff] %v7978_v42  ;;  %4945 = vst [vmem:[%s10645_s22 + $0x1d8] sm:$0xff] %v7979_v43  ;;  %v4107_v45 = vpop.f32.mrb[124].mxu0  ;;  %v4493_v46 = vpop.f32.mrb[124].mxu1 }
 0x396   : > { %v8242_v47 = vadd.f32 %v4107_v45, %v10623_v50  ;;  %v8306_v48 = vadd.f32 %v4493_v46, %v10626_v51  ;;  %v4109_v49 = vpop.f32.mrb[125].mxu0  ;;  %v4495_v54 = vpop.f32.mrb[125].mxu1 }
 0x397   : > { %v8243_v55 = vadd.f32 %v4109_v49, %v10629_v52  ;;  %v8307_v56 = vadd.f32 %v4495_v54, %v10632_v53  ;;  %v4111_v57 = vpop.f32.mrb[126].mxu0  ;;  %v4497_v58 = vpop.f32.mrb[126].mxu1 }
 0x398   : > { %v8244_v59 = vadd.f32 %v4111_v57, %v10623_v50  ;;  %v8308_v60 = vadd.f32 %v4497_v58, %v10626_v51  ;;  %v4113_v61 = vpop.f32.mrb[127].mxu0  ;;  %v4499_v62 = vpop.f32.mrb[127].mxu1 }
 0x399   : > { %v7980_v63 = vpack.c.bf16 %v8243_v55, %v8242_v47  ;;  %v7981_v0 = vpack.c.bf16 %v8307_v56, %v8306_v48  ;;  %v8245_v1 = vadd.f32 %v4113_v61, %v10629_v52  ;;  %v8309_v2 = vadd.f32 %v4499_v62, %v10632_v53  ;;  %v9704_v52 = vld [vmem:[%s10237_s19 + $0x168] ss:$16 sps:$4 sm:$0xff]   ;;  %v9705_v53 = vld [vmem:[%s10237_s19 + $0x18c] ss:$16 sps:$4 sm:$0xff]   ;;  %s10894_s19 = scalar_lea.hbm %s11224_s8, %s10888_s24 }
 0x39a   : > { %6066 = vmatmul.mubr.bf16.gmra.mrb[168].mxu0 %v9702_v3  ;;  %6452 = vmatmul.mubr.bf16.gmra.mrb[168].mxu1 %v9702_v3 }
 0x39b   : > { %4946 = vst [vmem:[%s10645_s22 + $0x1e0] sm:$0xff] %v7980_v63  ;;  %4947 = vst [vmem:[%s10645_s22 + $0x1e8] sm:$0xff] %v7981_v0  ;;  %v7982_v50 = vpack.c.bf16 %v8245_v1, %v8244_v59  ;;  %v7983_v51 = vpack.c.bf16 %v8309_v2, %v8308_v60  ;;  %6075 = vmatprep.mubr.bf16.mxu0 %v9703_v4  ;;  %6461 = vmatprep.mubr.bf16.mxu1 %v9703_v4 }
 0x39d   : > { %4948 = vst [vmem:[%s10645_s22 + $0x1f0] sm:$0xff] %v7982_v50  ;;  %4949 = vst [vmem:[%s10645_s22 + $0x1f8] sm:$0xff] %v7983_v51  ;;  %s9833_s22 = scalar_lea.vmem %s9832_s25, 16384 }
 0x39e   : > { %p9835_p1 = scmp.lt.s32.totalorder %s9833_s22, %s9827_s17 }
 0x3a0   : > { %p9836_p2 = por %p9835_p1, %p9834_p11 }
 0x3a2   : > { %6076 = vmatmul.mubr.bf16.gmra.mrb[172].mxu0 %v9704_v52  ;;  %6462 = vmatmul.mubr.bf16.gmra.mrb[172].mxu1 %v9704_v52  ;;  %p9837_p4 = pnand %p9836_p2, %p9830_p7 }
 0x3a3   : > { %6085 = vmatprep.mubr.bf16.mxu0 %v9705_v53  ;;  %6471 = vmatprep.mubr.bf16.mxu1 %v9705_v53 }
 0x3aa   : > { %6086 = vmatmul.mubr.bf16.gmra.mrb[176].mxu0 %v9706_v31  ;;  %6472 = vmatmul.mubr.bf16.gmra.mrb[176].mxu1 %v9706_v31 }
 0x3ab   : > { %6095 = vmatprep.mubr.bf16.mxu0 %v9707_v32  ;;  %6481 = vmatprep.mubr.bf16.mxu1 %v9707_v32 }
 0x3b2   : > { %6096 = vmatmul.mubr.bf16.gmra.mrb[180].mxu0 %v9708_v5  ;;  %6482 = vmatmul.mubr.bf16.gmra.mrb[180].mxu1 %v9708_v5 }
 0x3b3   : > { %6105 = vmatprep.mubr.bf16.mxu0 %v9709_v6  ;;  %6491 = vmatprep.mubr.bf16.mxu1 %v9709_v6 }
 0x3ba   : > { %6106 = vmatmul.mubr.bf16.gmra.mrb[184].mxu0 %v9710_v7  ;;  %6492 = vmatmul.mubr.bf16.gmra.mrb[184].mxu1 %v9710_v7 }
 0x3bb   : > { %6115 = vmatprep.mubr.bf16.mxu0 %v9711_v33  ;;  %6501 = vmatprep.mubr.bf16.mxu1 %v9711_v33 }
 0x3c2   : > { %6116 = vmatmul.mubr.bf16.gmra.mrb[188].mxu0 %v9712_v34  ;;  %6502 = vmatmul.mubr.bf16.gmra.mrb[188].mxu1 %v9712_v34 }
 0x41d   : > { %v5967_v13 = vpop.f32.mrb[128].mxu0  ;;  %v6353_v14 = vpop.f32.mrb[128].mxu1 }
 0x41e   : > { %v8310_v25 = vadd.f32 %v5967_v13, %v10875_v9  ;;  %v8374_v26 = vadd.f32 %v6353_v14, %v10878_v10  ;;  %v5969_v28 = vpop.f32.mrb[129].mxu0  ;;  %v6355_v15 = vpop.f32.mrb[129].mxu1 }
 0x41f   : > { %v8311_v29 = vadd.f32 %v5969_v28, %v10881_v11  ;;  %v8375_v16 = vadd.f32 %v6355_v15, %v10884_v12  ;;  %v5971_v17 = vpop.f32.mrb[130].mxu0  ;;  %v6357_v18 = vpop.f32.mrb[130].mxu1 }
 0x420   : > { %v10904_v19 = vadd.f32 %v5971_v17, %v10875_v9  ;;  %v10907_v20 = vadd.f32 %v6357_v18, %v10878_v10  ;;  %v5973_v21 = vpop.f32.mrb[131].mxu0  ;;  %v6359_v22 = vpop.f32.mrb[131].mxu1 }
 0x421   : > { %9840 = shalt.err (!%p9837_p4)
}
 0x422   : > { %s9841_s20 = scalar_lea.hbm %s10894_s19, 8192  ;;  %s9845_s23 = scalar_lea.hbm %s11224_s8, 32768 }
 0x423   : > { %p9842_p9 = scmp.ne.s32.totalorder %s10894_s19, %s9841_s20  ;;  %p9846_p8 = scmp.lt.u32.totalorder %s10894_s19, %s11224_s8 }
 0x424   : > { %p9847_p12 = scmp.lt.u32.totalorder %s9845_s23, %s9841_s20  ;;  %p9849_p0 = scmp.lt.u32.totalorder %s9841_s20, %s10894_s19 }
 0x425   : > { %p9843_p13 = pnand %p9842_p9, %p10179_p5 }
 0x426   : > { %p9848_p6 = por %p9847_p12, %p9846_p8 }
 0x427   : > { %p9844_p10 = pneg %p9843_p13 }
 0x428   : > { %p9850_p3 = por %p9849_p0, %p9848_p6 }
 0x42a   : > { %p9851_p7 = pnand %p9850_p3, %p9844_p10 }
 0x42c   : > { %9854 = shalt.err (!%p9851_p7)
}
 0x42d   : > { %s9970_s17 = smov 256   ;;  %s9971_s25 = smov 16   ;;  %v7984_v23 = vpack.c.bf16 %v8311_v29, %v8310_v25  ;;  %v7985_v24 = vpack.c.bf16 %v8375_v16, %v8374_v26  ;;  %v8313_v27 = vadd.f32 %v5973_v21, %v10881_v11  ;;  %v8377_v30 = vadd.f32 %v6359_v22, %v10884_v12 }
 0x42e   : > { %8837 = dma.vmem_to_hbm [thread:$0]  (%p10179_p5), %s10901_s15, 8192, %s10894_s19, %s10909_s13, %s9970_s17, %s9970_s17, %s9971_s25  }
 0x42f   : > { %s10942_s28 = scalar_lea.hbm %s11223_s7, %s10888_s24  ;;  %s6985_s29 = sshll.u32 %s10372_s26, 4  ;;  %v7986_v35 = vpack.c.bf16 %v8313_v27, %v10904_v19  ;;  %v7987_v36 = vpack.c.bf16 %v8377_v30, %v10907_v20  ;;  %s10945_s29 = int_to_ptr.vmem [resolvable:$true] %s6985_s29 }
 0x430   : > { %s10948_s23 = scalar_lea.vmem [#allocation13], %s10233_s21  ;;  %s9855_s15 = scalar_lea.vmem %s10945_s29, 8192 }
 0x431   : > { %6896 = vst [vmem:[%s10948_s23] sm:$0xff] %v7984_v23  ;;  %6897 = vst [vmem:[%s10948_s23 + $0x8] sm:$0xff] %v7985_v24  ;;  %p9856_p11 = scmp.ne.s32.totalorder %s10945_s29, %s9855_s15  ;;  %s9972_s26 = smov [#allocation10]  }
 0x432   : > { %s9859_s9 = sshll.u32 %s9972_s26, 4  ;;  %s9860_s9 = int_to_ptr.vmem [resolvable:$false] %s9859_s9 }
 0x433   : > { %p9857_p1 = pnand %p9856_p11, %p10179_p5  ;;  %s9861_s27 = scalar_lea.vmem %s9860_s9, 16384 }
 0x434   : > { %p9862_p4 = scmp.lt.s32.totalorder %s10945_s29, %s9860_s9  ;;  %p9863_p9 = scmp.lt.s32.totalorder %s9861_s27, %s9855_s15 }
 0x435   : > { %p9858_p2 = pneg %p9857_p1 }
 0x436   : > { %p9864_p13 = por %p9863_p9, %p9862_p4 }
 0x438   : > { %p9865_p10 = pnand %p9864_p13, %p9858_p2 }
 0x43a   : > { %9868 = shalt.err (!%p9865_p10)
}
 0x43b   : > { %s9869_s21 = scalar_lea.hbm %s10942_s28, 8192  ;;  %s9873_s26 = scalar_lea.hbm %s11223_s7, 32768 }
 0x43c   : > { %p9870_p8 = scmp.ne.s32.totalorder %s10942_s28, %s9869_s21  ;;  %p9874_p0 = scmp.lt.u32.totalorder %s10942_s28, %s11223_s7 }
 0x43d   : > { %p9875_p3 = scmp.lt.u32.totalorder %s9873_s26, %s9869_s21  ;;  %p9877_p11 = scmp.lt.u32.totalorder %s9869_s21, %s10942_s28 }
 0x43e   : > { %p9871_p12 = pnand %p9870_p8, %p10179_p5 }
 0x43f   : > { %p9876_p7 = por %p9875_p3, %p9874_p0 }
 0x440   : > { %p9872_p6 = pneg %p9871_p12 }
 0x441   : > { %p9878_p1 = por %p9877_p11, %p9876_p7 }
 0x443   : > { %p9879_p2 = pnand %p9878_p1, %p9872_p6 }
 0x445   : > { %9882 = shalt.err (!%p9879_p2)
}
 0x446   : > { %s11250_s15 = scalar_lea.sflag [#allocation4], %s10230_s30  ;;  %6898 = vst [vmem:[%s10948_s23 + $0x10] sm:$0xff] %v7986_v35  ;;  %6899 = vst [vmem:[%s10948_s23 + $0x18] sm:$0xff] %v7987_v36  ;;  %v5977_v37 = vpop.f32.mrb[132].mxu0  ;;  %v6363_v38 = vpop.f32.mrb[132].mxu1  ;;  %s7019_s30 = sshll.u32 %s10948_s23, 4  ;;  %s11168_s30 = int_to_ptr.vmem [resolvable:$true] %s7019_s30 }
 0x447   : > { %8836 = dma.vmem_to_hbm [thread:$0]  (%p10179_p5), %s10945_s29, 8192, %s10942_s28, %s11250_s15, %s9970_s17, %s9970_s17, %s9971_s25   ;;  %v8314_v39 = vadd.f32 %v5977_v37, %v10875_v9  ;;  %v8378_v40 = vadd.f32 %v6363_v38, %v10878_v10  ;;  %v5979_v41 = vpop.f32.mrb[133].mxu0  ;;  %v6365_v42 = vpop.f32.mrb[133].mxu1 }
 0x448   : > { %v8315_v43 = vadd.f32 %v5979_v41, %v10881_v11  ;;  %v8379_v44 = vadd.f32 %v6365_v42, %v10884_v12  ;;  %v5981_v45 = vpop.f32.mrb[134].mxu0  ;;  %v6367_v46 = vpop.f32.mrb[134].mxu1  ;;  %s11251_s19 = sld [smem:[#allocation21_spill]]  ;;  %s9883_s21 = scalar_lea.vmem %s11168_s30, 8192 }
 0x449   : > { %v8316_v47 = vadd.f32 %v5981_v45, %v10875_v9  ;;  %v8380_v48 = vadd.f32 %v6367_v46, %v10878_v10  ;;  %v5983_v49 = vpop.f32.mrb[135].mxu0  ;;  %v6369_v54 = vpop.f32.mrb[135].mxu1  ;;  %p9884_p4 = scmp.ne.s32.totalorder %s11168_s30, %s9883_s21  ;;  %s9973_s22 = smov [#allocation13]  }
 0x44a   : > { %v7988_v55 = vpack.c.bf16 %v8315_v43, %v8314_v39  ;;  %v7989_v56 = vpack.c.bf16 %v8379_v44, %v8378_v40  ;;  %v8317_v57 = vadd.f32 %v5983_v49, %v10881_v11  ;;  %v8381_v58 = vadd.f32 %v6369_v54, %v10884_v12  ;;  %v5987_v61 = vpop.f32.mrb[136].mxu0  ;;  %v6373_v62 = vpop.f32.mrb[136].mxu1  ;;  %s9887_s20 = sshll.u32 %s9973_s22, 4  ;;  %s9888_s20 = int_to_ptr.vmem [resolvable:$false] %s9887_s20 }
 0x44b   : > { %v8318_v63 = vadd.f32 %v5987_v61, %v10875_v9  ;;  %v8382_v0 = vadd.f32 %v6373_v62, %v10878_v10  ;;  %v5989_v1 = vpop.f32.mrb[137].mxu0  ;;  %v6375_v2 = vpop.f32.mrb[137].mxu1  ;;  %p9885_p9 = pnand %p9884_p4, %p10179_p5  ;;  %s9889_s26 = scalar_lea.vmem %s9888_s20, 16384 }
 0x44c   : > { %6900 = vst [vmem:[%s10948_s23 + $0x20] sm:$0xff] %v7988_v55  ;;  %6901 = vst [vmem:[%s10948_s23 + $0x28] sm:$0xff] %v7989_v56  ;;  %v7990_v59 = vpack.c.bf16 %v8317_v57, %v8316_v47  ;;  %v7991_v60 = vpack.c.bf16 %v8381_v58, %v8380_v48  ;;  %v8319_v3 = vadd.f32 %v5989_v1, %v10881_v11  ;;  %v5991_v51 = vpop.f32.mrb[138].mxu0  ;;  %v6377_v4 = vpop.f32.mrb[138].mxu1  ;;  %p9890_p10 = scmp.lt.s32.totalorder %s11168_s30, %s9888_s20  ;;  %p9891_p8 = scmp.lt.s32.totalorder %s9889_s26, %s9883_s21 }
 0x44d   : > { %v8383_v50 = vadd.f32 %v6375_v2, %v10884_v12  ;;  %v8320_v52 = vadd.f32 %v5991_v51, %v10875_v9  ;;  %v8384_v53 = vadd.f32 %v6377_v4, %v10878_v10  ;;  %v5993_v31 = vpop.f32.mrb[139].mxu0  ;;  %v6379_v32 = vpop.f32.mrb[139].mxu1  ;;  %p9886_p13 = pneg %p9885_p9 }
 0x44e   : > { %6902 = vst [vmem:[%s10948_s23 + $0x30] sm:$0xff] %v7990_v59  ;;  %6903 = vst [vmem:[%s10948_s23 + $0x38] sm:$0xff] %v7991_v60  ;;  %v7992_v5 = vpack.c.bf16 %v8319_v3, %v8318_v63  ;;  %v8321_v7 = vadd.f32 %v5993_v31, %v10881_v11  ;;  %v8385_v33 = vadd.f32 %v6379_v32, %v10884_v12  ;;  %v5997_v13 = vpop.f32.mrb[140].mxu0  ;;  %v6383_v14 = vpop.f32.mrb[140].mxu1  ;;  %s11166_s27 = scalar_lea.hbm %s11251_s19, %s10888_s24  ;;  %p9892_p12 = por %p9891_p8, %p9890_p10 }
 0x44f   : > { %v7993_v6 = vpack.c.bf16 %v8383_v50, %v8382_v0  ;;  %v8322_v25 = vadd.f32 %v5997_v13, %v10875_v9  ;;  %v8386_v26 = vadd.f32 %v6383_v14, %v10878_v10  ;;  %v5999_v28 = vpop.f32.mrb[141].mxu0  ;;  %v6385_v15 = vpop.f32.mrb[141].mxu1 }
 0x450   : > { %6904 = vst [vmem:[%s10948_s23 + $0x40] sm:$0xff] %v7992_v5  ;;  %v7994_v34 = vpack.c.bf16 %v8321_v7, %v8320_v52  ;;  %v7995_v8 = vpack.c.bf16 %v8385_v33, %v8384_v53  ;;  %v8323_v29 = vadd.f32 %v5999_v28, %v10881_v11  ;;  %v8387_v16 = vadd.f32 %v6385_v15, %v10884_v12  ;;  %v6001_v17 = vpop.f32.mrb[142].mxu0  ;;  %v6387_v18 = vpop.f32.mrb[142].mxu1  ;;  %p9893_p6 = pnand %p9892_p12, %p9886_p13 }
 0x451   : > { %6905 = vst [vmem:[%s10948_s23 + $0x48] sm:$0xff] %v7993_v6  ;;  %v8324_v19 = vadd.f32 %v6001_v17, %v10875_v9  ;;  %v8388_v20 = vadd.f32 %v6387_v18, %v10878_v10  ;;  %v6003_v21 = vpop.f32.mrb[143].mxu0  ;;  %v6389_v22 = vpop.f32.mrb[143].mxu1 }
 0x452   : > { %6906 = vst [vmem:[%s10948_s23 + $0x50] sm:$0xff] %v7994_v34  ;;  %6907 = vst [vmem:[%s10948_s23 + $0x58] sm:$0xff] %v7995_v8  ;;  %v7996_v23 = vpack.c.bf16 %v8323_v29, %v8322_v25  ;;  %v7997_v24 = vpack.c.bf16 %v8387_v16, %v8386_v26  ;;  %v8325_v27 = vadd.f32 %v6003_v21, %v10881_v11  ;;  %v6007_v37 = vpop.f32.mrb[144].mxu0  ;;  %v6393_v38 = vpop.f32.mrb[144].mxu1 }
 0x453   : > { %v8389_v30 = vadd.f32 %v6389_v22, %v10884_v12  ;;  %v8326_v39 = vadd.f32 %v6007_v37, %v10875_v9  ;;  %v8390_v40 = vadd.f32 %v6393_v38, %v10878_v10  ;;  %v6009_v41 = vpop.f32.mrb[145].mxu0  ;;  %v6395_v42 = vpop.f32.mrb[145].mxu1 }
 0x454   : > { %6908 = vst [vmem:[%s10948_s23 + $0x60] sm:$0xff] %v7996_v23  ;;  %6909 = vst [vmem:[%s10948_s23 + $0x68] sm:$0xff] %v7997_v24  ;;  %v7998_v35 = vpack.c.bf16 %v8325_v27, %v8324_v19  ;;  %v8327_v43 = vadd.f32 %v6009_v41, %v10881_v11  ;;  %v8391_v44 = vadd.f32 %v6395_v42, %v10884_v12  ;;  %v6011_v45 = vpop.f32.mrb[146].mxu0  ;;  %v6397_v46 = vpop.f32.mrb[146].mxu1 }
 0x455   : > { %v7999_v36 = vpack.c.bf16 %v8389_v30, %v8388_v20  ;;  %v8328_v47 = vadd.f32 %v6011_v45, %v10875_v9  ;;  %v8392_v48 = vadd.f32 %v6397_v46, %v10878_v10  ;;  %v6013_v49 = vpop.f32.mrb[147].mxu0  ;;  %v6399_v54 = vpop.f32.mrb[147].mxu1 }
 0x456   : > { %6910 = vst [vmem:[%s10948_s23 + $0x70] sm:$0xff] %v7998_v35  ;;  %v8000_v55 = vpack.c.bf16 %v8327_v43, %v8326_v39  ;;  %v8001_v56 = vpack.c.bf16 %v8391_v44, %v8390_v40  ;;  %v8329_v57 = vadd.f32 %v6013_v49, %v10881_v11  ;;  %v8393_v58 = vadd.f32 %v6399_v54, %v10884_v12  ;;  %v6017_v61 = vpop.f32.mrb[148].mxu0  ;;  %v6403_v62 = vpop.f32.mrb[148].mxu1 }
 0x457   : > { %6911 = vst [vmem:[%s10948_s23 + $0x78] sm:$0xff] %v7999_v36  ;;  %v8330_v63 = vadd.f32 %v6017_v61, %v10875_v9  ;;  %v8394_v0 = vadd.f32 %v6403_v62, %v10878_v10  ;;  %v6019_v1 = vpop.f32.mrb[149].mxu0  ;;  %v6405_v2 = vpop.f32.mrb[149].mxu1 }
 0x458   : > { %6912 = vst [vmem:[%s10948_s23 + $0x80] sm:$0xff] %v8000_v55  ;;  %6913 = vst [vmem:[%s10948_s23 + $0x88] sm:$0xff] %v8001_v56  ;;  %v8002_v59 = vpack.c.bf16 %v8329_v57, %v8328_v47  ;;  %v8003_v60 = vpack.c.bf16 %v8393_v58, %v8392_v48  ;;  %v8331_v3 = vadd.f32 %v6019_v1, %v10881_v11  ;;  %v6021_v51 = vpop.f32.mrb[150].mxu0  ;;  %v6407_v4 = vpop.f32.mrb[150].mxu1 }
 0x459   : > { %v8395_v50 = vadd.f32 %v6405_v2, %v10884_v12  ;;  %v8332_v52 = vadd.f32 %v6021_v51, %v10875_v9  ;;  %v8396_v53 = vadd.f32 %v6407_v4, %v10878_v10  ;;  %v6023_v31 = vpop.f32.mrb[151].mxu0  ;;  %v6409_v32 = vpop.f32.mrb[151].mxu1 }
 0x45a   : > { %6914 = vst [vmem:[%s10948_s23 + $0x90] sm:$0xff] %v8002_v59  ;;  %6915 = vst [vmem:[%s10948_s23 + $0x98] sm:$0xff] %v8003_v60  ;;  %v8004_v5 = vpack.c.bf16 %v8331_v3, %v8330_v63  ;;  %v8333_v7 = vadd.f32 %v6023_v31, %v10881_v11  ;;  %v8397_v33 = vadd.f32 %v6409_v32, %v10884_v12  ;;  %v6027_v13 = vpop.f32.mrb[152].mxu0  ;;  %v6413_v14 = vpop.f32.mrb[152].mxu1 }
 0x45b   : > { %v8005_v6 = vpack.c.bf16 %v8395_v50, %v8394_v0  ;;  %v8334_v25 = vadd.f32 %v6027_v13, %v10875_v9  ;;  %v8398_v26 = vadd.f32 %v6413_v14, %v10878_v10  ;;  %v6029_v28 = vpop.f32.mrb[153].mxu0  ;;  %v6415_v15 = vpop.f32.mrb[153].mxu1 }
 0x45c   : > { %6916 = vst [vmem:[%s10948_s23 + $0xa0] sm:$0xff] %v8004_v5  ;;  %v8006_v34 = vpack.c.bf16 %v8333_v7, %v8332_v52  ;;  %v8007_v8 = vpack.c.bf16 %v8397_v33, %v8396_v53  ;;  %v8335_v29 = vadd.f32 %v6029_v28, %v10881_v11  ;;  %v8399_v16 = vadd.f32 %v6415_v15, %v10884_v12  ;;  %v6031_v17 = vpop.f32.mrb[154].mxu0  ;;  %v6417_v18 = vpop.f32.mrb[154].mxu1 }
 0x45d   : > { %6917 = vst [vmem:[%s10948_s23 + $0xa8] sm:$0xff] %v8005_v6  ;;  %v8336_v19 = vadd.f32 %v6031_v17, %v10875_v9  ;;  %v8400_v20 = vadd.f32 %v6417_v18, %v10878_v10  ;;  %v6033_v21 = vpop.f32.mrb[155].mxu0  ;;  %v6419_v22 = vpop.f32.mrb[155].mxu1 }
 0x45e   : > { %6918 = vst [vmem:[%s10948_s23 + $0xb0] sm:$0xff] %v8006_v34  ;;  %6919 = vst [vmem:[%s10948_s23 + $0xb8] sm:$0xff] %v8007_v8  ;;  %v8008_v23 = vpack.c.bf16 %v8335_v29, %v8334_v25  ;;  %v8009_v24 = vpack.c.bf16 %v8399_v16, %v8398_v26  ;;  %v8337_v27 = vadd.f32 %v6033_v21, %v10881_v11  ;;  %v6037_v37 = vpop.f32.mrb[156].mxu0  ;;  %v6423_v38 = vpop.f32.mrb[156].mxu1 }
 0x45f   : > { %v8401_v30 = vadd.f32 %v6419_v22, %v10884_v12  ;;  %v8338_v39 = vadd.f32 %v6037_v37, %v10875_v9  ;;  %v8402_v40 = vadd.f32 %v6423_v38, %v10878_v10  ;;  %v6039_v41 = vpop.f32.mrb[157].mxu0  ;;  %v6425_v42 = vpop.f32.mrb[157].mxu1 }
 0x460   : > { %6920 = vst [vmem:[%s10948_s23 + $0xc0] sm:$0xff] %v8008_v23  ;;  %6921 = vst [vmem:[%s10948_s23 + $0xc8] sm:$0xff] %v8009_v24  ;;  %v8010_v35 = vpack.c.bf16 %v8337_v27, %v8336_v19  ;;  %v8339_v43 = vadd.f32 %v6039_v41, %v10881_v11  ;;  %v8403_v44 = vadd.f32 %v6425_v42, %v10884_v12  ;;  %v6041_v45 = vpop.f32.mrb[158].mxu0  ;;  %v6427_v46 = vpop.f32.mrb[158].mxu1 }
 0x461   : > { %v8011_v36 = vpack.c.bf16 %v8401_v30, %v8400_v20  ;;  %v8340_v47 = vadd.f32 %v6041_v45, %v10875_v9  ;;  %v8404_v48 = vadd.f32 %v6427_v46, %v10878_v10  ;;  %v6043_v49 = vpop.f32.mrb[159].mxu0  ;;  %v6429_v54 = vpop.f32.mrb[159].mxu1 }
 0x462   : > { %6922 = vst [vmem:[%s10948_s23 + $0xd0] sm:$0xff] %v8010_v35  ;;  %v8012_v55 = vpack.c.bf16 %v8339_v43, %v8338_v39  ;;  %v8013_v56 = vpack.c.bf16 %v8403_v44, %v8402_v40  ;;  %v8341_v57 = vadd.f32 %v6043_v49, %v10881_v11  ;;  %v8405_v58 = vadd.f32 %v6429_v54, %v10884_v12  ;;  %v6047_v61 = vpop.f32.mrb[160].mxu0  ;;  %v6433_v62 = vpop.f32.mrb[160].mxu1 }
 0x463   : > { %6923 = vst [vmem:[%s10948_s23 + $0xd8] sm:$0xff] %v8011_v36  ;;  %v8342_v63 = vadd.f32 %v6047_v61, %v10875_v9  ;;  %v8406_v0 = vadd.f32 %v6433_v62, %v10878_v10  ;;  %v6049_v1 = vpop.f32.mrb[161].mxu0  ;;  %v6435_v2 = vpop.f32.mrb[161].mxu1 }
 0x464   : > { %6924 = vst [vmem:[%s10948_s23 + $0xe0] sm:$0xff] %v8012_v55  ;;  %6925 = vst [vmem:[%s10948_s23 + $0xe8] sm:$0xff] %v8013_v56  ;;  %v8014_v59 = vpack.c.bf16 %v8341_v57, %v8340_v47  ;;  %v8015_v60 = vpack.c.bf16 %v8405_v58, %v8404_v48  ;;  %v8343_v3 = vadd.f32 %v6049_v1, %v10881_v11  ;;  %v6051_v51 = vpop.f32.mrb[162].mxu0  ;;  %v6437_v4 = vpop.f32.mrb[162].mxu1 }
 0x465   : > { %v8407_v50 = vadd.f32 %v6435_v2, %v10884_v12  ;;  %v8344_v52 = vadd.f32 %v6051_v51, %v10875_v9  ;;  %v8408_v53 = vadd.f32 %v6437_v4, %v10878_v10  ;;  %v6053_v31 = vpop.f32.mrb[163].mxu0  ;;  %v6439_v32 = vpop.f32.mrb[163].mxu1 }
 0x466   : > { %6926 = vst [vmem:[%s10948_s23 + $0xf0] sm:$0xff] %v8014_v59  ;;  %6927 = vst [vmem:[%s10948_s23 + $0xf8] sm:$0xff] %v8015_v60  ;;  %v8016_v5 = vpack.c.bf16 %v8343_v3, %v8342_v63  ;;  %v8345_v7 = vadd.f32 %v6053_v31, %v10881_v11  ;;  %v8409_v33 = vadd.f32 %v6439_v32, %v10884_v12  ;;  %v6057_v13 = vpop.f32.mrb[164].mxu0  ;;  %v6443_v14 = vpop.f32.mrb[164].mxu1 }
 0x467   : > { %v8017_v6 = vpack.c.bf16 %v8407_v50, %v8406_v0  ;;  %v8346_v25 = vadd.f32 %v6057_v13, %v10875_v9  ;;  %v8410_v26 = vadd.f32 %v6443_v14, %v10878_v10  ;;  %v6059_v28 = vpop.f32.mrb[165].mxu0  ;;  %v6445_v15 = vpop.f32.mrb[165].mxu1 }
 0x468   : > { %6928 = vst [vmem:[%s10948_s23 + $0x100] sm:$0xff] %v8016_v5  ;;  %v8018_v34 = vpack.c.bf16 %v8345_v7, %v8344_v52  ;;  %v8019_v8 = vpack.c.bf16 %v8409_v33, %v8408_v53  ;;  %v8347_v29 = vadd.f32 %v6059_v28, %v10881_v11  ;;  %v8411_v16 = vadd.f32 %v6445_v15, %v10884_v12  ;;  %v6061_v17 = vpop.f32.mrb[166].mxu0  ;;  %v6447_v18 = vpop.f32.mrb[166].mxu1 }
 0x469   : > { %6929 = vst [vmem:[%s10948_s23 + $0x108] sm:$0xff] %v8017_v6  ;;  %v8348_v19 = vadd.f32 %v6061_v17, %v10875_v9  ;;  %v8412_v20 = vadd.f32 %v6447_v18, %v10878_v10  ;;  %v6063_v21 = vpop.f32.mrb[167].mxu0  ;;  %v6449_v22 = vpop.f32.mrb[167].mxu1 }
 0x46a   : > { %6930 = vst [vmem:[%s10948_s23 + $0x110] sm:$0xff] %v8018_v34  ;;  %6931 = vst [vmem:[%s10948_s23 + $0x118] sm:$0xff] %v8019_v8  ;;  %v8020_v23 = vpack.c.bf16 %v8347_v29, %v8346_v25  ;;  %v8021_v24 = vpack.c.bf16 %v8411_v16, %v8410_v26  ;;  %v8349_v27 = vadd.f32 %v6063_v21, %v10881_v11 }
 0x46b   : > { %v8413_v30 = vadd.f32 %v6449_v22, %v10884_v12 }
 0x46c   : > { %6932 = vst [vmem:[%s10948_s23 + $0x120] sm:$0xff] %v8020_v23  ;;  %6933 = vst [vmem:[%s10948_s23 + $0x128] sm:$0xff] %v8021_v24  ;;  %v8022_v35 = vpack.c.bf16 %v8349_v27, %v8348_v19 }
 0x46d   : > { %v8023_v36 = vpack.c.bf16 %v8413_v30, %v8412_v20  ;;  %v6067_v37 = vpop.f32.mrb[168].mxu0  ;;  %v6453_v38 = vpop.f32.mrb[168].mxu1 }
 0x46e   : > { %6934 = vst [vmem:[%s10948_s23 + $0x130] sm:$0xff] %v8022_v35  ;;  %v8350_v39 = vadd.f32 %v6067_v37, %v10875_v9  ;;  %v8414_v40 = vadd.f32 %v6453_v38, %v10878_v10  ;;  %v6069_v41 = vpop.f32.mrb[169].mxu0  ;;  %v6455_v42 = vpop.f32.mrb[169].mxu1 }
 0x46f   : > { %6935 = vst [vmem:[%s10948_s23 + $0x138] sm:$0xff] %v8023_v36  ;;  %v8351_v43 = vadd.f32 %v6069_v41, %v10881_v11  ;;  %v8415_v44 = vadd.f32 %v6455_v42, %v10884_v12  ;;  %v6071_v45 = vpop.f32.mrb[170].mxu0  ;;  %v6457_v46 = vpop.f32.mrb[170].mxu1 }
 0x470   : > { %v8352_v47 = vadd.f32 %v6071_v45, %v10875_v9  ;;  %v8416_v48 = vadd.f32 %v6457_v46, %v10878_v10  ;;  %v6073_v49 = vpop.f32.mrb[171].mxu0  ;;  %v6459_v54 = vpop.f32.mrb[171].mxu1 }
 0x471   : > { %v8024_v55 = vpack.c.bf16 %v8351_v43, %v8350_v39  ;;  %v8025_v56 = vpack.c.bf16 %v8415_v44, %v8414_v40  ;;  %v8353_v57 = vadd.f32 %v6073_v49, %v10881_v11  ;;  %v8417_v58 = vadd.f32 %v6459_v54, %v10884_v12 }
 0x473   : > { %6936 = vst [vmem:[%s10948_s23 + $0x140] sm:$0xff] %v8024_v55  ;;  %6937 = vst [vmem:[%s10948_s23 + $0x148] sm:$0xff] %v8025_v56  ;;  %v8026_v59 = vpack.c.bf16 %v8353_v57, %v8352_v47  ;;  %v8027_v60 = vpack.c.bf16 %v8417_v58, %v8416_v48 }
 0x475   : > { %6938 = vst [vmem:[%s10948_s23 + $0x150] sm:$0xff] %v8026_v59  ;;  %6939 = vst [vmem:[%s10948_s23 + $0x158] sm:$0xff] %v8027_v60  ;;  %v6077_v61 = vpop.f32.mrb[172].mxu0  ;;  %v6463_v62 = vpop.f32.mrb[172].mxu1 }
 0x476   : > { %v8354_v63 = vadd.f32 %v6077_v61, %v10875_v9  ;;  %v8418_v0 = vadd.f32 %v6463_v62, %v10878_v10  ;;  %v6079_v1 = vpop.f32.mrb[173].mxu0  ;;  %v6465_v2 = vpop.f32.mrb[173].mxu1 }
 0x477   : > { %v8355_v3 = vadd.f32 %v6079_v1, %v10881_v11  ;;  %v8419_v50 = vadd.f32 %v6465_v2, %v10884_v12  ;;  %v6081_v51 = vpop.f32.mrb[174].mxu0  ;;  %v6467_v4 = vpop.f32.mrb[174].mxu1 }
 0x478   : > { %v8356_v52 = vadd.f32 %v6081_v51, %v10875_v9  ;;  %v8420_v53 = vadd.f32 %v6467_v4, %v10878_v10  ;;  %v6083_v31 = vpop.f32.mrb[175].mxu0  ;;  %v6469_v32 = vpop.f32.mrb[175].mxu1 }
 0x479   : > { %v8028_v5 = vpack.c.bf16 %v8355_v3, %v8354_v63  ;;  %v8029_v6 = vpack.c.bf16 %v8419_v50, %v8418_v0  ;;  %v8357_v7 = vadd.f32 %v6083_v31, %v10881_v11  ;;  %v8421_v33 = vadd.f32 %v6469_v32, %v10884_v12 }
 0x47b   : > { %6940 = vst [vmem:[%s10948_s23 + $0x160] sm:$0xff] %v8028_v5  ;;  %6941 = vst [vmem:[%s10948_s23 + $0x168] sm:$0xff] %v8029_v6  ;;  %v8030_v34 = vpack.c.bf16 %v8357_v7, %v8356_v52  ;;  %v8031_v8 = vpack.c.bf16 %v8421_v33, %v8420_v53 }
 0x47d   : > { %6942 = vst [vmem:[%s10948_s23 + $0x170] sm:$0xff] %v8030_v34  ;;  %6943 = vst [vmem:[%s10948_s23 + $0x178] sm:$0xff] %v8031_v8  ;;  %v6087_v13 = vpop.f32.mrb[176].mxu0  ;;  %v6473_v14 = vpop.f32.mrb[176].mxu1 }
 0x47e   : > { %v8358_v25 = vadd.f32 %v6087_v13, %v10875_v9  ;;  %v8422_v26 = vadd.f32 %v6473_v14, %v10878_v10  ;;  %v6089_v28 = vpop.f32.mrb[177].mxu0  ;;  %v6475_v15 = vpop.f32.mrb[177].mxu1 }
 0x47f   : > { %v8359_v29 = vadd.f32 %v6089_v28, %v10881_v11  ;;  %v8423_v16 = vadd.f32 %v6475_v15, %v10884_v12  ;;  %v6091_v17 = vpop.f32.mrb[178].mxu0  ;;  %v6477_v18 = vpop.f32.mrb[178].mxu1 }
 0x480   : > { %v8360_v19 = vadd.f32 %v6091_v17, %v10875_v9  ;;  %v8424_v20 = vadd.f32 %v6477_v18, %v10878_v10  ;;  %v6093_v21 = vpop.f32.mrb[179].mxu0  ;;  %v6479_v22 = vpop.f32.mrb[179].mxu1 }
 0x481   : > { %v8032_v23 = vpack.c.bf16 %v8359_v29, %v8358_v25  ;;  %v8033_v24 = vpack.c.bf16 %v8423_v16, %v8422_v26  ;;  %v8361_v27 = vadd.f32 %v6093_v21, %v10881_v11  ;;  %v8425_v30 = vadd.f32 %v6479_v22, %v10884_v12 }
 0x483   : > { %6944 = vst [vmem:[%s10948_s23 + $0x180] sm:$0xff] %v8032_v23  ;;  %6945 = vst [vmem:[%s10948_s23 + $0x188] sm:$0xff] %v8033_v24  ;;  %v8034_v35 = vpack.c.bf16 %v8361_v27, %v8360_v19  ;;  %v8035_v36 = vpack.c.bf16 %v8425_v30, %v8424_v20 }
 0x485   : > { %6946 = vst [vmem:[%s10948_s23 + $0x190] sm:$0xff] %v8034_v35  ;;  %6947 = vst [vmem:[%s10948_s23 + $0x198] sm:$0xff] %v8035_v36  ;;  %v6097_v37 = vpop.f32.mrb[180].mxu0  ;;  %v6483_v38 = vpop.f32.mrb[180].mxu1 }
 0x486   : > { %v8362_v39 = vadd.f32 %v6097_v37, %v10875_v9  ;;  %v8426_v40 = vadd.f32 %v6483_v38, %v10878_v10  ;;  %v6099_v41 = vpop.f32.mrb[181].mxu0  ;;  %v6485_v42 = vpop.f32.mrb[181].mxu1 }
 0x487   : > { %v8363_v43 = vadd.f32 %v6099_v41, %v10881_v11  ;;  %v8427_v44 = vadd.f32 %v6485_v42, %v10884_v12  ;;  %v6101_v45 = vpop.f32.mrb[182].mxu0  ;;  %v6487_v46 = vpop.f32.mrb[182].mxu1 }
 0x488   : > { %v8364_v47 = vadd.f32 %v6101_v45, %v10875_v9  ;;  %v8428_v48 = vadd.f32 %v6487_v46, %v10878_v10  ;;  %v6103_v49 = vpop.f32.mrb[183].mxu0  ;;  %v6489_v54 = vpop.f32.mrb[183].mxu1 }
 0x489   : > { %v8036_v55 = vpack.c.bf16 %v8363_v43, %v8362_v39  ;;  %v8037_v56 = vpack.c.bf16 %v8427_v44, %v8426_v40  ;;  %v8365_v57 = vadd.f32 %v6103_v49, %v10881_v11  ;;  %v8429_v58 = vadd.f32 %v6489_v54, %v10884_v12 }
 0x48b   : > { %6948 = vst [vmem:[%s10948_s23 + $0x1a0] sm:$0xff] %v8036_v55  ;;  %6949 = vst [vmem:[%s10948_s23 + $0x1a8] sm:$0xff] %v8037_v56  ;;  %v8038_v59 = vpack.c.bf16 %v8365_v57, %v8364_v47  ;;  %v8039_v60 = vpack.c.bf16 %v8429_v58, %v8428_v48 }
 0x48d   : > { %6950 = vst [vmem:[%s10948_s23 + $0x1b0] sm:$0xff] %v8038_v59  ;;  %6951 = vst [vmem:[%s10948_s23 + $0x1b8] sm:$0xff] %v8039_v60  ;;  %v6107_v61 = vpop.f32.mrb[184].mxu0  ;;  %v6493_v62 = vpop.f32.mrb[184].mxu1 }
 0x48e   : > { %v8366_v63 = vadd.f32 %v6107_v61, %v10875_v9  ;;  %v8430_v0 = vadd.f32 %v6493_v62, %v10878_v10  ;;  %v6109_v1 = vpop.f32.mrb[185].mxu0  ;;  %v6495_v2 = vpop.f32.mrb[185].mxu1 }
 0x48f   : > { %v8367_v3 = vadd.f32 %v6109_v1, %v10881_v11  ;;  %v8431_v50 = vadd.f32 %v6495_v2, %v10884_v12  ;;  %v6111_v51 = vpop.f32.mrb[186].mxu0  ;;  %v6497_v4 = vpop.f32.mrb[186].mxu1 }
 0x490   : > { %v8368_v52 = vadd.f32 %v6111_v51, %v10875_v9  ;;  %v8432_v53 = vadd.f32 %v6497_v4, %v10878_v10  ;;  %v6113_v31 = vpop.f32.mrb[187].mxu0  ;;  %v6499_v32 = vpop.f32.mrb[187].mxu1 }
 0x491   : > { %v8040_v5 = vpack.c.bf16 %v8367_v3, %v8366_v63  ;;  %v8041_v6 = vpack.c.bf16 %v8431_v50, %v8430_v0  ;;  %v8369_v7 = vadd.f32 %v6113_v31, %v10881_v11  ;;  %v8433_v33 = vadd.f32 %v6499_v32, %v10884_v12 }
 0x493   : > { %6952 = vst [vmem:[%s10948_s23 + $0x1c0] sm:$0xff] %v8040_v5  ;;  %6953 = vst [vmem:[%s10948_s23 + $0x1c8] sm:$0xff] %v8041_v6  ;;  %v8042_v34 = vpack.c.bf16 %v8369_v7, %v8368_v52  ;;  %v8043_v8 = vpack.c.bf16 %v8433_v33, %v8432_v53 }
 0x495   : > { %6954 = vst [vmem:[%s10948_s23 + $0x1d0] sm:$0xff] %v8042_v34  ;;  %6955 = vst [vmem:[%s10948_s23 + $0x1d8] sm:$0xff] %v8043_v8  ;;  %v6117_v13 = vpop.f32.mrb[188].mxu0  ;;  %v6503_v14 = vpop.f32.mrb[188].mxu1 }
 0x496   : > { %v8370_v25 = vadd.f32 %v6117_v13, %v10875_v9  ;;  %v8434_v26 = vadd.f32 %v6503_v14, %v10878_v10  ;;  %v6119_v28 = vpop.f32.mrb[189].mxu0  ;;  %v6505_v15 = vpop.f32.mrb[189].mxu1 }
 0x497   : > { %v8371_v29 = vadd.f32 %v6119_v28, %v10881_v11  ;;  %v8435_v16 = vadd.f32 %v6505_v15, %v10884_v12  ;;  %v6121_v17 = vpop.f32.mrb[190].mxu0  ;;  %v6507_v18 = vpop.f32.mrb[190].mxu1 }
 0x498   : > { %v8372_v19 = vadd.f32 %v6121_v17, %v10875_v9  ;;  %v8436_v20 = vadd.f32 %v6507_v18, %v10878_v10  ;;  %v6123_v21 = vpop.f32.mrb[191].mxu0  ;;  %v6509_v22 = vpop.f32.mrb[191].mxu1 }
 0x499   : > { %v8044_v23 = vpack.c.bf16 %v8371_v29, %v8370_v25  ;;  %v8045_v24 = vpack.c.bf16 %v8435_v16, %v8434_v26  ;;  %v8373_v27 = vadd.f32 %v6123_v21, %v10881_v11  ;;  %v8437_v30 = vadd.f32 %v6509_v22, %v10884_v12 }
 0x49b   : > { %6956 = vst [vmem:[%s10948_s23 + $0x1e0] sm:$0xff] %v8044_v23  ;;  %6957 = vst [vmem:[%s10948_s23 + $0x1e8] sm:$0xff] %v8045_v24  ;;  %v8046_v35 = vpack.c.bf16 %v8373_v27, %v8372_v19  ;;  %v8047_v36 = vpack.c.bf16 %v8437_v30, %v8436_v20 }
 0x49d   : > { %6958 = vst [vmem:[%s10948_s23 + $0x1f0] sm:$0xff] %v8046_v35  ;;  %6959 = vst [vmem:[%s10948_s23 + $0x1f8] sm:$0xff] %v8047_v36 }
 0x49e   : > { %9896 = shalt.err (!%p9893_p6)
}
 0x49f   : > { %s9897_s24 = scalar_lea.hbm %s11166_s27, 8192  ;;  %s9901_s15 = scalar_lea.hbm %s11251_s19, 32768 }
 0x4a0   : > { %p9898_p0 = scmp.ne.s32.totalorder %s11166_s27, %s9897_s24  ;;  %p9902_p11 = scmp.lt.u32.totalorder %s11166_s27, %s11251_s19 }
 0x4a1   : > { %p9903_p1 = scmp.lt.u32.totalorder %s9901_s15, %s9897_s24  ;;  %p9905_p4 = scmp.lt.u32.totalorder %s9897_s24, %s11166_s27 }
 0x4a2   : > { %p9899_p3 = pnand %p9898_p0, %p10179_p5 }
 0x4a3   : > { %p9904_p2 = por %p9903_p1, %p9902_p11 }
 0x4a4   : > { %p9900_p7 = pneg %p9899_p3 }
 0x4a5   : > { %p9906_p9 = por %p9905_p4, %p9904_p2 }
 0x4a7   : > { %p9907_p13 = pnand %p9906_p9, %p9900_p7 }
 0x4a9   : > { %9910 = shalt.err (!%p9907_p13)
}
 0x4aa   : > { %8838 = dma.vmem_to_hbm [thread:$0]  (%p10179_p5), %s11168_s30, 8192, %s11166_s27, %s10909_s13, %s9970_s17, %s9970_s17, %s9971_s25  }
 0x4ab PF: > { %s11252_s21 = sld [smem:[#allocation19_spill]]  ;;  %s11253_s22 = sld [smem:[#allocation20_spill]] }
 0x4ac   : > { %p8873_p10 = scmp.ge.s32.totalorder %s9961_s12, 2 }
 0x4b1   : > { %s7034_s20 = sand.u32 1, %s11252_s21   ;;  %p11254_p8 = scmp.ne.s32.totalorder %s11253_s22, 0 }
 0x4b2   : > { %s7035_s26 = scalar_lea.sflag [#allocation4], %s7034_s20 }
 0x4b3   : > { %p8857_p12 = pnand %p8873_p10, %p11254_p8 }
 0x4b5   : > { %9940 = dma.done.wait (!%p8857_p12), %s7035_s26, 8192  }
 0x4b6   : > { %9942 = vsyncadd (!%p8857_p12), %s7035_s26, 4294959104  ;;  %s11255_s16 = sadd.s32 4294967294, %s9961_s12  }
 0x4b7   : > { %s7043_s24 = sand.u32 1, %s11255_s16  }
 0x4b8   : > { %s7044_s23 = scalar_lea.sflag [#allocation12], %s7043_s24 }
 0x4b9   : > { %9944 = dma.done.wait (!%p8857_p12), %s7044_s23, 16384  }
 0x4ba   : > { %9946 = vsyncadd (!%p8857_p12), %s7044_s23, 4294950912  ;;  %p28_p5 = scmp.ge.s32.totalorder %s10165_s18, 6   ;;  %s11256_s30 = smov %s9953_s10 }
 0x4bb   : > { %s11257_s10 = smov %s9957_s11  ;;  %s11258_s11 = smov %s10175_s14 }
 0x4bc   : > { %s11259_s12 = smov %s10165_s18  ;;  %30 = sbr.rel (!%p28_p5) target bundleno = 11 (0xb), region = 137 }
 0x4c3   :  { %7058 = vsyncpa [#allocation3], 1 }
 0x4c4   :  { %7060 = vsyncpa [#allocation3 + $0x1], 1 }
 0x4c5   :  { %7061 = vsyncpa [#allocation6], 1 }
 0x4c6   :  { %7062 = vsyncpa [#allocation9], 1 }
 0x4c7   :  { %7063 = vsyncpa [#allocation4], 1 }
 0x4c8   :  { %7065 = vsyncpa [#allocation4 + $0x1], 1 }
 0x4c9   :  { %7066 = vsyncpa [#allocation12], 1 }
 0x4ca   :  { %7068 = vsyncpa [#allocation12 + $0x1], 1 }

</bundles_post_ra>
